<compile_context>
chip_gen: v5e
topology: v5e:2x2
jax: 0.10.0
libtpu: 0.0.40
codegen_flags: <defaults>
</compile_context>

<pallas_src>
import functools

import jax
import jax.numpy as jnp
from jax.experimental import pallas as pl
from jax.experimental.pallas import tpu as pltpu


# ----------------------------------------------------------------------------
# Fused encoder kernel
# ----------------------------------------------------------------------------
def _fused_encoder_kernel(
    # inputs -------------------------------------------------------------
    xs_ref,      # (B, 16)     f32  concatenated state vector
    pcs_ref,     # (B, TN, 3)  f32  point-cloud chunk
    pn_w1_ref,   # (3, 128)    f32  folded (repeat(1,1,2)) + 64->128 padded
    pn_b1_ref,   # (1, 128)    f32
    pn_w2_ref,   # (128, 128)  bf16 (rows 64..127 are zero padding)
    pn_b2_ref,   # (1, 128)    f32
    fc_w_ref,    # (128, 128)  bf16 fc_layer conv1x1 with BN folded
    fc_b_ref,    # (1, 128)    f32
    m1a_w_ref,   # (16, 128)   f32  mlp1 layer 1
    m1a_b_ref,   # (1, 128)
    m1b_w_ref,   # (128, 128)       mlp1 layer 2
    m1b_b_ref,   # (1, 128)
    m2h_w_ref,   # (128, 128)       mlp2 rows for hidden_feat
    m2p_w_ref,   # (128, 128)       mlp2 rows for pc_feat
    m2_b_ref,    # (1, 128)
    enc_w_ref,   # (128, H)         hidden_info_encoder
    enc_b_ref,   # (1, H)
    a1_w_ref,    # (128, 128)       AttentionNet layer 1
    a1_b_ref,    # (1, 128)
    a2_w_ref,    # (1, 128)         AttentionNet layer 2 weight (as a row)
    a2_b_ref,    # (1,)        f32  AttentionNet layer 2 bias (SMEM)
    # outputs ------------------------------------------------------------
    out_ref,     # (1, H)      f32  mean_hidden_info
    # scratch ------------------------------------------------------------
    gmax_ref,    # (B, 128)    f32  running global max over points
    p0_ref,      # (B, 128)    f32  feature of point 0 (whole_feats[:, :, 0] surrogate)
):
    t = pl.program_id(0)
    nt = pl.num_programs(0)
    B, TN, C = pcs_ref.shape
    F = pn_w2_ref.shape[1]

    # ---- shared per-point MLP on this chunk (bf16 MXU inputs, f32 accumulate) --
    xc = pcs_ref[...].reshape(B * TN, C)                                   # (B*TN, 3)
    h1 = jnp.dot(xc, pn_w1_ref[...], preferred_element_type=jnp.float32)
    h1 = jnp.maximum(h1 + pn_b1_ref[...], 0.0)                             # (B*TN, 128)
    h2 = jnp.dot(h1.astype(jnp.bfloat16), pn_w2_ref[...],
                 preferred_element_type=jnp.float32)
    h2 = jnp.maximum(h2 + pn_b2_ref[...], 0.0)
    h2 = h2.reshape(B, TN, F)                                              # (B, TN, 128)
    chunk_max = jnp.max(h2, axis=1)                                        # (B, 128)

    @pl.when(t == 0)
    def _init():
        gmax_ref[...] = jnp.full_like(gmax_ref, -jnp.inf)
        p0_ref[...] = h2[:, 0, :]          # first point of each batch element

    gmax_ref[...] = jnp.maximum(gmax_ref[...], chunk_max)

    # ---- dense head, only at the last grid step (everything VMEM-resident) ----
    @pl.when(t == nt - 1)
    def _finalize():
        feat = p0_ref[...] + gmax_ref[...]                                 # (B, 128)
        # fc_layer: Conv1d(128,128,k=1,bias=False) + BN(folded) + ReLU
        pc_feat = jnp.dot(feat.astype(jnp.bfloat16), fc_w_ref[...],
                          preferred_element_type=jnp.float32) + fc_b_ref[...]
        pc_feat = jnp.maximum(pc_feat, 0.0)                                # (B, 128)

        xs = xs_ref[...]                                                   # (B, 16)
        # mlp1
        h = jnp.dot(xs, m1a_w_ref[...], preferred_element_type=jnp.float32)
        h = jnp.maximum(h + m1a_b_ref[...], 0.0)
        h = jnp.dot(h, m1b_w_ref[...], preferred_element_type=jnp.float32) + m1b_b_ref[...]
        # mlp2 on concat([h, pc_feat]) == split-weight sum
        hf = (jnp.dot(h, m2h_w_ref[...], preferred_element_type=jnp.float32)
              + jnp.dot(pc_feat, m2p_w_ref[...], preferred_element_type=jnp.float32)
              + m2_b_ref[...])
        hf = jnp.maximum(hf, 0.0)                                          # (B, 128)

        # hidden_info_encoder
        hinfo = jnp.dot(hf, enc_w_ref[...], preferred_element_type=jnp.float32) + enc_b_ref[...]
        # AttentionNet: Linear(128,128)+ReLU, Linear(128,1)+Sigmoid
        a = jnp.dot(hf, a1_w_ref[...], preferred_element_type=jnp.float32) + a1_b_ref[...]
        a = jnp.maximum(a, 0.0)
        logit = jnp.sum(a * a2_w_ref[...], axis=-1, keepdims=True) + a2_b_ref[0]   # (B, 1)
        att = jax.nn.sigmoid(logit)

        weighted = hinfo * att / (1e-05 + jnp.sum(att))
        out_ref[...] = jnp.sum(weighted, axis=0, keepdims=True).astype(out_ref.dtype)


def _pick_point_tile(batch, n_points, target_rows=1024):
    """Point-chunk size: ~1k MXU rows per grid step, multiple of 8, divides N."""
    tn = min(n_points, max(8, (target_rows // max(batch, 1)) // 8 * 8))
    while tn > 8 and n_points % tn != 0:
        tn -= 8
    if n_points % tn != 0:
        tn = n_points
    return tn


# ----------------------------------------------------------------------------
# Encoder forward (single fused pallas_call)
# ----------------------------------------------------------------------------
def encoder_forward(prep, dir, dis, push_dis, ctpt, joint_info, pcs, start_pos,
                    end_pos, f_dir, hidden_dim=2, point_tile=None):
    B = dir.shape[0]
    xs = jnp.concatenate(
        [dir.reshape(B, -1), dis.reshape(B, -1), push_dis.reshape(B, -1),
         ctpt.reshape(B, -1), joint_info.reshape(B, -1), start_pos.reshape(B, -1),
         end_pos.reshape(B, -1), f_dir.reshape(B, -1)], axis=-1)           # (B, 16)

    N = pcs.shape[1]
    tn = _pick_point_tile(B, N) if point_tile is None else point_tile
    assert N % tn == 0 and (tn % 8 == 0 or tn == N), (N, tn)
    grid = (N // tn,)

    full = lambda t: (0, 0)
    in_specs = [
        pl.BlockSpec((B, 16), full),                       # xs
        pl.BlockSpec((B, tn, 3), lambda t: (0, t, 0)),     # pcs chunk
        pl.BlockSpec((3, 128), full),                      # pn_w1 (folded, padded)
        pl.BlockSpec((1, 128), full),                      # pn_b1
        pl.BlockSpec((128, 128), full),                    # pn_w2 (bf16)
        pl.BlockSpec((1, 128), full),                      # pn_b2
        pl.BlockSpec((128, 128), full),                    # fc_w  (bf16, BN folded)
        pl.BlockSpec((1, 128), full),                      # fc_b
        pl.BlockSpec((16, 128), full),                     # mlp1 w1
        pl.BlockSpec((1, 128), full),                      # mlp1 b1
        pl.BlockSpec((128, 128), full),                    # mlp1 w2
        pl.BlockSpec((1, 128), full),                      # mlp1 b2
        pl.BlockSpec((128, 128), full),                    # mlp2 w (hidden half)
        pl.BlockSpec((128, 128), full),                    # mlp2 w (pc_feat half)
        pl.BlockSpec((1, 128), full),                      # mlp2 b
        pl.BlockSpec((128, hidden_dim), full),             # enc_w
        pl.BlockSpec((1, hidden_dim), full),               # enc_b
        pl.BlockSpec((128, 128), full),                    # att_w1
        pl.BlockSpec((1, 128), full),                      # att_b1
        pl.BlockSpec((1, 128), full),                      # att_w2 (row)
        pl.BlockSpec(memory_space=pltpu.MemorySpace.SMEM), # att_b2 scalar
    ]

    return pl.pallas_call(
        _fused_encoder_kernel,
        out_shape=jax.ShapeDtypeStruct((1, hidden_dim), jnp.float32),
        grid_spec=pltpu.PrefetchScalarGridSpec(
            num_scalar_prefetch=0,
            grid=grid,
            in_specs=in_specs,
            out_specs=pl.BlockSpec((1, hidden_dim), full),
            scratch_shapes=[
                pltpu.VMEM((B, 128), jnp.float32),   # running max
                pltpu.VMEM((B, 128), jnp.float32),   # point-0 feature
            ],
        ),
        compiler_params=pltpu.CompilerParams(
            dimension_semantics=("arbitrary",),      # reduction axis (scratch carry)
        ),
    )(
        xs, pcs,
        prep["pn_w1"], prep["pn_b1"], prep["pn_w2"], prep["pn_b2"],
        prep["fc_w"], prep["fc_b"],
        prep["m1a_w"], prep["m1a_b"], prep["m1b_w"], prep["m1b_b"],
        prep["m2h_w"], prep["m2p_w"], prep["m2_b"],
        prep["enc_w"], prep["enc_b"],
        prep["a1_w"], prep["a1_b"], prep["a2_w"], prep["a2_b"],
    )


# ----------------------------------------------------------------------------
# Pure-JAX reference (same numerics: bf16 bulk weights, identical folds)
# ----------------------------------------------------------------------------
def encoder_forward_ref(prep, dir, dis, push_dis, ctpt, joint_info, pcs, start_pos,
                        end_pos, f_dir, hidden_dim=2):
    B = dir.shape[0]
    xs = jnp.concatenate(
        [dir.reshape(B, -1), dis.reshape(B, -1), push_dis.reshape(B, -1),
         ctpt.reshape(B, -1), joint_info.reshape(B, -1), start_pos.reshape(B, -1),
         end_pos.reshape(B, -1), f_dir.reshape(B, -1)], axis=-1)
    _, N, _ = pcs.shape
    xc = pcs.reshape(B * N, 3)
    h1 = jnp.maximum(jnp.dot(xc, prep["pn_w1"], preferred_element_type=jnp.float32)
                     + prep["pn_b1"], 0.0)
    h2 = jnp.maximum(jnp.dot(h1.astype(jnp.bfloat16), prep["pn_w2"],
                             preferred_element_type=jnp.float32) + prep["pn_b2"], 0.0)
    h2 = h2.reshape(B, N, -1)
    feat = h2[:, 0, :] + jnp.max(h2, axis=1)
    pc_feat = jnp.maximum(jnp.dot(feat.astype(jnp.bfloat16), prep["fc_w"],
                                  preferred_element_type=jnp.float32) + prep["fc_b"], 0.0)
    h = jnp.maximum(jnp.dot(xs, prep["m1a_w"], preferred_element_type=jnp.float32)
                    + prep["m1a_b"], 0.0)
    h = jnp.dot(h, prep["m1b_w"], preferred_element_type=jnp.float32) + prep["m1b_b"]
    hf = jnp.maximum(jnp.dot(h, prep["m2h_w"], preferred_element_type=jnp.float32)
                     + jnp.dot(pc_feat, prep["m2p_w"], preferred_element_type=jnp.float32)
                     + prep["m2_b"], 0.0)
    hinfo = jnp.dot(hf, prep["enc_w"], preferred_element_type=jnp.float32) + prep["enc_b"]
    a = jnp.maximum(jnp.dot(hf, prep["a1_w"], preferred_element_type=jnp.float32)
                    + prep["a1_b"], 0.0)
    logit = jnp.sum(a * prep["a2_w"], axis=-1, keepdims=True) + prep["a2_b"][0]
    att = jax.nn.sigmoid(logit)
    weighted = hinfo * att / (1e-05 + jnp.sum(att))
    return jnp.sum(weighted, axis=0, keepdims=True)


# ----------------------------------------------------------------------------
# Parameters
# ----------------------------------------------------------------------------
def init_params(key):
    def dense(k, fan_in, fan_out):
        k1, k2 = jax.random.split(k)
        w = jax.random.normal(k1, (fan_in, fan_out), jnp.float32) / jnp.sqrt(float(fan_in))
        b = jax.random.normal(k2, (fan_out,), jnp.float32) * 0.01
        return w, b

    keys = jax.random.split(key, 9)
    p = {}
    p["pn_w1"], p["pn_b1"] = dense(keys[0], 6, 64)     # per-point MLP layer 1
    p["pn_w2"], p["pn_b2"] = dense(keys[1], 64, 128)   # per-point MLP layer 2
    p["fc_w"], _ = dense(keys[2], 128, 128)            # fc_layer conv1x1 (no bias)
    p["bn_gamma"] = jnp.ones((128,), jnp.float32)
    p["bn_beta"] = jnp.zeros((128,), jnp.float32)
    p["bn_mean"] = jnp.zeros((128,), jnp.float32)
    p["bn_var"] = jnp.ones((128,), jnp.float32)
    p["mlp1_w1"], p["mlp1_b1"] = dense(keys[3], 16, 128)
    p["mlp1_w2"], p["mlp1_b2"] = dense(keys[4], 128, 128)
    p["mlp2_w"], p["mlp2_b"] = dense(keys[5], 128 + 128, 128)
    p["enc_w"], p["enc_b"] = dense(keys[6], 128, 2)
    p["att_w1"], p["att_b1"] = dense(keys[7], 128, 128)
    p["att_w2"], p["att_b2"] = dense(keys[8], 128, 1)
    return p


def prepare_params(p, bn_eps=1e-5):
    """One-time weight folding / padding / dtype prep (done outside the hot path)."""
    # pcs.repeat(1, 1, 2) folded into the first weight; output padded 64 -> 128.
    pn_w1 = jnp.pad(p["pn_w1"][:3] + p["pn_w1"][3:6], ((0, 0), (0, 64)))
    pn_b1 = jnp.pad(p["pn_b1"], (0, 64)).reshape(1, 128)
    pn_w2 = jnp.pad(p["pn_w2"], ((0, 64), (0, 0))).astype(jnp.bfloat16)
    pn_b2 = p["pn_b2"].reshape(1, 128)
    # fc_layer BatchNorm fold (general formula).
    scale = p["bn_gamma"] / jnp.sqrt(p["bn_var"] + bn_eps)
    fc_w = (p["fc_w"] * scale[None, :]).astype(jnp.bfloat16)
    fc_b = (p["bn_beta"] - p["bn_mean"] * scale).reshape(1, 128)
    return {
        "pn_w1": pn_w1, "pn_b1": pn_b1, "pn_w2": pn_w2, "pn_b2": pn_b2,
        "fc_w": fc_w, "fc_b": fc_b,
        "m1a_w": p["mlp1_w1"], "m1a_b": p["mlp1_b1"].reshape(1, -1),
        "m1b_w": p["mlp1_w2"], "m1b_b": p["mlp1_b2"].reshape(1, -1),
        "m2h_w": p["mlp2_w"][:128], "m2p_w": p["mlp2_w"][128:],
        "m2_b": p["mlp2_b"].reshape(1, -1),
        "enc_w": p["enc_w"], "enc_b": p["enc_b"].reshape(1, -1),
        "a1_w": p["att_w1"], "a1_b": p["att_b1"].reshape(1, -1),
        "a2_w": p["att_w2"].reshape(1, -1),          # (128,1) -> row (1,128)
        "a2_b": p["att_b2"].reshape(1,),
    }


if __name__ == "__main__":
    key = jax.random.PRNGKey(0)
    pkey, *ikeys = jax.random.split(key, 11)
    prep = prepare_params(init_params(pkey))

    B, N = 2, 1024   # -> point tile 512, grid of 2 steps (exercises the reduction)
    dir_ = jax.random.normal(ikeys[0], (B, 3), jnp.float32)
    dis = jax.random.normal(ikeys[1], (B, 1), jnp.float32)
    push_dis = jax.random.normal(ikeys[2], (B, 1), jnp.float32)
    ctpt = jax.random.normal(ikeys[3], (B, 3), jnp.float32)
    joint_info = jax.random.normal(ikeys[4], (B, 3), jnp.float32)
    pcs = jax.random.normal(ikeys[5], (B, N, 3), jnp.float32)
    start_pos = jax.random.normal(ikeys[6], (B, 1), jnp.float32)
    end_pos = jax.random.normal(ikeys[7], (B, 1), jnp.float32)
    f_dir = jax.random.normal(ikeys[8], (B, 3), jnp.float32)

    args = (dir_, dis, push_dis, ctpt, joint_info, pcs, start_pos, end_pos, f_dir)

    fwd = jax.jit(functools.partial(encoder_forward, prep))
    out = jax.block_until_ready(fwd(*args))
    assert out.shape == (1, 2), out.shape
    assert bool(jnp.all(jnp.isfinite(out)))

    ref = jax.jit(functools.partial(encoder_forward_ref, prep))(*args)
    assert bool(jnp.allclose(out, ref, rtol=5e-2, atol=1e-2)), (out, ref)

    print("KERNEL_OK")
</pallas_src>

<mosaic_0001>
module attributes {stable_mosaic.version = 11 : i64} {
  func.func @_fused_encoder_kernel(%arg0: i32, %arg1: memref<2x16xf32, #tpu.memory_space<vmem>>, %arg2: memref<2x512x3xf32, #tpu.memory_space<vmem>>, %arg3: memref<3x128xf32, #tpu.memory_space<vmem>>, %arg4: memref<1x128xf32, #tpu.memory_space<vmem>>, %arg5: memref<128x128xbf16, #tpu.memory_space<vmem>>, %arg6: memref<1x128xf32, #tpu.memory_space<vmem>>, %arg7: memref<128x128xbf16, #tpu.memory_space<vmem>>, %arg8: memref<1x128xf32, #tpu.memory_space<vmem>>, %arg9: memref<16x128xf32, #tpu.memory_space<vmem>>, %arg10: memref<1x128xf32, #tpu.memory_space<vmem>>, %arg11: memref<128x128xf32, #tpu.memory_space<vmem>>, %arg12: memref<1x128xf32, #tpu.memory_space<vmem>>, %arg13: memref<128x128xf32, #tpu.memory_space<vmem>>, %arg14: memref<128x128xf32, #tpu.memory_space<vmem>>, %arg15: memref<1x128xf32, #tpu.memory_space<vmem>>, %arg16: memref<128x2xf32, #tpu.memory_space<vmem>>, %arg17: memref<1x2xf32, #tpu.memory_space<vmem>>, %arg18: memref<128x128xf32, #tpu.memory_space<vmem>>, %arg19: memref<1x128xf32, #tpu.memory_space<vmem>>, %arg20: memref<1x128xf32, #tpu.memory_space<vmem>>, %arg21: memref<1xf32, #tpu.memory_space<smem>>, %arg22: memref<1x2xf32, #tpu.memory_space<vmem>>, %arg23: memref<2x128xf32, #tpu.memory_space<vmem>>, %arg24: memref<2x128xf32, #tpu.memory_space<vmem>>) attributes {dimension_semantics = [#tpu.dimension_semantics<arbitrary>], iteration_bounds = array<i64: 2>, scalar_prefetch = 0 : i64, scratch_operands = 2 : i64, tpu.core_type = #tpu.core_type<tc>, window_params = [{pipeline_mode = #tpu.pipeline_mode<synchronous>, transform_indices = @transform_0, window_bounds = array<i64: 2, 16>}, {transform_indices = @transform_1, window_bounds = array<i64: 2, 512, 3>}, {pipeline_mode = #tpu.pipeline_mode<synchronous>, transform_indices = @transform_2, window_bounds = array<i64: 3, 128>}, {pipeline_mode = #tpu.pipeline_mode<synchronous>, transform_indices = @transform_3, window_bounds = array<i64: 1, 128>}, {pipeline_mode = #tpu.pipeline_mode<synchronous>, transform_indices = @transform_4, window_bounds = array<i64: 128, 128>}, {pipeline_mode = #tpu.pipeline_mode<synchronous>, transform_indices = @transform_5, window_bounds = array<i64: 1, 128>}, {pipeline_mode = #tpu.pipeline_mode<synchronous>, transform_indices = @transform_6, window_bounds = array<i64: 128, 128>}, {pipeline_mode = #tpu.pipeline_mode<synchronous>, transform_indices = @transform_7, window_bounds = array<i64: 1, 128>}, {pipeline_mode = #tpu.pipeline_mode<synchronous>, transform_indices = @transform_8, window_bounds = array<i64: 16, 128>}, {pipeline_mode = #tpu.pipeline_mode<synchronous>, transform_indices = @transform_9, window_bounds = array<i64: 1, 128>}, {pipeline_mode = #tpu.pipeline_mode<synchronous>, transform_indices = @transform_10, window_bounds = array<i64: 128, 128>}, {pipeline_mode = #tpu.pipeline_mode<synchronous>, transform_indices = @transform_11, window_bounds = array<i64: 1, 128>}, {pipeline_mode = #tpu.pipeline_mode<synchronous>, transform_indices = @transform_12, window_bounds = array<i64: 128, 128>}, {pipeline_mode = #tpu.pipeline_mode<synchronous>, transform_indices = @transform_13, window_bounds = array<i64: 128, 128>}, {pipeline_mode = #tpu.pipeline_mode<synchronous>, transform_indices = @transform_14, window_bounds = array<i64: 1, 128>}, {pipeline_mode = #tpu.pipeline_mode<synchronous>, transform_indices = @transform_15, window_bounds = array<i64: 128, 2>}, {pipeline_mode = #tpu.pipeline_mode<synchronous>, transform_indices = @transform_16, window_bounds = array<i64: 1, 2>}, {pipeline_mode = #tpu.pipeline_mode<synchronous>, transform_indices = @transform_17, window_bounds = array<i64: 128, 128>}, {pipeline_mode = #tpu.pipeline_mode<synchronous>, transform_indices = @transform_18, window_bounds = array<i64: 1, 128>}, {pipeline_mode = #tpu.pipeline_mode<synchronous>, transform_indices = @transform_19, window_bounds = array<i64: 1, 128>}, {transform_indices = @transform_20, window_bounds = array<i64: 1>}, {pipeline_mode = #tpu.pipeline_mode<synchronous>, transform_indices = @transform_21, window_bounds = array<i64: 1, 2>}]} {
    %c0 = arith.constant 0 : index
    %c0_0 = arith.constant 0 : index
    %c0_1 = arith.constant 0 : index
    %0 = vector.load %arg2[%c0, %c0_0, %c0_1] : memref<2x512x3xf32, #tpu.memory_space<vmem>>, vector<2x512x3xf32>
    %1 = vector.shape_cast %0 : vector<2x512x3xf32> to vector<1024x3xf32>
    %c0_2 = arith.constant 0 : index
    %c0_3 = arith.constant 0 : index
    %2 = vector.load %arg3[%c0_2, %c0_3] : memref<3x128xf32, #tpu.memory_space<vmem>>, vector<3x128xf32>
    %cst = arith.constant dense<0.000000e+00> : vector<1024x128xf32>
    %3 = tpu.matmul %1, %2, %cst {dimension_numbers = #tpu.dot_dimension_numbers<[1], [0], [0], [1], [0, 0, 1, 1], [], []>} : vector<1024x3xf32>, vector<3x128xf32>, vector<1024x128xf32> -> vector<1024x128xf32>
    %c0_4 = arith.constant 0 : index
    %c0_5 = arith.constant 0 : index
    %4 = vector.load %arg4[%c0_4, %c0_5] : memref<1x128xf32, #tpu.memory_space<vmem>>, vector<1x128xf32>
    %5 = vector.broadcast %4 : vector<1x128xf32> to vector<1024x128xf32>
    %6 = arith.addf %3, %5 : vector<1024x128xf32>
    %cst_6 = arith.constant 0.000000e+00 : f32
    %7 = vector.broadcast %cst_6 : f32 to vector<1024x128xf32>
    %8 = arith.maximumf %6, %7 : vector<1024x128xf32>
    %9 = arith.truncf %8 : vector<1024x128xf32> to vector<1024x128xbf16>
    %c0_7 = arith.constant 0 : index
    %c0_8 = arith.constant 0 : index
    %10 = vector.load %arg5[%c0_7, %c0_8] : memref<128x128xbf16, #tpu.memory_space<vmem>>, vector<128x128xbf16>
    %cst_9 = arith.constant dense<0.000000e+00> : vector<1024x128xf32>
    %11 = tpu.matmul %9, %10, %cst_9 {dimension_numbers = #tpu.dot_dimension_numbers<[1], [0], [0], [1], [0, 0, 1, 1], [], []>} : vector<1024x128xbf16>, vector<128x128xbf16>, vector<1024x128xf32> -> vector<1024x128xf32>
    %c0_10 = arith.constant 0 : index
    %c0_11 = arith.constant 0 : index
    %12 = vector.load %arg6[%c0_10, %c0_11] : memref<1x128xf32, #tpu.memory_space<vmem>>, vector<1x128xf32>
    %13 = vector.broadcast %12 : vector<1x128xf32> to vector<1024x128xf32>
    %14 = arith.addf %11, %13 : vector<1024x128xf32>
    %cst_12 = arith.constant 0.000000e+00 : f32
    %15 = vector.broadcast %cst_12 : f32 to vector<1024x128xf32>
    %16 = arith.maximumf %14, %15 : vector<1024x128xf32>
    %17 = vector.shape_cast %16 : vector<1024x128xf32> to vector<2x512x128xf32>
    %cst_13 = arith.constant dense<0xFF800000> : vector<2x128xf32>
    %18 = vector.multi_reduction <maximumf>, %17, %cst_13 [1] : vector<2x512x128xf32> to vector<2x128xf32>
    %c0_i32 = arith.constant 0 : i32
    %19 = arith.cmpi eq, %arg0, %c0_i32 : i32
    %20 = arith.extui %19 : i1 to i32
    %c0_i32_14 = arith.constant 0 : i32
    %21 = arith.cmpi ne, %20, %c0_i32_14 : i32
    scf.if %21 {
      %cst_20 = arith.constant 0xFF800000 : f32
      %28 = vector.broadcast %cst_20 : f32 to vector<2x128xf32>
      %c0_21 = arith.constant 0 : index
      %c0_22 = arith.constant 0 : index
      %29 = vector.load %arg23[%c0_21, %c0_22] : memref<2x128xf32, #tpu.memory_space<vmem>>, vector<2x128xf32>
      tpu.vector_store %arg23[%c0_21, %c0_22], %28 {strides = array<i32>} : memref<2x128xf32, #tpu.memory_space<vmem>>, vector<2x128xf32>,
      %30 = vector.extract_strided_slice %17 {offsets = [0, 0, 0], sizes = [2, 1, 128], strides = [1, 1, 1]} : vector<2x512x128xf32> to vector<2x1x128xf32>
      %31 = vector.shape_cast %30 : vector<2x1x128xf32> to vector<2x128xf32>
      %c0_23 = arith.constant 0 : index
      %c0_24 = arith.constant 0 : index
      %32 = vector.load %arg24[%c0_23, %c0_24] : memref<2x128xf32, #tpu.memory_space<vmem>>, vector<2x128xf32>
      tpu.vector_store %arg24[%c0_23, %c0_24], %31 {strides = array<i32>} : memref<2x128xf32, #tpu.memory_space<vmem>>, vector<2x128xf32>,
    } else {
    }
    %c0_15 = arith.constant 0 : index
    %c0_16 = arith.constant 0 : index
    %22 = vector.load %arg23[%c0_15, %c0_16] : memref<2x128xf32, #tpu.memory_space<vmem>>, vector<2x128xf32>
    %23 = arith.maximumf %22, %18 : vector<2x128xf32>
    %c0_17 = arith.constant 0 : index
    %c0_18 = arith.constant 0 : index
    %24 = vector.load %arg23[%c0_17, %c0_18] : memref<2x128xf32, #tpu.memory_space<vmem>>, vector<2x128xf32>
    tpu.vector_store %arg23[%c0_17, %c0_18], %23 {strides = array<i32>} : memref<2x128xf32, #tpu.memory_space<vmem>>, vector<2x128xf32>,
    %c1_i32 = arith.constant 1 : i32
    %25 = arith.cmpi eq, %arg0, %c1_i32 : i32
    %26 = arith.extui %25 : i1 to i32
    %c0_i32_19 = arith.constant 0 : i32
    %27 = arith.cmpi ne, %26, %c0_i32_19 : i32
    scf.if %27 {
      %c0_20 = arith.constant 0 : index
      %c0_21 = arith.constant 0 : index
      %28 = vector.load %arg24[%c0_20, %c0_21] : memref<2x128xf32, #tpu.memory_space<vmem>>, vector<2x128xf32>
      %c0_22 = arith.constant 0 : index
      %c0_23 = arith.constant 0 : index
      %29 = vector.load %arg23[%c0_22, %c0_23] : memref<2x128xf32, #tpu.memory_space<vmem>>, vector<2x128xf32>
      %30 = arith.addf %28, %29 : vector<2x128xf32>
      %31 = arith.truncf %30 : vector<2x128xf32> to vector<2x128xbf16>
      %c0_24 = arith.constant 0 : index
      %c0_25 = arith.constant 0 : index
      %32 = vector.load %arg7[%c0_24, %c0_25] : memref<128x128xbf16, #tpu.memory_space<vmem>>, vector<128x128xbf16>
      %cst_26 = arith.constant dense<0.000000e+00> : vector<2x128xf32>
      %33 = tpu.matmul %31, %32, %cst_26 {dimension_numbers = #tpu.dot_dimension_numbers<[1], [0], [0], [1], [0, 0, 1, 1], [], []>} : vector<2x128xbf16>, vector<128x128xbf16>, vector<2x128xf32> -> vector<2x128xf32>
      %c0_27 = arith.constant 0 : index
      %c0_28 = arith.constant 0 : index
      %34 = vector.load %arg8[%c0_27, %c0_28] : memref<1x128xf32, #tpu.memory_space<vmem>>, vector<1x128xf32>
      %35 = vector.broadcast %34 : vector<1x128xf32> to vector<2x128xf32>
      %36 = arith.addf %33, %35 : vector<2x128xf32>
      %cst_29 = arith.constant 0.000000e+00 : f32
      %37 = vector.broadcast %cst_29 : f32 to vector<2x128xf32>
      %38 = arith.maximumf %36, %37 : vector<2x128xf32>
      %c0_30 = arith.constant 0 : index
      %c0_31 = arith.constant 0 : index
      %39 = vector.load %arg1[%c0_30, %c0_31] : memref<2x16xf32, #tpu.memory_space<vmem>>, vector<2x16xf32>
      %c0_32 = arith.constant 0 : index
      %c0_33 = arith.constant 0 : index
      %40 = vector.load %arg9[%c0_32, %c0_33] : memref<16x128xf32, #tpu.memory_space<vmem>>, vector<16x128xf32>
      %cst_34 = arith.constant dense<0.000000e+00> : vector<2x128xf32>
      %41 = tpu.matmul %39, %40, %cst_34 {dimension_numbers = #tpu.dot_dimension_numbers<[1], [0], [0], [1], [0, 0, 1, 1], [], []>} : vector<2x16xf32>, vector<16x128xf32>, vector<2x128xf32> -> vector<2x128xf32>
      %c0_35 = arith.constant 0 : index
      %c0_36 = arith.constant 0 : index
      %42 = vector.load %arg10[%c0_35, %c0_36] : memref<1x128xf32, #tpu.memory_space<vmem>>, vector<1x128xf32>
      %43 = vector.broadcast %42 : vector<1x128xf32> to vector<2x128xf32>
      %44 = arith.addf %41, %43 : vector<2x128xf32>
      %cst_37 = arith.constant 0.000000e+00 : f32
      %45 = vector.broadcast %cst_37 : f32 to vector<2x128xf32>
      %46 = arith.maximumf %44, %45 : vector<2x128xf32>
      %c0_38 = arith.constant 0 : index
      %c0_39 = arith.constant 0 : index
      %47 = vector.load %arg11[%c0_38, %c0_39] : memref<128x128xf32, #tpu.memory_space<vmem>>, vector<128x128xf32>
      %cst_40 = arith.constant dense<0.000000e+00> : vector<2x128xf32>
      %48 = tpu.matmul %46, %47, %cst_40 {dimension_numbers = #tpu.dot_dimension_numbers<[1], [0], [0], [1], [0, 0, 1, 1], [], []>} : vector<2x128xf32>, vector<128x128xf32>, vector<2x128xf32> -> vector<2x128xf32>
      %c0_41 = arith.constant 0 : index
      %c0_42 = arith.constant 0 : index
      %49 = vector.load %arg12[%c0_41, %c0_42] : memref<1x128xf32, #tpu.memory_space<vmem>>, vector<1x128xf32>
      %50 = vector.broadcast %49 : vector<1x128xf32> to vector<2x128xf32>
      %51 = arith.addf %48, %50 : vector<2x128xf32>
      %c0_43 = arith.constant 0 : index
      %c0_44 = arith.constant 0 : index
      %52 = vector.load %arg13[%c0_43, %c0_44] : memref<128x128xf32, #tpu.memory_space<vmem>>, vector<128x128xf32>
      %cst_45 = arith.constant dense<0.000000e+00> : vector<2x128xf32>
      %53 = tpu.matmul %51, %52, %cst_45 {dimension_numbers = #tpu.dot_dimension_numbers<[1], [0], [0], [1], [0, 0, 1, 1], [], []>} : vector<2x128xf32>, vector<128x128xf32>, vector<2x128xf32> -> vector<2x128xf32>
      %c0_46 = arith.constant 0 : index
      %c0_47 = arith.constant 0 : index
      %54 = vector.load %arg14[%c0_46, %c0_47] : memref<128x128xf32, #tpu.memory_space<vmem>>, vector<128x128xf32>
      %cst_48 = arith.constant dense<0.000000e+00> : vector<2x128xf32>
      %55 = tpu.matmul %38, %54, %cst_48 {dimension_numbers = #tpu.dot_dimension_numbers<[1], [0], [0], [1], [0, 0, 1, 1], [], []>} : vector<2x128xf32>, vector<128x128xf32>, vector<2x128xf32> -> vector<2x128xf32>
      %56 = arith.addf %53, %55 : vector<2x128xf32>
      %c0_49 = arith.constant 0 : index
      %c0_50 = arith.constant 0 : index
      %57 = vector.load %arg15[%c0_49, %c0_50] : memref<1x128xf32, #tpu.memory_space<vmem>>, vector<1x128xf32>
      %58 = vector.broadcast %57 : vector<1x128xf32> to vector<2x128xf32>
      %59 = arith.addf %56, %58 : vector<2x128xf32>
      %cst_51 = arith.constant 0.000000e+00 : f32
      %60 = vector.broadcast %cst_51 : f32 to vector<2x128xf32>
      %61 = arith.maximumf %59, %60 : vector<2x128xf32>
      %c0_52 = arith.constant 0 : index
      %c0_53 = arith.constant 0 : index
      %62 = vector.load %arg16[%c0_52, %c0_53] : memref<128x2xf32, #tpu.memory_space<vmem>>, vector<128x2xf32>
      %cst_54 = arith.constant dense<0.000000e+00> : vector<2x2xf32>
      %63 = tpu.matmul %61, %62, %cst_54 {dimension_numbers = #tpu.dot_dimension_numbers<[1], [0], [0], [1], [0, 0, 1, 1], [], []>} : vector<2x128xf32>, vector<128x2xf32>, vector<2x2xf32> -> vector<2x2xf32>
      %c0_55 = arith.constant 0 : index
      %c0_56 = arith.constant 0 : index
      %64 = vector.load %arg17[%c0_55, %c0_56] : memref<1x2xf32, #tpu.memory_space<vmem>>, vector<1x2xf32>
      %65 = vector.broadcast %64 : vector<1x2xf32> to vector<2x2xf32>
      %66 = arith.addf %63, %65 : vector<2x2xf32>
      %c0_57 = arith.constant 0 : index
      %c0_58 = arith.constant 0 : index
      %67 = vector.load %arg18[%c0_57, %c0_58] : memref<128x128xf32, #tpu.memory_space<vmem>>, vector<128x128xf32>
      %cst_59 = arith.constant dense<0.000000e+00> : vector<2x128xf32>
      %68 = tpu.matmul %61, %67, %cst_59 {dimension_numbers = #tpu.dot_dimension_numbers<[1], [0], [0], [1], [0, 0, 1, 1], [], []>} : vector<2x128xf32>, vector<128x128xf32>, vector<2x128xf32> -> vector<2x128xf32>
      %c0_60 = arith.constant 0 : index
      %c0_61 = arith.constant 0 : index
      %69 = vector.load %arg19[%c0_60, %c0_61] : memref<1x128xf32, #tpu.memory_space<vmem>>, vector<1x128xf32>
      %70 = vector.broadcast %69 : vector<1x128xf32> to vector<2x128xf32>
      %71 = arith.addf %68, %70 : vector<2x128xf32>
      %cst_62 = arith.constant 0.000000e+00 : f32
      %72 = vector.broadcast %cst_62 : f32 to vector<2x128xf32>
      %73 = arith.maximumf %71, %72 : vector<2x128xf32>
      %c0_63 = arith.constant 0 : index
      %c0_64 = arith.constant 0 : index
      %74 = vector.load %arg20[%c0_63, %c0_64] : memref<1x128xf32, #tpu.memory_space<vmem>>, vector<1x128xf32>
      %75 = vector.broadcast %74 : vector<1x128xf32> to vector<2x128xf32>
      %76 = arith.mulf %73, %75 : vector<2x128xf32>
      %cst_65 = arith.constant dense<0.000000e+00> : vector<2xf32>
      %77 = vector.multi_reduction <add>, %76, %cst_65 [1] : vector<2x128xf32> to vector<2xf32>
      %78 = vector.shape_cast %77 : vector<2xf32> to vector<2x1xf32>
      %c0_66 = arith.constant 0 : index
      %79 = memref.load %arg21[%c0_66] : memref<1xf32, #tpu.memory_space<smem>>
      %80 = vector.broadcast %79 : f32 to vector<2x1xf32>
      %81 = arith.addf %78, %80 : vector<2x1xf32>
      %82 = arith.negf %81 : vector<2x1xf32>
      %83 = math.exp %82 : vector<2x1xf32>
      %cst_67 = arith.constant 1.000000e+00 : f32
      %84 = vector.broadcast %cst_67 : f32 to vector<2x1xf32>
      %85 = arith.addf %84, %83 : vector<2x1xf32>
      %86 = arith.divf %84, %85 : vector<2x1xf32>
      %87 = vector.broadcast %86 : vector<2x1xf32> to vector<2x2xf32>
      %88 = arith.mulf %66, %87 : vector<2x2xf32>
      %89 = vector.shape_cast %86 : vector<2x1xf32> to vector<1x2x1xf32>
      %cst_68 = arith.constant dense<0.000000e+00> : vector<1xf32>
      %90 = vector.multi_reduction <add>, %89, %cst_68 [1, 2] : vector<1x2x1xf32> to vector<1xf32>
      %91 = vector.shape_cast %90 : vector<1xf32> to vector<1x1x1xf32>
      %92 = vector.extract %91[0, 0, 0] : f32 from vector<1x1x1xf32>
      %cst_69 = arith.constant 9.99999974E-6 : f32
      %93 = arith.addf %cst_69, %92 : f32
      %94 = vector.broadcast %93 : f32 to vector<2x2xf32>
      %95 = arith.divf %88, %94 : vector<2x2xf32>
      %cst_70 = arith.constant dense<0.000000e+00> : vector<2xf32>
      %96 = vector.multi_reduction <add>, %95, %cst_70 [0] : vector<2x2xf32> to vector<2xf32>
      %97 = vector.shape_cast %96 : vector<2xf32> to vector<1x2xf32>
      %c0_71 = arith.constant 0 : index
      %c0_72 = arith.constant 0 : index
      %98 = vector.load %arg22[%c0_71, %c0_72] : memref<1x2xf32, #tpu.memory_space<vmem>>, vector<1x2xf32>
      tpu.vector_store %arg22[%c0_71, %c0_72], %97 {strides = array<i32>} : memref<1x2xf32, #tpu.memory_space<vmem>>, vector<1x2xf32>,
    } else {
    }
    return
  }
  func.func @transform_0(%arg0: i32) -> (i32, i32) {
    %c0_i32 = arith.constant 0 : i32
    %c0_i32_0 = arith.constant 0 : i32
    %c0_i32_1 = arith.constant 0 : i32
    return %c0_i32, %c0_i32_0 : i32, i32
  }
  func.func @transform_1(%arg0: i32) -> (i32, i32, i32) {
    %c0_i32 = arith.constant 0 : i32
    %c0_i32_0 = arith.constant 0 : i32
    %c0_i32_1 = arith.constant 0 : i32
    return %c0_i32, %arg0, %c0_i32_0 : i32, i32, i32
  }
  func.func @transform_2(%arg0: i32) -> (i32, i32) {
    %c0_i32 = arith.constant 0 : i32
    %c0_i32_0 = arith.constant 0 : i32
    %c0_i32_1 = arith.constant 0 : i32
    return %c0_i32, %c0_i32_0 : i32, i32
  }
  func.func @transform_3(%arg0: i32) -> (i32, i32) {
    %c0_i32 = arith.constant 0 : i32
    %c0_i32_0 = arith.constant 0 : i32
    %c0_i32_1 = arith.constant 0 : i32
    return %c0_i32, %c0_i32_0 : i32, i32
  }
  func.func @transform_4(%arg0: i32) -> (i32, i32) {
    %c0_i32 = arith.constant 0 : i32
    %c0_i32_0 = arith.constant 0 : i32
    %c0_i32_1 = arith.constant 0 : i32
    return %c0_i32, %c0_i32_0 : i32, i32
  }
  func.func @transform_5(%arg0: i32) -> (i32, i32) {
    %c0_i32 = arith.constant 0 : i32
    %c0_i32_0 = arith.constant 0 : i32
    %c0_i32_1 = arith.constant 0 : i32
    return %c0_i32, %c0_i32_0 : i32, i32
  }
  func.func @transform_6(%arg0: i32) -> (i32, i32) {
    %c0_i32 = arith.constant 0 : i32
    %c0_i32_0 = arith.constant 0 : i32
    %c0_i32_1 = arith.constant 0 : i32
    return %c0_i32, %c0_i32_0 : i32, i32
  }
  func.func @transform_7(%arg0: i32) -> (i32, i32) {
    %c0_i32 = arith.constant 0 : i32
    %c0_i32_0 = arith.constant 0 : i32
    %c0_i32_1 = arith.constant 0 : i32
    return %c0_i32, %c0_i32_0 : i32, i32
  }
  func.func @transform_8(%arg0: i32) -> (i32, i32) {
    %c0_i32 = arith.constant 0 : i32
    %c0_i32_0 = arith.constant 0 : i32
    %c0_i32_1 = arith.constant 0 : i32
    return %c0_i32, %c0_i32_0 : i32, i32
  }
  func.func @transform_9(%arg0: i32) -> (i32, i32) {
    %c0_i32 = arith.constant 0 : i32
    %c0_i32_0 = arith.constant 0 : i32
    %c0_i32_1 = arith.constant 0 : i32
    return %c0_i32, %c0_i32_0 : i32, i32
  }
  func.func @transform_10(%arg0: i32) -> (i32, i32) {
    %c0_i32 = arith.constant 0 : i32
    %c0_i32_0 = arith.constant 0 : i32
    %c0_i32_1 = arith.constant 0 : i32
    return %c0_i32, %c0_i32_0 : i32, i32
  }
  func.func @transform_11(%arg0: i32) -> (i32, i32) {
    %c0_i32 = arith.constant 0 : i32
    %c0_i32_0 = arith.constant 0 : i32
    %c0_i32_1 = arith.constant 0 : i32
    return %c0_i32, %c0_i32_0 : i32, i32
  }
  func.func @transform_12(%arg0: i32) -> (i32, i32) {
    %c0_i32 = arith.constant 0 : i32
    %c0_i32_0 = arith.constant 0 : i32
    %c0_i32_1 = arith.constant 0 : i32
    return %c0_i32, %c0_i32_0 : i32, i32
  }
  func.func @transform_13(%arg0: i32) -> (i32, i32) {
    %c0_i32 = arith.constant 0 : i32
    %c0_i32_0 = arith.constant 0 : i32
    %c0_i32_1 = arith.constant 0 : i32
    return %c0_i32, %c0_i32_0 : i32, i32
  }
  func.func @transform_14(%arg0: i32) -> (i32, i32) {
    %c0_i32 = arith.constant 0 : i32
    %c0_i32_0 = arith.constant 0 : i32
    %c0_i32_1 = arith.constant 0 : i32
    return %c0_i32, %c0_i32_0 : i32, i32
  }
  func.func @transform_15(%arg0: i32) -> (i32, i32) {
    %c0_i32 = arith.constant 0 : i32
    %c0_i32_0 = arith.constant 0 : i32
    %c0_i32_1 = arith.constant 0 : i32
    return %c0_i32, %c0_i32_0 : i32, i32
  }
  func.func @transform_16(%arg0: i32) -> (i32, i32) {
    %c0_i32 = arith.constant 0 : i32
    %c0_i32_0 = arith.constant 0 : i32
    %c0_i32_1 = arith.constant 0 : i32
    return %c0_i32, %c0_i32_0 : i32, i32
  }
  func.func @transform_17(%arg0: i32) -> (i32, i32) {
    %c0_i32 = arith.constant 0 : i32
    %c0_i32_0 = arith.constant 0 : i32
    %c0_i32_1 = arith.constant 0 : i32
    return %c0_i32, %c0_i32_0 : i32, i32
  }
  func.func @transform_18(%arg0: i32) -> (i32, i32) {
    %c0_i32 = arith.constant 0 : i32
    %c0_i32_0 = arith.constant 0 : i32
    %c0_i32_1 = arith.constant 0 : i32
    return %c0_i32, %c0_i32_0 : i32, i32
  }
  func.func @transform_19(%arg0: i32) -> (i32, i32) {
    %c0_i32 = arith.constant 0 : i32
    %c0_i32_0 = arith.constant 0 : i32
    %c0_i32_1 = arith.constant 0 : i32
    return %c0_i32, %c0_i32_0 : i32, i32
  }
  func.func @transform_20(%arg0: i32) -> i32 {
    %c0_i32 = arith.constant 0 : i32
    %c0_i32_0 = arith.constant 0 : i32
    return %c0_i32 : i32
  }
  func.func @transform_21(%arg0: i32) -> (i32, i32) {
    %c0_i32 = arith.constant 0 : i32
    %c0_i32_0 = arith.constant 0 : i32
    %c0_i32_1 = arith.constant 0 : i32
    return %c0_i32, %c0_i32_0 : i32, i32
  }
}

</mosaic_0001>

<bundles_post_ra>
// kernel: encoder_forward.1
= control target key start
LH: loop header
LB: loop body
LE: loop exit
PB: predicated region body
PF: predicated region fallthrough
CT: control target
= control target key end

     0   :  { %s5252_s0 = inlined_call_operand.vmem [shape: f32[2,16], index: 0, kind: input, shape index: {}]   ;;  %s5253_s1 = inlined_call_operand.vmem [shape: f32[2,1024,3], index: 1, kind: input, shape index: {}]   ;;  %s5254_s2 = inlined_call_operand.vmem [shape: f32[3,128], index: 2, kind: input, shape index: {}]   ;;  %s5255_s3 = inlined_call_operand.vmem [shape: f32[1,128], index: 3, kind: input, shape index: {}]   ;;  %s5256_s4 = inlined_call_operand.vmem [shape: bf16[128,128], index: 4, kind: input, shape index: {}]   ;;  %s5257_s5 = inlined_call_operand.vmem [shape: f32[1,128], index: 5, kind: input, shape index: {}]   ;;  %s5258_s6 = inlined_call_operand.vmem [shape: bf16[128,128], index: 6, kind: input, shape index: {}]   ;;  %s5259_s7 = inlined_call_operand.vmem [shape: f32[1,128], index: 7, kind: input, shape index: {}]   ;;  %s5260_s8 = inlined_call_operand.vmem [shape: f32[16,128], index: 8, kind: input, shape index: {}]   ;;  %s5261_s9 = inlined_call_operand.vmem [shape: f32[1,128], index: 9, kind: input, shape index: {}]   ;;  %s5262_s10 = inlined_call_operand.vmem [shape: f32[128,128], index: 10, kind: input, shape index: {}]   ;;  %s5263_s11 = inlined_call_operand.vmem [shape: f32[1,128], index: 11, kind: input, shape index: {}]   ;;  %s5264_s12 = inlined_call_operand.vmem [shape: f32[128,128], index: 12, kind: input, shape index: {}]   ;;  %s5265_s13 = inlined_call_operand.vmem [shape: f32[128,128], index: 13, kind: input, shape index: {}]   ;;  %s5266_s14 = inlined_call_operand.vmem [shape: f32[1,128], index: 14, kind: input, shape index: {}]   ;;  %s5267_s15 = inlined_call_operand.vmem [shape: f32[128,2], index: 15, kind: input, shape index: {}]   ;;  %s5268_s16 = inlined_call_operand.vmem [shape: f32[1,2], index: 16, kind: input, shape index: {}]   ;;  %s5269_s17 = inlined_call_operand.vmem [shape: f32[128,128], index: 17, kind: input, shape index: {}]   ;;  %s5270_s18 = inlined_call_operand.vmem [shape: f32[1,128], index: 18, kind: input, shape index: {}]   ;;  %s5271_s19 = inlined_call_operand.vmem [shape: f32[1,128], index: 19, kind: input, shape index: {}]   ;;  %s5272_s20 = inlined_call_operand.<no memory space> [shape: f32[1], index: 20, kind: input, shape index: {}]   ;;  %s5273_s21 = inlined_call_operand.hbm [shape: f32[1,2], index: 21, kind: output, shape index: {}]  }
   0x1   :  { %5279 = sst [smem:[#allocation9_spill]] %s5252_s0 }
   0x2   :  { %5280 = sst [smem:[#allocation10_spill]] %s5253_s1 }
   0x3   :  { %5281 = sst [smem:[#allocation11_spill]] %s5254_s2 }
   0x4   :  { %5282 = sst [smem:[#allocation12_spill]] %s5255_s3 }
   0x5   :  { %5283 = sst [smem:[#allocation13_spill]] %s5256_s4 }
   0x6   :  { %5284 = sst [smem:[#allocation14_spill]] %s5257_s5 }
   0x7   :  { %26 = sst [smem:[#allocation4]] %s5272_s20 }
   0x8   :  { %27 = vsyncpa [#allocation7], 0  ;;  %s3899_s26 = smov 0   ;;  %s3901_s27 = smov 0  }
   0x9   :  { %s3903_s3 = smov 0  }
   0xa LB: > { %s3915_s20 = sadd.s32 4294967295, %s3782_s3   ;;  %s3918_s28 = sadd.s32 1, %s3782_s3   ;;  %s3782_s3 = sphi %s3903_s3, %s5294_s3   ;;  %s3778_s27 = sphi %s3901_s27, %s5293_s27   ;;  %s3774_s26 = sphi %s3899_s26, %s5292_s26  }
   0xb   : > { %s58_s29 = ssub.s32 %s3782_s3, %s3918_s28  ;;  %s61_s0 = sadd.s32 1, %s3778_s27 }
   0xc   : > { %p59_p0 = scmp.eq.s32.totalorder %s58_s29, 0  ;;  %p68_p1 = scmp.ne.s32.totalorder %s3778_s27, %s3774_s26 }
   0xd   : > { %p69_p2 = scmp.eq.s32.totalorder %s3782_s3, 0  ;;  %p3434_p4 = scmp.ge.s32.totalorder %s3782_s3, 2 }
   0xe   : > { %s3927_s4 = scalar_select %p59_p0, %s3778_s27, %s61_s0  }
   0xf   : > { %p70_p3 = por %p69_p2, %p68_p1  ;;  %574 = sbr.rel (%p3434_p4) target bundleno = 158 (0x9e), region = 96 }
  0x14   : > { %577 = sbr.rel (!%p70_p3) target bundleno = 158 (0x9e), region = 100  ;;  %s579_s30 = sand.u32 (%p70_p3), 1, %s3778_s27  }
  0x15   : > { %s3641_s5 = sshll.u32 (%p70_p3), %s3782_s3, 9  ;;  %s3435_s22 = sshll.u32 (%p70_p3), %s579_s30, 10 }
  0x16   : > { %s5285_s24 = sld [smem:[#allocation10_spill]] (%p70_p3)  ;;  %s3940_s25 = scalar_lea.vmem (%p70_p3), [#allocation5], %s3435_s22 }
  0x1c   : > { %s3935_s2 = scalar_lea.vmem %s5285_s24, %s3641_s5 }
  0x1d   : > { %v867_v0 = vld [vmem:[%s3935_s2] sm:$0xff]  ;;  %v869_v1 = vld [vmem:[%s3935_s2 + $0x8] sm:$0xff]  ;;  %v871_v2 = vld [vmem:[%s3935_s2 + $0x10] sm:$0xff] }
  0x1e   : > { %868 = vst [vmem:[%s3940_s25] sm:$0xff] %v867_v0  ;;  %v873_v3 = vld [vmem:[%s3935_s2 + $0x18] sm:$0xff]  ;;  %v875_v4 = vld [vmem:[%s3935_s2 + $0x20] sm:$0xff]  ;;  %v877_v5 = vld [vmem:[%s3935_s2 + $0x28] sm:$0xff] }
  0x1f   : > { %870 = vst [vmem:[%s3940_s25 + $0x8] sm:$0xff] %v869_v1  ;;  %v879_v6 = vld [vmem:[%s3935_s2 + $0x30] sm:$0xff]  ;;  %v881_v7 = vld [vmem:[%s3935_s2 + $0x38] sm:$0xff]  ;;  %v883_v8 = vld [vmem:[%s3935_s2 + $0x40] sm:$0xff] }
  0x20   : > { %872 = vst [vmem:[%s3940_s25 + $0x10] sm:$0xff] %v871_v2  ;;  %v885_v9 = vld [vmem:[%s3935_s2 + $0x48] sm:$0xff]  ;;  %v887_v10 = vld [vmem:[%s3935_s2 + $0x50] sm:$0xff]  ;;  %v889_v11 = vld [vmem:[%s3935_s2 + $0x58] sm:$0xff] }
  0x21   : > { %874 = vst [vmem:[%s3940_s25 + $0x18] sm:$0xff] %v873_v3  ;;  %v891_v12 = vld [vmem:[%s3935_s2 + $0x60] sm:$0xff]  ;;  %v893_v13 = vld [vmem:[%s3935_s2 + $0x68] sm:$0xff]  ;;  %v895_v14 = vld [vmem:[%s3935_s2 + $0x70] sm:$0xff] }
  0x22   : > { %876 = vst [vmem:[%s3940_s25 + $0x20] sm:$0xff] %v875_v4  ;;  %v897_v15 = vld [vmem:[%s3935_s2 + $0x78] sm:$0xff]  ;;  %v899_v16 = vld [vmem:[%s3935_s2 + $0x80] sm:$0xff]  ;;  %v901_v17 = vld [vmem:[%s3935_s2 + $0x88] sm:$0xff] }
  0x23   : > { %878 = vst [vmem:[%s3940_s25 + $0x28] sm:$0xff] %v877_v5  ;;  %v903_v18 = vld [vmem:[%s3935_s2 + $0x90] sm:$0xff]  ;;  %v905_v19 = vld [vmem:[%s3935_s2 + $0x98] sm:$0xff]  ;;  %v907_v20 = vld [vmem:[%s3935_s2 + $0xa0] sm:$0xff] }
  0x24   : > { %880 = vst [vmem:[%s3940_s25 + $0x30] sm:$0xff] %v879_v6  ;;  %v909_v21 = vld [vmem:[%s3935_s2 + $0xa8] sm:$0xff]  ;;  %v911_v22 = vld [vmem:[%s3935_s2 + $0xb0] sm:$0xff]  ;;  %v913_v23 = vld [vmem:[%s3935_s2 + $0xb8] sm:$0xff] }
  0x25   : > { %882 = vst [vmem:[%s3940_s25 + $0x38] sm:$0xff] %v881_v7  ;;  %v915_v24 = vld [vmem:[%s3935_s2 + $0xc0] sm:$0xff]  ;;  %v917_v25 = vld [vmem:[%s3935_s2 + $0xc8] sm:$0xff]  ;;  %v919_v26 = vld [vmem:[%s3935_s2 + $0xd0] sm:$0xff] }
  0x26   : > { %884 = vst [vmem:[%s3940_s25 + $0x40] sm:$0xff] %v883_v8  ;;  %v921_v27 = vld [vmem:[%s3935_s2 + $0xd8] sm:$0xff]  ;;  %v923_v28 = vld [vmem:[%s3935_s2 + $0xe0] sm:$0xff]  ;;  %v925_v29 = vld [vmem:[%s3935_s2 + $0xe8] sm:$0xff] }
  0x27   : > { %886 = vst [vmem:[%s3940_s25 + $0x48] sm:$0xff] %v885_v9  ;;  %v927_v30 = vld [vmem:[%s3935_s2 + $0xf0] sm:$0xff]  ;;  %v929_v31 = vld [vmem:[%s3935_s2 + $0xf8] sm:$0xff]  ;;  %v931_v32 = vld [vmem:[%s3935_s2 + $0x100] sm:$0xff] }
  0x28   : > { %888 = vst [vmem:[%s3940_s25 + $0x50] sm:$0xff] %v887_v10  ;;  %v933_v33 = vld [vmem:[%s3935_s2 + $0x108] sm:$0xff]  ;;  %v935_v34 = vld [vmem:[%s3935_s2 + $0x110] sm:$0xff]  ;;  %v937_v35 = vld [vmem:[%s3935_s2 + $0x118] sm:$0xff] }
  0x29   : > { %890 = vst [vmem:[%s3940_s25 + $0x58] sm:$0xff] %v889_v11  ;;  %v939_v36 = vld [vmem:[%s3935_s2 + $0x120] sm:$0xff]  ;;  %v941_v37 = vld [vmem:[%s3935_s2 + $0x128] sm:$0xff]  ;;  %v943_v38 = vld [vmem:[%s3935_s2 + $0x130] sm:$0xff] }
  0x2a   : > { %892 = vst [vmem:[%s3940_s25 + $0x60] sm:$0xff] %v891_v12  ;;  %v945_v39 = vld [vmem:[%s3935_s2 + $0x138] sm:$0xff]  ;;  %v947_v40 = vld [vmem:[%s3935_s2 + $0x140] sm:$0xff]  ;;  %v949_v41 = vld [vmem:[%s3935_s2 + $0x148] sm:$0xff] }
  0x2b   : > { %894 = vst [vmem:[%s3940_s25 + $0x68] sm:$0xff] %v893_v13  ;;  %v951_v42 = vld [vmem:[%s3935_s2 + $0x150] sm:$0xff]  ;;  %v953_v43 = vld [vmem:[%s3935_s2 + $0x158] sm:$0xff]  ;;  %v955_v44 = vld [vmem:[%s3935_s2 + $0x160] sm:$0xff] }
  0x2c   : > { %896 = vst [vmem:[%s3940_s25 + $0x70] sm:$0xff] %v895_v14  ;;  %v957_v45 = vld [vmem:[%s3935_s2 + $0x168] sm:$0xff]  ;;  %v959_v46 = vld [vmem:[%s3935_s2 + $0x170] sm:$0xff]  ;;  %v961_v47 = vld [vmem:[%s3935_s2 + $0x178] sm:$0xff] }
  0x2d   : > { %898 = vst [vmem:[%s3940_s25 + $0x78] sm:$0xff] %v897_v15  ;;  %v963_v48 = vld [vmem:[%s3935_s2 + $0x180] sm:$0xff]  ;;  %v965_v49 = vld [vmem:[%s3935_s2 + $0x188] sm:$0xff]  ;;  %v967_v50 = vld [vmem:[%s3935_s2 + $0x190] sm:$0xff] }
  0x2e   : > { %900 = vst [vmem:[%s3940_s25 + $0x80] sm:$0xff] %v899_v16  ;;  %v969_v51 = vld [vmem:[%s3935_s2 + $0x198] sm:$0xff]  ;;  %v971_v52 = vld [vmem:[%s3935_s2 + $0x1a0] sm:$0xff]  ;;  %v973_v53 = vld [vmem:[%s3935_s2 + $0x1a8] sm:$0xff] }
  0x2f   : > { %902 = vst [vmem:[%s3940_s25 + $0x88] sm:$0xff] %v901_v17  ;;  %v975_v54 = vld [vmem:[%s3935_s2 + $0x1b0] sm:$0xff]  ;;  %v977_v55 = vld [vmem:[%s3935_s2 + $0x1b8] sm:$0xff]  ;;  %v979_v56 = vld [vmem:[%s3935_s2 + $0x1c0] sm:$0xff] }
  0x30   : > { %904 = vst [vmem:[%s3940_s25 + $0x90] sm:$0xff] %v903_v18  ;;  %v981_v57 = vld [vmem:[%s3935_s2 + $0x1c8] sm:$0xff]  ;;  %v983_v58 = vld [vmem:[%s3935_s2 + $0x1d0] sm:$0xff]  ;;  %v985_v59 = vld [vmem:[%s3935_s2 + $0x1d8] sm:$0xff] }
  0x31   : > { %906 = vst [vmem:[%s3940_s25 + $0x98] sm:$0xff] %v905_v19  ;;  %v987_v60 = vld [vmem:[%s3935_s2 + $0x1e0] sm:$0xff]  ;;  %v989_v61 = vld [vmem:[%s3935_s2 + $0x1e8] sm:$0xff]  ;;  %v991_v62 = vld [vmem:[%s3935_s2 + $0x1f0] sm:$0xff] }
  0x32   : > { %908 = vst [vmem:[%s3940_s25 + $0xa0] sm:$0xff] %v907_v20  ;;  %v993_v63 = vld [vmem:[%s3935_s2 + $0x1f8] sm:$0xff]  ;;  %v995_v0 = vld [vmem:[%s3935_s2 + $0x400] sm:$0xff]  ;;  %v997_v1 = vld [vmem:[%s3935_s2 + $0x408] sm:$0xff] }
  0x33   : > { %910 = vst [vmem:[%s3940_s25 + $0xa8] sm:$0xff] %v909_v21  ;;  %v999_v2 = vld [vmem:[%s3935_s2 + $0x410] sm:$0xff]  ;;  %v1001_v3 = vld [vmem:[%s3935_s2 + $0x418] sm:$0xff]  ;;  %v1003_v4 = vld [vmem:[%s3935_s2 + $0x420] sm:$0xff] }
  0x34   : > { %912 = vst [vmem:[%s3940_s25 + $0xb0] sm:$0xff] %v911_v22  ;;  %v1005_v5 = vld [vmem:[%s3935_s2 + $0x428] sm:$0xff]  ;;  %v1007_v6 = vld [vmem:[%s3935_s2 + $0x430] sm:$0xff]  ;;  %v1009_v7 = vld [vmem:[%s3935_s2 + $0x438] sm:$0xff] }
  0x35   : > { %914 = vst [vmem:[%s3940_s25 + $0xb8] sm:$0xff] %v913_v23  ;;  %v1011_v8 = vld [vmem:[%s3935_s2 + $0x440] sm:$0xff]  ;;  %v1013_v9 = vld [vmem:[%s3935_s2 + $0x448] sm:$0xff]  ;;  %v1015_v10 = vld [vmem:[%s3935_s2 + $0x450] sm:$0xff] }
  0x36   : > { %916 = vst [vmem:[%s3940_s25 + $0xc0] sm:$0xff] %v915_v24  ;;  %v1017_v11 = vld [vmem:[%s3935_s2 + $0x458] sm:$0xff]  ;;  %v1019_v12 = vld [vmem:[%s3935_s2 + $0x460] sm:$0xff]  ;;  %v1021_v13 = vld [vmem:[%s3935_s2 + $0x468] sm:$0xff] }
  0x37   : > { %918 = vst [vmem:[%s3940_s25 + $0xc8] sm:$0xff] %v917_v25  ;;  %v1023_v14 = vld [vmem:[%s3935_s2 + $0x470] sm:$0xff]  ;;  %v1025_v15 = vld [vmem:[%s3935_s2 + $0x478] sm:$0xff]  ;;  %v1027_v16 = vld [vmem:[%s3935_s2 + $0x480] sm:$0xff] }
  0x38   : > { %920 = vst [vmem:[%s3940_s25 + $0xd0] sm:$0xff] %v919_v26  ;;  %v1029_v17 = vld [vmem:[%s3935_s2 + $0x488] sm:$0xff]  ;;  %v1031_v18 = vld [vmem:[%s3935_s2 + $0x490] sm:$0xff]  ;;  %v1033_v19 = vld [vmem:[%s3935_s2 + $0x498] sm:$0xff] }
  0x39   : > { %922 = vst [vmem:[%s3940_s25 + $0xd8] sm:$0xff] %v921_v27  ;;  %v1035_v20 = vld [vmem:[%s3935_s2 + $0x4a0] sm:$0xff]  ;;  %v1037_v21 = vld [vmem:[%s3935_s2 + $0x4a8] sm:$0xff]  ;;  %v1039_v22 = vld [vmem:[%s3935_s2 + $0x4b0] sm:$0xff] }
  0x3a   : > { %924 = vst [vmem:[%s3940_s25 + $0xe0] sm:$0xff] %v923_v28  ;;  %v1041_v23 = vld [vmem:[%s3935_s2 + $0x4b8] sm:$0xff]  ;;  %v1043_v24 = vld [vmem:[%s3935_s2 + $0x4c0] sm:$0xff]  ;;  %v1045_v25 = vld [vmem:[%s3935_s2 + $0x4c8] sm:$0xff] }
  0x3b   : > { %926 = vst [vmem:[%s3940_s25 + $0xe8] sm:$0xff] %v925_v29  ;;  %v1047_v26 = vld [vmem:[%s3935_s2 + $0x4d0] sm:$0xff]  ;;  %v1049_v27 = vld [vmem:[%s3935_s2 + $0x4d8] sm:$0xff]  ;;  %v1051_v28 = vld [vmem:[%s3935_s2 + $0x4e0] sm:$0xff] }
  0x3c   : > { %928 = vst [vmem:[%s3940_s25 + $0xf0] sm:$0xff] %v927_v30  ;;  %v1053_v29 = vld [vmem:[%s3935_s2 + $0x4e8] sm:$0xff]  ;;  %v1055_v30 = vld [vmem:[%s3935_s2 + $0x4f0] sm:$0xff] }
  0x3d   : > { %930 = vst [vmem:[%s3940_s25 + $0xf8] sm:$0xff] %v929_v31  ;;  %v1057_v31 = vld [vmem:[%s3935_s2 + $0x4f8] sm:$0xff] }
  0x3e   : > { %932 = vst [vmem:[%s3940_s25 + $0x100] sm:$0xff] %v931_v32  ;;  %v1059_v32 = vld [vmem:[%s3935_s2 + $0x500] sm:$0xff] }
  0x3f   : > { %934 = vst [vmem:[%s3940_s25 + $0x108] sm:$0xff] %v933_v33  ;;  %v1061_v33 = vld [vmem:[%s3935_s2 + $0x508] sm:$0xff] }
  0x40   : > { %936 = vst [vmem:[%s3940_s25 + $0x110] sm:$0xff] %v935_v34  ;;  %v1063_v34 = vld [vmem:[%s3935_s2 + $0x510] sm:$0xff] }
  0x41   : > { %938 = vst [vmem:[%s3940_s25 + $0x118] sm:$0xff] %v937_v35  ;;  %v1065_v35 = vld [vmem:[%s3935_s2 + $0x518] sm:$0xff] }
  0x42   : > { %940 = vst [vmem:[%s3940_s25 + $0x120] sm:$0xff] %v939_v36  ;;  %v1067_v36 = vld [vmem:[%s3935_s2 + $0x520] sm:$0xff] }
  0x43   : > { %942 = vst [vmem:[%s3940_s25 + $0x128] sm:$0xff] %v941_v37  ;;  %v1069_v37 = vld [vmem:[%s3935_s2 + $0x528] sm:$0xff] }
  0x44   : > { %944 = vst [vmem:[%s3940_s25 + $0x130] sm:$0xff] %v943_v38  ;;  %v1071_v38 = vld [vmem:[%s3935_s2 + $0x530] sm:$0xff] }
  0x45   : > { %946 = vst [vmem:[%s3940_s25 + $0x138] sm:$0xff] %v945_v39  ;;  %v1073_v39 = vld [vmem:[%s3935_s2 + $0x538] sm:$0xff] }
  0x46   : > { %948 = vst [vmem:[%s3940_s25 + $0x140] sm:$0xff] %v947_v40  ;;  %v1075_v40 = vld [vmem:[%s3935_s2 + $0x540] sm:$0xff] }
  0x47   : > { %950 = vst [vmem:[%s3940_s25 + $0x148] sm:$0xff] %v949_v41  ;;  %v1077_v41 = vld [vmem:[%s3935_s2 + $0x548] sm:$0xff] }
  0x48   : > { %952 = vst [vmem:[%s3940_s25 + $0x150] sm:$0xff] %v951_v42  ;;  %v1079_v42 = vld [vmem:[%s3935_s2 + $0x550] sm:$0xff] }
  0x49   : > { %954 = vst [vmem:[%s3940_s25 + $0x158] sm:$0xff] %v953_v43  ;;  %v1081_v43 = vld [vmem:[%s3935_s2 + $0x558] sm:$0xff] }
  0x4a   : > { %956 = vst [vmem:[%s3940_s25 + $0x160] sm:$0xff] %v955_v44  ;;  %v1083_v44 = vld [vmem:[%s3935_s2 + $0x560] sm:$0xff] }
  0x4b   : > { %958 = vst [vmem:[%s3940_s25 + $0x168] sm:$0xff] %v957_v45  ;;  %v1085_v45 = vld [vmem:[%s3935_s2 + $0x568] sm:$0xff] }
  0x4c   : > { %960 = vst [vmem:[%s3940_s25 + $0x170] sm:$0xff] %v959_v46  ;;  %v1087_v46 = vld [vmem:[%s3935_s2 + $0x570] sm:$0xff] }
  0x4d   : > { %962 = vst [vmem:[%s3940_s25 + $0x178] sm:$0xff] %v961_v47  ;;  %v1089_v47 = vld [vmem:[%s3935_s2 + $0x578] sm:$0xff] }
  0x4e   : > { %964 = vst [vmem:[%s3940_s25 + $0x180] sm:$0xff] %v963_v48  ;;  %v1091_v48 = vld [vmem:[%s3935_s2 + $0x580] sm:$0xff] }
  0x4f   : > { %966 = vst [vmem:[%s3940_s25 + $0x188] sm:$0xff] %v965_v49  ;;  %v1093_v49 = vld [vmem:[%s3935_s2 + $0x588] sm:$0xff] }
  0x50   : > { %968 = vst [vmem:[%s3940_s25 + $0x190] sm:$0xff] %v967_v50  ;;  %v1095_v50 = vld [vmem:[%s3935_s2 + $0x590] sm:$0xff] }
  0x51   : > { %970 = vst [vmem:[%s3940_s25 + $0x198] sm:$0xff] %v969_v51  ;;  %v1097_v51 = vld [vmem:[%s3935_s2 + $0x598] sm:$0xff] }
  0x52   : > { %972 = vst [vmem:[%s3940_s25 + $0x1a0] sm:$0xff] %v971_v52  ;;  %v1099_v52 = vld [vmem:[%s3935_s2 + $0x5a0] sm:$0xff] }
  0x53   : > { %974 = vst [vmem:[%s3940_s25 + $0x1a8] sm:$0xff] %v973_v53  ;;  %v1101_v53 = vld [vmem:[%s3935_s2 + $0x5a8] sm:$0xff] }
  0x54   : > { %976 = vst [vmem:[%s3940_s25 + $0x1b0] sm:$0xff] %v975_v54  ;;  %v1103_v54 = vld [vmem:[%s3935_s2 + $0x5b0] sm:$0xff] }
  0x55   : > { %978 = vst [vmem:[%s3940_s25 + $0x1b8] sm:$0xff] %v977_v55  ;;  %v1105_v55 = vld [vmem:[%s3935_s2 + $0x5b8] sm:$0xff] }
  0x56   : > { %980 = vst [vmem:[%s3940_s25 + $0x1c0] sm:$0xff] %v979_v56  ;;  %v1107_v56 = vld [vmem:[%s3935_s2 + $0x5c0] sm:$0xff] }
  0x57   : > { %982 = vst [vmem:[%s3940_s25 + $0x1c8] sm:$0xff] %v981_v57  ;;  %v1109_v57 = vld [vmem:[%s3935_s2 + $0x5c8] sm:$0xff] }
  0x58   : > { %984 = vst [vmem:[%s3940_s25 + $0x1d0] sm:$0xff] %v983_v58  ;;  %v1111_v58 = vld [vmem:[%s3935_s2 + $0x5d0] sm:$0xff] }
  0x59   : > { %986 = vst [vmem:[%s3940_s25 + $0x1d8] sm:$0xff] %v985_v59  ;;  %v1113_v59 = vld [vmem:[%s3935_s2 + $0x5d8] sm:$0xff] }
  0x5a   : > { %988 = vst [vmem:[%s3940_s25 + $0x1e0] sm:$0xff] %v987_v60  ;;  %v1115_v60 = vld [vmem:[%s3935_s2 + $0x5e0] sm:$0xff] }
  0x5b   : > { %990 = vst [vmem:[%s3940_s25 + $0x1e8] sm:$0xff] %v989_v61  ;;  %v1117_v61 = vld [vmem:[%s3935_s2 + $0x5e8] sm:$0xff] }
  0x5c   : > { %992 = vst [vmem:[%s3940_s25 + $0x1f0] sm:$0xff] %v991_v62  ;;  %v1119_v62 = vld [vmem:[%s3935_s2 + $0x5f0] sm:$0xff] }
  0x5d   : > { %994 = vst [vmem:[%s3940_s25 + $0x1f8] sm:$0xff] %v993_v63  ;;  %v1121_v63 = vld [vmem:[%s3935_s2 + $0x5f8] sm:$0xff] }
  0x5e   : > { %996 = vst [vmem:[%s3940_s25 + $0x200] sm:$0xff] %v995_v0 }
  0x5f   : > { %998 = vst [vmem:[%s3940_s25 + $0x208] sm:$0xff] %v997_v1 }
  0x60   : > { %1000 = vst [vmem:[%s3940_s25 + $0x210] sm:$0xff] %v999_v2 }
  0x61   : > { %1002 = vst [vmem:[%s3940_s25 + $0x218] sm:$0xff] %v1001_v3 }
  0x62   : > { %1004 = vst [vmem:[%s3940_s25 + $0x220] sm:$0xff] %v1003_v4 }
  0x63   : > { %1006 = vst [vmem:[%s3940_s25 + $0x228] sm:$0xff] %v1005_v5 }
  0x64   : > { %1008 = vst [vmem:[%s3940_s25 + $0x230] sm:$0xff] %v1007_v6 }
  0x65   : > { %1010 = vst [vmem:[%s3940_s25 + $0x238] sm:$0xff] %v1009_v7 }
  0x66   : > { %1012 = vst [vmem:[%s3940_s25 + $0x240] sm:$0xff] %v1011_v8 }
  0x67   : > { %1014 = vst [vmem:[%s3940_s25 + $0x248] sm:$0xff] %v1013_v9 }
  0x68   : > { %1016 = vst [vmem:[%s3940_s25 + $0x250] sm:$0xff] %v1015_v10 }
  0x69   : > { %1018 = vst [vmem:[%s3940_s25 + $0x258] sm:$0xff] %v1017_v11 }
  0x6a   : > { %1020 = vst [vmem:[%s3940_s25 + $0x260] sm:$0xff] %v1019_v12 }
  0x6b   : > { %1022 = vst [vmem:[%s3940_s25 + $0x268] sm:$0xff] %v1021_v13 }
  0x6c   : > { %1024 = vst [vmem:[%s3940_s25 + $0x270] sm:$0xff] %v1023_v14 }
  0x6d   : > { %1026 = vst [vmem:[%s3940_s25 + $0x278] sm:$0xff] %v1025_v15 }
  0x6e   : > { %1028 = vst [vmem:[%s3940_s25 + $0x280] sm:$0xff] %v1027_v16 }
  0x6f   : > { %1030 = vst [vmem:[%s3940_s25 + $0x288] sm:$0xff] %v1029_v17 }
  0x70   : > { %1032 = vst [vmem:[%s3940_s25 + $0x290] sm:$0xff] %v1031_v18 }
  0x71   : > { %1034 = vst [vmem:[%s3940_s25 + $0x298] sm:$0xff] %v1033_v19 }
  0x72   : > { %1036 = vst [vmem:[%s3940_s25 + $0x2a0] sm:$0xff] %v1035_v20 }
  0x73   : > { %1038 = vst [vmem:[%s3940_s25 + $0x2a8] sm:$0xff] %v1037_v21 }
  0x74   : > { %1040 = vst [vmem:[%s3940_s25 + $0x2b0] sm:$0xff] %v1039_v22 }
  0x75   : > { %1042 = vst [vmem:[%s3940_s25 + $0x2b8] sm:$0xff] %v1041_v23 }
  0x76   : > { %1044 = vst [vmem:[%s3940_s25 + $0x2c0] sm:$0xff] %v1043_v24 }
  0x77   : > { %1046 = vst [vmem:[%s3940_s25 + $0x2c8] sm:$0xff] %v1045_v25 }
  0x78   : > { %1048 = vst [vmem:[%s3940_s25 + $0x2d0] sm:$0xff] %v1047_v26 }
  0x79   : > { %1050 = vst [vmem:[%s3940_s25 + $0x2d8] sm:$0xff] %v1049_v27 }
  0x7a   : > { %1052 = vst [vmem:[%s3940_s25 + $0x2e0] sm:$0xff] %v1051_v28 }
  0x7b   : > { %1054 = vst [vmem:[%s3940_s25 + $0x2e8] sm:$0xff] %v1053_v29 }
  0x7c   : > { %1056 = vst [vmem:[%s3940_s25 + $0x2f0] sm:$0xff] %v1055_v30 }
  0x7d   : > { %1058 = vst [vmem:[%s3940_s25 + $0x2f8] sm:$0xff] %v1057_v31 }
  0x7e   : > { %1060 = vst [vmem:[%s3940_s25 + $0x300] sm:$0xff] %v1059_v32 }
  0x7f   : > { %1062 = vst [vmem:[%s3940_s25 + $0x308] sm:$0xff] %v1061_v33 }
  0x80   : > { %1064 = vst [vmem:[%s3940_s25 + $0x310] sm:$0xff] %v1063_v34 }
  0x81   : > { %1066 = vst [vmem:[%s3940_s25 + $0x318] sm:$0xff] %v1065_v35 }
  0x82   : > { %1068 = vst [vmem:[%s3940_s25 + $0x320] sm:$0xff] %v1067_v36 }
  0x83   : > { %1070 = vst [vmem:[%s3940_s25 + $0x328] sm:$0xff] %v1069_v37 }
  0x84   : > { %1072 = vst [vmem:[%s3940_s25 + $0x330] sm:$0xff] %v1071_v38 }
  0x85   : > { %1074 = vst [vmem:[%s3940_s25 + $0x338] sm:$0xff] %v1073_v39 }
  0x86   : > { %1076 = vst [vmem:[%s3940_s25 + $0x340] sm:$0xff] %v1075_v40 }
  0x87   : > { %1078 = vst [vmem:[%s3940_s25 + $0x348] sm:$0xff] %v1077_v41 }
  0x88   : > { %1080 = vst [vmem:[%s3940_s25 + $0x350] sm:$0xff] %v1079_v42 }
  0x89   : > { %1082 = vst [vmem:[%s3940_s25 + $0x358] sm:$0xff] %v1081_v43 }
  0x8a   : > { %1084 = vst [vmem:[%s3940_s25 + $0x360] sm:$0xff] %v1083_v44 }
  0x8b   : > { %1086 = vst [vmem:[%s3940_s25 + $0x368] sm:$0xff] %v1085_v45 }
  0x8c   : > { %1088 = vst [vmem:[%s3940_s25 + $0x370] sm:$0xff] %v1087_v46 }
  0x8d   : > { %1090 = vst [vmem:[%s3940_s25 + $0x378] sm:$0xff] %v1089_v47 }
  0x8e   : > { %1092 = vst [vmem:[%s3940_s25 + $0x380] sm:$0xff] %v1091_v48 }
  0x8f   : > { %1094 = vst [vmem:[%s3940_s25 + $0x388] sm:$0xff] %v1093_v49 }
  0x90   : > { %1096 = vst [vmem:[%s3940_s25 + $0x390] sm:$0xff] %v1095_v50 }
  0x91   : > { %1098 = vst [vmem:[%s3940_s25 + $0x398] sm:$0xff] %v1097_v51 }
  0x92   : > { %1100 = vst [vmem:[%s3940_s25 + $0x3a0] sm:$0xff] %v1099_v52 }
  0x93   : > { %1102 = vst [vmem:[%s3940_s25 + $0x3a8] sm:$0xff] %v1101_v53 }
  0x94   : > { %1104 = vst [vmem:[%s3940_s25 + $0x3b0] sm:$0xff] %v1103_v54 }
  0x95   : > { %1106 = vst [vmem:[%s3940_s25 + $0x3b8] sm:$0xff] %v1105_v55 }
  0x96   : > { %1108 = vst [vmem:[%s3940_s25 + $0x3c0] sm:$0xff] %v1107_v56 }
  0x97   : > { %1110 = vst [vmem:[%s3940_s25 + $0x3c8] sm:$0xff] %v1109_v57 }
  0x98   : > { %1112 = vst [vmem:[%s3940_s25 + $0x3d0] sm:$0xff] %v1111_v58 }
  0x99   : > { %1114 = vst [vmem:[%s3940_s25 + $0x3d8] sm:$0xff] %v1113_v59 }
  0x9a   : > { %1116 = vst [vmem:[%s3940_s25 + $0x3e0] sm:$0xff] %v1115_v60 }
  0x9b   : > { %1118 = vst [vmem:[%s3940_s25 + $0x3e8] sm:$0xff] %v1117_v61 }
  0x9c   : > { %1120 = vst [vmem:[%s3940_s25 + $0x3f0] sm:$0xff] %v1119_v62 }
  0x9d   : > { %1122 = vst [vmem:[%s3940_s25 + $0x3f8] sm:$0xff] %v1121_v63 }
  0x9e PF: > { %p3438_p5 = scmp.ge.s32.totalorder %s3782_s3, 1  ;;  %p1127_p6 = scmp.lt.s32.totalorder %s3782_s3, 3 }
  0xa0   : > { %p1128_p7 = pnand %p3438_p5, %p1127_p6 }
  0xa1   : > { %s5286_s30 = sld [smem:[#allocation11_spill]] (!%p1128_p7)  ;;  %s1134_s5 = sand.u32 (!%p1128_p7), 1, %s3774_s26  }
  0xa2   : > { %1131 = sbr.rel (%p1128_p7) target bundleno = 2379 (0x94b), region = 138  ;;  %s3439_s22 = sshll.u32 (!%p1128_p7), %s1134_s5, 10 }
  0xa3   : > { %s4201_s23 = scalar_lea.vmem (!%p1128_p7), [#allocation5], %s3439_s22  ;;  %s5287_s1 = sld [smem:[#allocation13_spill]] (!%p1128_p7) }
  0xa4   : > { %s5288_s5 = sld [smem:[#allocation12_spill]] (!%p1128_p7)  ;;  %p3601_p8 = scmp.ne.s32.totalorder (!%p1128_p7), %s3915_s20, 0 }
  0xa5   : > { %s5289_s3 = sld [smem:[#allocation14_spill]] (!%p1128_p7) }
  0xa7   : > { %v1317_v0 = vld [vmem:[%s5286_s30] sm:$0x7]  ;;  %vm1707_vm0 = vcmask 1042432   ;;  %vm1322_vm1 = vcmask 23552   ;;  %v1189_v1 = vld [vmem:[%s4201_s23] sm:$0xff]  ;;  %v1190_v2 = vld [vmem:[%s4201_s23 + $0x8] sm:$0xff] }
  0xa8   : > { %3440 = vmatpush.msk.msra.mxu0 %vm1707_vm0, %v1317_v0  ;;  %3658 = vmatpush.msk.msra.mxu3 %vm1707_vm0, %v1317_v0  ;;  %v1191_v3 = vld [vmem:[%s4201_s23 + $0x10] sm:$0xff]  ;;  %v1192_v4 = vld [vmem:[%s4201_s23 + $0x18] sm:$0xff]  ;;  %v1193_v5 = vld [vmem:[%s4201_s23 + $0x20] sm:$0xff] }
  0xa9   : > { %3441 = vmatmul.msk.f32.vlgmr.msra.gmra.mxu0 %vm1322_vm1, %v1189_v1  ;;  %v1194_v6 = vld [vmem:[%s4201_s23 + $0x28] sm:$0xff]  ;;  %v1195_v7 = vld [vmem:[%s4201_s23 + $0x30] sm:$0xff]  ;;  %v1196_v8 = vld [vmem:[%s4201_s23 + $0x38] sm:$0xff] }
  0xaa   : > { %v1197_v9 = vld [vmem:[%s4201_s23 + $0x40] sm:$0xff]  ;;  %v1198_v10 = vld [vmem:[%s4201_s23 + $0x48] sm:$0xff]  ;;  %v3649_v11 = vld [vmem:[%s5287_s1 + $0x38] sm:$0xff] }
  0xab   : > { %2372 = vmatpush.bf16.msra.mxu1 %v3649_v11  ;;  %3659 = vmatpush.bf16.msra.mxu2 %v3649_v11  ;;  %v1199_v12 = vld [vmem:[%s4201_s23 + $0x50] sm:$0xff]  ;;  %v3647_v14 = vld [vmem:[%s5287_s1 + $0x28] sm:$0xff]  ;;  %v1200_v15 = vld [vmem:[%s4201_s23 + $0x58] sm:$0xff]  ;;  %s5290_s24 = smov %s5289_s3 }
  0xac   : > { %3660 = vmatpush.bf16.msrb.mxu3 %v3649_v11  ;;  %v3648_v13 = vld [vmem:[%s5287_s1 + $0x30] sm:$0xff]  ;;  %v3646_v16 = vld [vmem:[%s5287_s1 + $0x20] sm:$0xff]  ;;  %v3645_v17 = vld [vmem:[%s5287_s1 + $0x18] sm:$0xff] }
  0xad   : > { %v1201_v18 = vld [vmem:[%s4201_s23 + $0x60] sm:$0xff]  ;;  %v3644_v19 = vld [vmem:[%s5287_s1 + $0x10] sm:$0xff]  ;;  %v1204_v24 = vld [vmem:[%s4201_s23 + $0x78] sm:$0xff] }
  0xae   : > { %v3643_v20 = vld [vmem:[%s5287_s1 + $0x8] sm:$0xff]  ;;  %v3642_v22 = vld [vmem:[%s5287_s1] sm:$0xff]  ;;  %v1203_v23 = vld [vmem:[%s4201_s23 + $0x70] sm:$0xff] }
  0xaf   : > { %2373 = vmatpush.bf16.msra.mxu1 %v3648_v13  ;;  %3661 = vmatpush.bf16.msra.mxu2 %v3648_v13  ;;  %v1202_v21 = vld [vmem:[%s4201_s23 + $0x68] sm:$0xff]  ;;  %v1205_v26 = vld [vmem:[%s4201_s23 + $0x80] sm:$0xff]  ;;  %v4263_v27 = vld [vmem:[%s5288_s5] ss:$0 sm:$0xff] }
  0xb0   : > { %3662 = vmatpush.bf16.msrb.mxu3 %v3648_v13  ;;  %v1206_v30 = vld [vmem:[%s4201_s23 + $0x88] sm:$0xff]  ;;  %v1207_v36 = vld [vmem:[%s4201_s23 + $0x90] sm:$0xff]  ;;  %v1208_v39 = vld [vmem:[%s4201_s23 + $0x98] sm:$0xff] }
  0xb1   : > { %3442 = vmatmul.msk.f32.gmra.mxu0 %vm1322_vm1, %v1190_v2  ;;  %v1209_v45 = vld [vmem:[%s4201_s23 + $0xa0] sm:$0xff]  ;;  %v1210_v48 = vld [vmem:[%s4201_s23 + $0xa8] sm:$0xff]  ;;  %v1211_v54 = vld [vmem:[%s4201_s23 + $0xb0] sm:$0xff] }
  0xb2   : > { %v1212_v57 = vld [vmem:[%s4201_s23 + $0xb8] sm:$0xff]  ;;  %v1213_v63 = vld [vmem:[%s4201_s23 + $0xc0] sm:$0xff]  ;;  %v1214_v2 = vld [vmem:[%s4201_s23 + $0xc8] sm:$0xff] }
  0xb3   : > { %2374 = vmatpush.bf16.msra.mxu1 %v3647_v14  ;;  %3663 = vmatpush.bf16.msra.mxu2 %v3647_v14  ;;  %v1216_v11 = vld [vmem:[%s4201_s23 + $0xd8] sm:$0xff] }
  0xb4   : > { %3664 = vmatpush.bf16.msrb.mxu3 %v3647_v14 }
  0xb7   : > { %2375 = vmatpush.bf16.msra.mxu1 %v3646_v16  ;;  %3665 = vmatpush.bf16.msra.mxu2 %v3646_v16 }
  0xb8   : > { %3666 = vmatpush.bf16.msrb.mxu3 %v3646_v16 }
  0xb9   : > { %3443 = vmatmul.msk.f32.gmra.mxu0 %vm1322_vm1, %v1191_v3 }
  0xbb   : > { %2376 = vmatpush.bf16.msra.mxu1 %v3645_v17  ;;  %3667 = vmatpush.bf16.msra.mxu2 %v3645_v17 }
  0xbc   : > { %3668 = vmatpush.bf16.msrb.mxu3 %v3645_v17  ;;  %v1217_v17 = vld [vmem:[%s4201_s23 + $0xe0] sm:$0xff] }
  0xbf   : > { %2377 = vmatpush.bf16.msra.mxu1 %v3644_v19  ;;  %3669 = vmatpush.bf16.msra.mxu2 %v3644_v19 }
  0xc0   : > { %3670 = vmatpush.bf16.msrb.mxu3 %v3644_v19 }
  0xc1   : > { %3444 = vmatmul.msk.f32.gmra.mxu0 %vm1322_vm1, %v1192_v4 }
  0xc3   : > { %2378 = vmatpush.bf16.msra.mxu1 %v3643_v20  ;;  %3671 = vmatpush.bf16.msra.mxu2 %v3643_v20 }
  0xc4   : > { %3672 = vmatpush.bf16.msrb.mxu3 %v3643_v20  ;;  %v1218_v20 = vld [vmem:[%s4201_s23 + $0xe8] sm:$0xff] }
  0xc7   : > { %2379 = vmatpush.bf16.msra.mxu1 %v3642_v22  ;;  %3673 = vmatpush.bf16.msra.mxu2 %v3642_v22 }
  0xc8   : > { %3674 = vmatpush.bf16.msrb.mxu3 %v3642_v22 }
  0xc9   : > { %3445 = vmatmul.msk.f32.gmra.mxu0 %vm1322_vm1, %v1193_v5 }
  0xd1   : > { %3446 = vmatmul.msk.f32.gmra.mxu0 %vm1322_vm1, %v1194_v6 }
  0xd9   : > { %3447 = vmatmul.msk.f32.gmra.mxu0 %vm1322_vm1, %v1195_v7 }
  0xe1   : > { %3448 = vmatmul.msk.f32.gmra.mxu0 %vm1322_vm1, %v1196_v8  ;;  %v1215_v8 = vld [vmem:[%s4201_s23 + $0xd0] sm:$0xff] }
  0xe9   : > { %3449 = vmatmul.msk.f32.gmra.mxu0 %vm1322_vm1, %v1197_v9 }
  0xf1   : > { %3450 = vmatmul.msk.f32.gmra.mxu0 %vm1322_vm1, %v1198_v10 }
  0xf9   : > { %3451 = vmatmul.msk.f32.gmra.mxu0 %vm1322_vm1, %v1199_v12 }
 0x101   : > { %3452 = vmatmul.msk.f32.gmra.mxu0 %vm1322_vm1, %v1200_v15 }
 0x109   : > { %3453 = vmatmul.msk.f32.gmra.mxu0 %vm1322_vm1, %v1201_v18 }
 0x111   : > { %3454 = vmatmul.msk.f32.gmra.mxu0 %vm1322_vm1, %v1202_v21 }
 0x119   : > { %3455 = vmatmul.msk.f32.gmra.mxu0 %vm1322_vm1, %v1203_v23 }
 0x121   : > { %3456 = vmatmul.msk.f32.gmra.mxu0 %vm1322_vm1, %v1204_v24 }
 0x126   : > { %v1728_v25 = vpop.f32.mrf.mxu0 }
 0x127   : > { %v1729_v28 = vadd.f32 %v4263_v27, %v1728_v25 }
 0x129   : > { %3457 = vmatmul.msk.f32.gmra.mxu0 %vm1322_vm1, %v1205_v26  ;;  %v2112_v32 = vmax.f32 %v1729_v28, 0.0  ;;  %v1219_v26 = vld [vmem:[%s4201_s23 + $0xf0] sm:$0xff] }
 0x12e   : > { %v1731_v29 = vpop.f32.mrf.mxu0 }
 0x12f   : > { %v1732_v31 = vadd.f32 %v4263_v27, %v1731_v29 }
 0x131   : > { %v2113_v33 = vmax.f32 %v1732_v31, 0.0  ;;  %3458 = vmatmul.msk.f32.gmra.mxu0 %vm1322_vm1, %v1206_v30  ;;  %v1220_v30 = vld [vmem:[%s4201_s23 + $0xf8] sm:$0xff] }
 0x133   : > { %v2240_v34 = vpack.c.bf16 %v2113_v33, %v2112_v32 }
 0x135   : > { %2380 = vmatmul.bf16.vlgmr.msra.gmra.mxu1 %v2240_v34 }
 0x136   : > { %v1734_v35 = vpop.f32.mrf.mxu0 }
 0x137   : > { %v1735_v37 = vadd.f32 %v4263_v27, %v1734_v35 }
 0x139   : > { %3459 = vmatmul.msk.f32.gmra.mxu0 %vm1322_vm1, %v1207_v36  ;;  %v2114_v41 = vmax.f32 %v1735_v37, 0.0  ;;  %v1221_v36 = vld [vmem:[%s4201_s23 + $0x100] sm:$0xff] }
 0x13e   : > { %v1737_v38 = vpop.f32.mrf.mxu0 }
 0x13f   : > { %v1738_v40 = vadd.f32 %v4263_v27, %v1737_v38 }
 0x141   : > { %v2115_v42 = vmax.f32 %v1738_v40, 0.0  ;;  %3460 = vmatmul.msk.f32.gmra.mxu0 %vm1322_vm1, %v1208_v39  ;;  %v1222_v39 = vld [vmem:[%s4201_s23 + $0x108] sm:$0xff] }
 0x143   : > { %v2241_v43 = vpack.c.bf16 %v2115_v42, %v2114_v41 }
 0x145   : > { %2385 = vmatmul.bf16.gmra.mxu1 %v2241_v43 }
 0x146   : > { %v1740_v44 = vpop.f32.mrf.mxu0 }
 0x147   : > { %v1741_v46 = vadd.f32 %v4263_v27, %v1740_v44 }
 0x149   : > { %3461 = vmatmul.msk.f32.gmra.mxu0 %vm1322_vm1, %v1209_v45  ;;  %v2116_v50 = vmax.f32 %v1741_v46, 0.0  ;;  %v1223_v46 = vld [vmem:[%s4201_s23 + $0x110] sm:$0xff] }
 0x14e   : > { %v1743_v47 = vpop.f32.mrf.mxu0 }
 0x14f   : > { %v1744_v49 = vadd.f32 %v4263_v27, %v1743_v47 }
 0x151   : > { %v2117_v51 = vmax.f32 %v1744_v49, 0.0  ;;  %3462 = vmatmul.msk.f32.gmra.mxu0 %vm1322_vm1, %v1210_v48  ;;  %v4323_v48 = vld [vmem:[%s5289_s3] ss:$0 sm:$0xff] }
 0x153   : > { %v2242_v52 = vpack.c.bf16 %v2117_v51, %v2116_v50  ;;  %v1224_v51 = vld [vmem:[%s4201_s23 + $0x118] sm:$0xff] }
 0x155   : > { %2390 = vmatmul.bf16.gmra.mxu1 %v2242_v52 }
 0x156   : > { %v1746_v53 = vpop.f32.mrf.mxu0 }
 0x157   : > { %v1747_v55 = vadd.f32 %v4263_v27, %v1746_v53 }
 0x159   : > { %3463 = vmatmul.msk.f32.gmra.mxu0 %vm1322_vm1, %v1211_v54  ;;  %v2118_v59 = vmax.f32 %v1747_v55, 0.0 }
 0x15e   : > { %v1749_v56 = vpop.f32.mrf.mxu0 }
 0x15f   : > { %v1750_v58 = vadd.f32 %v4263_v27, %v1749_v56 }
 0x161   : > { %v2119_v60 = vmax.f32 %v1750_v58, 0.0  ;;  %3464 = vmatmul.msk.f32.gmra.mxu0 %vm1322_vm1, %v1212_v57 }
 0x163   : > { %v2243_v61 = vpack.c.bf16 %v2119_v60, %v2118_v59 }
 0x165   : > { %2395 = vmatmul.bf16.gmra.mxu1 %v2243_v61 }
 0x166   : > { %v1752_v62 = vpop.f32.mrf.mxu0 }
 0x167   : > { %v1753_v0 = vadd.f32 %v4263_v27, %v1752_v62  ;;  %v1225_v62 = vld [vmem:[%s4201_s23 + $0x120] sm:$0xff] }
 0x169   : > { %3465 = vmatmul.msk.f32.gmra.mxu0 %vm1322_vm1, %v1213_v63  ;;  %v2120_v4 = vmax.f32 %v1753_v0, 0.0 }
 0x16e   : > { %v1755_v1 = vpop.f32.mrf.mxu0 }
 0x16f   : > { %v1756_v3 = vadd.f32 %v4263_v27, %v1755_v1 }
 0x171   : > { %v2121_v5 = vmax.f32 %v1756_v3, 0.0  ;;  %3466 = vmatmul.msk.f32.gmra.mxu0 %vm1322_vm1, %v1214_v2 }
 0x173   : > { %v2244_v6 = vpack.c.bf16 %v2121_v5, %v2120_v4 }
 0x175   : > { %2400 = vmatmul.bf16.gmra.mxu1 %v2244_v6 }
 0x176   : > { %v1758_v7 = vpop.f32.mrf.mxu0 }
 0x177   : > { %v1759_v9 = vadd.f32 %v4263_v27, %v1758_v7  ;;  %v1226_v7 = vld [vmem:[%s4201_s23 + $0x128] sm:$0xff] }
 0x179   : > { %3467 = vmatmul.msk.f32.gmra.mxu0 %vm1322_vm1, %v1215_v8  ;;  %v2122_v13 = vmax.f32 %v1759_v9, 0.0 }
 0x17e   : > { %v1761_v10 = vpop.f32.mrf.mxu0 }
 0x17f   : > { %v1762_v12 = vadd.f32 %v4263_v27, %v1761_v10 }
 0x181   : > { %v2123_v14 = vmax.f32 %v1762_v12, 0.0  ;;  %3468 = vmatmul.msk.f32.gmra.mxu0 %vm1322_vm1, %v1216_v11 }
 0x183   : > { %v2245_v15 = vpack.c.bf16 %v2123_v14, %v2122_v13 }
 0x185   : > { %2405 = vmatmul.bf16.gmra.mxu1 %v2245_v15 }
 0x186   : > { %v1764_v16 = vpop.f32.mrf.mxu0 }
 0x187   : > { %v1765_v18 = vadd.f32 %v4263_v27, %v1764_v16 }
 0x189   : > { %3469 = vmatmul.msk.f32.gmra.mxu0 %vm1322_vm1, %v1217_v17  ;;  %v2124_v22 = vmax.f32 %v1765_v18, 0.0  ;;  %v1227_v17 = vld [vmem:[%s4201_s23 + $0x130] sm:$0xff] }
 0x18e   : > { %v1767_v19 = vpop.f32.mrf.mxu0 }
 0x18f   : > { %v1768_v21 = vadd.f32 %v4263_v27, %v1767_v19 }
 0x191   : > { %v2125_v23 = vmax.f32 %v1768_v21, 0.0  ;;  %3470 = vmatmul.msk.f32.gmra.mxu0 %vm1322_vm1, %v1218_v20 }
 0x193   : > { %v2246_v24 = vpack.c.bf16 %v2125_v23, %v2124_v22 }
 0x195   : > { %2410 = vmatmul.bf16.gmra.mxu1 %v2246_v24  ;;  %v1228_v24 = vld [vmem:[%s4201_s23 + $0x138] sm:$0xff] }
 0x196   : > { %v1770_v25 = vpop.f32.mrf.mxu0 }
 0x197   : > { %v1771_v28 = vadd.f32 %v4263_v27, %v1770_v25 }
 0x199   : > { %3471 = vmatmul.msk.f32.gmra.mxu0 %vm1322_vm1, %v1219_v26  ;;  %v2126_v32 = vmax.f32 %v1771_v28, 0.0 }
 0x19e   : > { %v1773_v29 = vpop.f32.mrf.mxu0 }
 0x19f   : > { %v1774_v31 = vadd.f32 %v4263_v27, %v1773_v29 }
 0x1a1   : > { %v2127_v33 = vmax.f32 %v1774_v31, 0.0  ;;  %3472 = vmatmul.msk.f32.gmra.mxu0 %vm1322_vm1, %v1220_v30 }
 0x1a3   : > { %v2247_v34 = vpack.c.bf16 %v2127_v33, %v2126_v32 }
 0x1a5   : > { %2415 = vmatmul.bf16.gmra.mxu1 %v2247_v34 }
 0x1a6   : > { %v1776_v35 = vpop.f32.mrf.mxu0 }
 0x1a7   : > { %v1777_v37 = vadd.f32 %v4263_v27, %v1776_v35  ;;  %v1229_v35 = vld [vmem:[%s4201_s23 + $0x140] sm:$0xff] }
 0x1a9   : > { %3473 = vmatmul.msk.f32.gmra.mxu0 %vm1322_vm1, %v1221_v36  ;;  %v2128_v41 = vmax.f32 %v1777_v37, 0.0 }
 0x1ae   : > { %v1779_v38 = vpop.f32.mrf.mxu0 }
 0x1af   : > { %v1780_v40 = vadd.f32 %v4263_v27, %v1779_v38 }
 0x1b1   : > { %v2129_v42 = vmax.f32 %v1780_v40, 0.0  ;;  %3474 = vmatmul.msk.f32.gmra.mxu0 %vm1322_vm1, %v1222_v39 }
 0x1b2   : > { %v2381_v43 = vpop.f32.mrf.mxu1 }
 0x1b3   : > { %v2248_v44 = vpack.c.bf16 %v2129_v42, %v2128_v41  ;;  %v4329_v53 = vadd.f32 %v4323_v48, %v2381_v43  ;;  %v1230_v42 = vld [vmem:[%s4201_s23 + $0x148] sm:$0xff] }
 0x1b5   : > { %2420 = vmatmul.bf16.gmra.mxu1 %v2248_v44  ;;  %v2701_v59 = vmax.f32 %v4329_v53, 0.0 }
 0x1b6   : > { %v1782_v45 = vpop.f32.mrf.mxu0 }
 0x1b7   : > { %v1783_v49 = vadd.f32 %v4263_v27, %v1782_v45 }
 0x1b9   : > { %3475 = vmatmul.msk.f32.gmra.mxu0 %vm1322_vm1, %v1223_v46  ;;  %v2130_v54 = vmax.f32 %v1783_v49, 0.0 }
 0x1ba   : > { %v2383_v47 = vpop.f32.mrf.mxu1 }
 0x1bb   : > { %v2384_v0 = vadd.f32 %v4323_v48, %v2383_v47 }
 0x1bd   : > { %v2702_v3 = vmax.f32 %v2384_v0, 0.0 }
 0x1be   : > { %v1785_v50 = vpop.f32.mrf.mxu0 }
 0x1bf   : > { %v1786_v52 = vadd.f32 %v4263_v27, %v1785_v50 }
 0x1c1   : > { %v2131_v55 = vmax.f32 %v1786_v52, 0.0  ;;  %3476 = vmatmul.msk.f32.gmra.mxu0 %vm1322_vm1, %v1224_v51 }
 0x1c2   : > { %v2386_v56 = vpop.f32.mrf.mxu1 }
 0x1c3   : > { %v2387_v57 = vadd.f32 %v4323_v48, %v2386_v56  ;;  %v2249_v58 = vpack.c.bf16 %v2131_v55, %v2130_v54  ;;  %v1231_v54 = vld [vmem:[%s4201_s23 + $0x150] sm:$0xff] }
 0x1c5   : > { %v2703_v60 = vmax.f32 %v2387_v57, 0.0  ;;  %2425 = vmatmul.bf16.gmra.mxu1 %v2249_v58 }
 0x1c6   : > { %v1788_v61 = vpop.f32.mrf.mxu0 }
 0x1c7   : > { %v2829_v63 = vmax.f32 %v2701_v59, %v2703_v60  ;;  %v1789_v4 = vadd.f32 %v4263_v27, %v1788_v61 }
 0x1c9   : > { %3477 = vmatmul.msk.f32.gmra.mxu0 %vm1322_vm1, %v1225_v62  ;;  %v2132_v10 = vmax.f32 %v1789_v4, 0.0  ;;  %v1232_v62 = vld [vmem:[%s4201_s23 + $0x158] sm:$0xff] }
 0x1ca   : > { %v2388_v1 = vpop.f32.mrf.mxu1 }
 0x1cb   : > { %v2389_v2 = vadd.f32 %v4323_v48, %v2388_v1 }
 0x1cd   : > { %v2704_v5 = vmax.f32 %v2389_v2, 0.0 }
 0x1ce   : > { %v1791_v6 = vpop.f32.mrf.mxu0 }
 0x1cf   : > { %v2830_v8 = vmax.f32 %v2702_v3, %v2704_v5  ;;  %v1792_v9 = vadd.f32 %v4263_v27, %v1791_v6 }
 0x1d1   : > { %v2133_v11 = vmax.f32 %v1792_v9, 0.0  ;;  %3478 = vmatmul.msk.f32.gmra.mxu0 %vm1322_vm1, %v1226_v7 }
 0x1d2   : > { %v2391_v12 = vpop.f32.mrf.mxu1 }
 0x1d3   : > { %v2392_v13 = vadd.f32 %v4323_v48, %v2391_v12  ;;  %v2250_v14 = vpack.c.bf16 %v2133_v11, %v2132_v10 }
 0x1d5   : > { %v2705_v15 = vmax.f32 %v2392_v13, 0.0  ;;  %2430 = vmatmul.bf16.gmra.mxu1 %v2250_v14 }
 0x1d6   : > { %v1794_v16 = vpop.f32.mrf.mxu0 }
 0x1d7   : > { %v2831_v18 = vmax.f32 %v2829_v63, %v2705_v15  ;;  %v1795_v21 = vadd.f32 %v4263_v27, %v1794_v16  ;;  %v1234_v15 = vld [vmem:[%s4201_s23 + $0x168] sm:$0xff] }
 0x1d9   : > { %3479 = vmatmul.msk.f32.gmra.mxu0 %vm1322_vm1, %v1227_v17  ;;  %v2134_v28 = vmax.f32 %v1795_v21, 0.0 }
 0x1da   : > { %v2393_v19 = vpop.f32.mrf.mxu1 }
 0x1db   : > { %v2394_v20 = vadd.f32 %v4323_v48, %v2393_v19 }
 0x1dd   : > { %v2706_v22 = vmax.f32 %v2394_v20, 0.0 }
 0x1de   : > { %v1797_v23 = vpop.f32.mrf.mxu0 }
 0x1df   : > { %v2832_v25 = vmax.f32 %v2830_v8, %v2706_v22  ;;  %v1798_v26 = vadd.f32 %v4263_v27, %v1797_v23  ;;  %v1233_v8 = vld [vmem:[%s4201_s23 + $0x160] sm:$0xff] }
 0x1e1   : > { %v2135_v29 = vmax.f32 %v1798_v26, 0.0  ;;  %3480 = vmatmul.msk.f32.gmra.mxu0 %vm1322_vm1, %v1228_v24 }
 0x1e2   : > { %v2396_v30 = vpop.f32.mrf.mxu1 }
 0x1e3   : > { %v2397_v31 = vadd.f32 %v4323_v48, %v2396_v30  ;;  %v2251_v32 = vpack.c.bf16 %v2135_v29, %v2134_v28 }
 0x1e5   : > { %v2707_v33 = vmax.f32 %v2397_v31, 0.0  ;;  %2435 = vmatmul.bf16.gmra.mxu1 %v2251_v32 }
 0x1e6   : > { %v1800_v34 = vpop.f32.mrf.mxu0 }
 0x1e7   : > { %v2833_v36 = vmax.f32 %v2831_v18, %v2707_v33  ;;  %v1801_v39 = vadd.f32 %v4263_v27, %v1800_v34  ;;  %v1236_v33 = vld [vmem:[%s4201_s23 + $0x178] sm:$0xff] }
 0x1e9   : > { %3481 = vmatmul.msk.f32.gmra.mxu0 %vm1322_vm1, %v1229_v35  ;;  %v2136_v45 = vmax.f32 %v1801_v39, 0.0 }
 0x1ea   : > { %v2398_v37 = vpop.f32.mrf.mxu1 }
 0x1eb   : > { %v2399_v38 = vadd.f32 %v4323_v48, %v2398_v37 }
 0x1ed   : > { %v2708_v40 = vmax.f32 %v2399_v38, 0.0 }
 0x1ee   : > { %v1803_v41 = vpop.f32.mrf.mxu0 }
 0x1ef   : > { %v2834_v43 = vmax.f32 %v2832_v25, %v2708_v40  ;;  %v1804_v44 = vadd.f32 %v4263_v27, %v1803_v41  ;;  %v1235_v25 = vld [vmem:[%s4201_s23 + $0x170] sm:$0xff] }
 0x1f1   : > { %v2137_v46 = vmax.f32 %v1804_v44, 0.0  ;;  %3482 = vmatmul.msk.f32.gmra.mxu0 %vm1322_vm1, %v1230_v42 }
 0x1f2   : > { %v2401_v47 = vpop.f32.mrf.mxu1 }
 0x1f3   : > { %v2402_v49 = vadd.f32 %v4323_v48, %v2401_v47  ;;  %v2252_v50 = vpack.c.bf16 %v2137_v46, %v2136_v45 }
 0x1f5   : > { %v2709_v51 = vmax.f32 %v2402_v49, 0.0  ;;  %2440 = vmatmul.bf16.gmra.mxu1 %v2252_v50 }
 0x1f6   : > { %v1806_v52 = vpop.f32.mrf.mxu0 }
 0x1f7   : > { %v2835_v55 = vmax.f32 %v2833_v36, %v2709_v51  ;;  %v1807_v58 = vadd.f32 %v4263_v27, %v1806_v52  ;;  %v1238_v51 = vld [vmem:[%s4201_s23 + $0x188] sm:$0xff] }
 0x1f9   : > { %3483 = vmatmul.msk.f32.gmra.mxu0 %vm1322_vm1, %v1231_v54  ;;  %v2138_v1 = vmax.f32 %v1807_v58, 0.0 }
 0x1fa   : > { %v2403_v56 = vpop.f32.mrf.mxu1 }
 0x1fb   : > { %v2404_v57 = vadd.f32 %v4323_v48, %v2403_v56 }
 0x1fd   : > { %v2710_v60 = vmax.f32 %v2404_v57, 0.0 }
 0x1fe   : > { %v1809_v61 = vpop.f32.mrf.mxu0 }
 0x1ff   : > { %v2836_v63 = vmax.f32 %v2834_v43, %v2710_v60  ;;  %v1810_v0 = vadd.f32 %v4263_v27, %v1809_v61  ;;  %v1237_v43 = vld [vmem:[%s4201_s23 + $0x180] sm:$0xff] }
 0x201   : > { %v2139_v2 = vmax.f32 %v1810_v0, 0.0  ;;  %3484 = vmatmul.msk.f32.gmra.mxu0 %vm1322_vm1, %v1232_v62 }
 0x202   : > { %v2406_v3 = vpop.f32.mrf.mxu1 }
 0x203   : > { %v2407_v4 = vadd.f32 %v4323_v48, %v2406_v3  ;;  %v2253_v5 = vpack.c.bf16 %v2139_v2, %v2138_v1 }
 0x205   : > { %v2711_v6 = vmax.f32 %v2407_v4, 0.0  ;;  %2445 = vmatmul.bf16.gmra.mxu1 %v2253_v5 }
 0x206   : > { %v1812_v7 = vpop.f32.mrf.mxu0 }
 0x207   : > { %v2837_v9 = vmax.f32 %v2835_v55, %v2711_v6  ;;  %v1813_v12 = vadd.f32 %v4263_v27, %v1812_v7  ;;  %v1240_v6 = vld [vmem:[%s4201_s23 + $0x198] sm:$0xff] }
 0x209   : > { %3485 = vmatmul.msk.f32.gmra.mxu0 %vm1322_vm1, %v1233_v8  ;;  %v2140_v18 = vmax.f32 %v1813_v12, 0.0 }
 0x20a   : > { %v2408_v10 = vpop.f32.mrf.mxu1 }
 0x20b   : > { %v2409_v11 = vadd.f32 %v4323_v48, %v2408_v10 }
 0x20d   : > { %v2712_v13 = vmax.f32 %v2409_v11, 0.0 }
 0x20e   : > { %v1815_v14 = vpop.f32.mrf.mxu0 }
 0x20f   : > { %v2838_v16 = vmax.f32 %v2836_v63, %v2712_v13  ;;  %v1816_v17 = vadd.f32 %v4263_v27, %v1815_v14  ;;  %v1239_v63 = vld [vmem:[%s4201_s23 + $0x190] sm:$0xff] }
 0x211   : > { %v2141_v19 = vmax.f32 %v1816_v17, 0.0  ;;  %3486 = vmatmul.msk.f32.gmra.mxu0 %vm1322_vm1, %v1234_v15 }
 0x212   : > { %v2411_v20 = vpop.f32.mrf.mxu1 }
 0x213   : > { %v2412_v21 = vadd.f32 %v4323_v48, %v2411_v20  ;;  %v2254_v22 = vpack.c.bf16 %v2141_v19, %v2140_v18 }
 0x215   : > { %v2713_v23 = vmax.f32 %v2412_v21, 0.0  ;;  %2450 = vmatmul.bf16.gmra.mxu1 %v2254_v22 }
 0x216   : > { %v1818_v24 = vpop.f32.mrf.mxu0 }
 0x217   : > { %v2839_v26 = vmax.f32 %v2837_v9, %v2713_v23  ;;  %v1819_v30 = vadd.f32 %v4263_v27, %v1818_v24  ;;  %v1242_v23 = vld [vmem:[%s4201_s23 + $0x1a8] sm:$0xff] }
 0x219   : > { %3487 = vmatmul.msk.f32.gmra.mxu0 %vm1322_vm1, %v1235_v25  ;;  %v2142_v36 = vmax.f32 %v1819_v30, 0.0 }
 0x21a   : > { %v2413_v28 = vpop.f32.mrf.mxu1 }
 0x21b   : > { %v2414_v29 = vadd.f32 %v4323_v48, %v2413_v28 }
 0x21d   : > { %v2714_v31 = vmax.f32 %v2414_v29, 0.0 }
 0x21e   : > { %v1821_v32 = vpop.f32.mrf.mxu0 }
 0x21f   : > { %v2840_v34 = vmax.f32 %v2838_v16, %v2714_v31  ;;  %v1822_v35 = vadd.f32 %v4263_v27, %v1821_v32  ;;  %v1241_v16 = vld [vmem:[%s4201_s23 + $0x1a0] sm:$0xff] }
 0x221   : > { %v2143_v37 = vmax.f32 %v1822_v35, 0.0  ;;  %3488 = vmatmul.msk.f32.gmra.mxu0 %vm1322_vm1, %v1236_v33 }
 0x222   : > { %v2416_v38 = vpop.f32.mrf.mxu1 }
 0x223   : > { %v2417_v39 = vadd.f32 %v4323_v48, %v2416_v38  ;;  %v2255_v40 = vpack.c.bf16 %v2143_v37, %v2142_v36 }
 0x225   : > { %v2715_v41 = vmax.f32 %v2417_v39, 0.0  ;;  %2455 = vmatmul.bf16.gmra.mxu1 %v2255_v40 }
 0x226   : > { %v1824_v42 = vpop.f32.mrf.mxu0 }
 0x227   : > { %v2841_v44 = vmax.f32 %v2839_v26, %v2715_v41  ;;  %v1825_v47 = vadd.f32 %v4263_v27, %v1824_v42  ;;  %v1244_v41 = vld [vmem:[%s4201_s23 + $0x1b8] sm:$0xff] }
 0x229   : > { %3489 = vmatmul.msk.f32.gmra.mxu0 %vm1322_vm1, %v1237_v43  ;;  %v2144_v55 = vmax.f32 %v1825_v47, 0.0 }
 0x22a   : > { %v2418_v45 = vpop.f32.mrf.mxu1 }
 0x22b   : > { %v2419_v46 = vadd.f32 %v4323_v48, %v2418_v45 }
 0x22d   : > { %v2716_v49 = vmax.f32 %v2419_v46, 0.0 }
 0x22e   : > { %v1827_v50 = vpop.f32.mrf.mxu0 }
 0x22f   : > { %v2842_v52 = vmax.f32 %v2840_v34, %v2716_v49  ;;  %v1828_v54 = vadd.f32 %v4263_v27, %v1827_v50  ;;  %v1243_v34 = vld [vmem:[%s4201_s23 + $0x1b0] sm:$0xff] }
 0x231   : > { %v2145_v56 = vmax.f32 %v1828_v54, 0.0  ;;  %3490 = vmatmul.msk.f32.gmra.mxu0 %vm1322_vm1, %v1238_v51 }
 0x232   : > { %v2421_v57 = vpop.f32.mrf.mxu1 }
 0x233   : > { %v2422_v58 = vadd.f32 %v4323_v48, %v2421_v57  ;;  %v2256_v60 = vpack.c.bf16 %v2145_v56, %v2144_v55 }
 0x235   : > { %v2717_v61 = vmax.f32 %v2422_v58, 0.0  ;;  %2460 = vmatmul.bf16.gmra.mxu1 %v2256_v60 }
 0x236   : > { %v1830_v62 = vpop.f32.mrf.mxu0 }
 0x237   : > { %v2843_v0 = vmax.f32 %v2841_v44, %v2717_v61  ;;  %v1831_v3 = vadd.f32 %v4263_v27, %v1830_v62  ;;  %v1246_v61 = vld [vmem:[%s4201_s23 + $0x1c8] sm:$0xff] }
 0x239   : > { %3491 = vmatmul.msk.f32.gmra.mxu0 %vm1322_vm1, %v1239_v63  ;;  %v2146_v9 = vmax.f32 %v1831_v3, 0.0 }
 0x23a   : > { %v2423_v1 = vpop.f32.mrf.mxu1 }
 0x23b   : > { %v2424_v2 = vadd.f32 %v4323_v48, %v2423_v1 }
 0x23d   : > { %v2718_v4 = vmax.f32 %v2424_v2, 0.0 }
 0x23e   : > { %v1833_v5 = vpop.f32.mrf.mxu0 }
 0x23f   : > { %v2844_v7 = vmax.f32 %v2842_v52, %v2718_v4  ;;  %v1834_v8 = vadd.f32 %v4263_v27, %v1833_v5  ;;  %v1245_v52 = vld [vmem:[%s4201_s23 + $0x1c0] sm:$0xff]  ;;  %v1255_v5 = vld [vmem:[%s4201_s23 + $0x210] sm:$0xff] }
 0x240   : > { %3507 = vmatmul.msk.f32.vlgmr.msra.gmra.mxu3 %vm1322_vm1, %v1255_v5  ;;  %v1253_v5 = vld [vmem:[%s4201_s23 + $0x200] sm:$0xff] }
 0x241   : > { %v2147_v10 = vmax.f32 %v1834_v8, 0.0  ;;  %3492 = vmatmul.msk.f32.gmra.mxu0 %vm1322_vm1, %v1240_v6  ;;  %v1247_v8 = vld [vmem:[%s4201_s23 + $0x1d0] sm:$0xff] }
 0x242   : > { %v2426_v11 = vpop.f32.mrf.mxu1 }
 0x243   : > { %v2427_v12 = vadd.f32 %v4323_v48, %v2426_v11  ;;  %v2257_v13 = vpack.c.bf16 %v2147_v10, %v2146_v9 }
 0x245   : > { %v2719_v14 = vmax.f32 %v2427_v12, 0.0  ;;  %2465 = vmatmul.bf16.gmra.mxu1 %v2257_v13  ;;  %v1256_v12 = vld [vmem:[%s4201_s23 + $0x218] sm:$0xff] }
 0x246   : > { %v1836_v15 = vpop.f32.mrf.mxu0 }
 0x247   : > { %v2845_v17 = vmax.f32 %v2843_v0, %v2719_v14  ;;  %v1837_v20 = vadd.f32 %v4263_v27, %v1836_v15 }
 0x248   : > { %3508 = vmatmul.msk.f32.gmra.mxu3 %vm1322_vm1, %v1256_v12 }
 0x249   : > { %3493 = vmatmul.msk.f32.gmra.mxu0 %vm1322_vm1, %v1241_v16  ;;  %v2148_v26 = vmax.f32 %v1837_v20, 0.0  ;;  %v1248_v16 = vld [vmem:[%s4201_s23 + $0x1d8] sm:$0xff] }
 0x24a   : > { %v2428_v18 = vpop.f32.mrf.mxu1 }
 0x24b   : > { %v2429_v19 = vadd.f32 %v4323_v48, %v2428_v18 }
 0x24d   : > { %v2720_v21 = vmax.f32 %v2429_v19, 0.0 }
 0x24e   : > { %v1839_v22 = vpop.f32.mrf.mxu0 }
 0x24f   : > { %v2846_v24 = vmax.f32 %v2844_v7, %v2720_v21  ;;  %v1840_v25 = vadd.f32 %v4263_v27, %v1839_v22 }
 0x251   : > { %v2149_v28 = vmax.f32 %v1840_v25, 0.0  ;;  %3494 = vmatmul.msk.f32.gmra.mxu0 %vm1322_vm1, %v1242_v23 }
 0x252   : > { %v2431_v29 = vpop.f32.mrf.mxu1 }
 0x253   : > { %v2432_v30 = vadd.f32 %v4323_v48, %v2431_v29  ;;  %v2258_v31 = vpack.c.bf16 %v2149_v28, %v2148_v26  ;;  %v1249_v28 = vld [vmem:[%s4201_s23 + $0x1e0] sm:$0xff] }
 0x255   : > { %v2721_v32 = vmax.f32 %v2432_v30, 0.0  ;;  %2470 = vmatmul.bf16.gmra.mxu1 %v2258_v31 }
 0x256   : > { %v1842_v33 = vpop.f32.mrf.mxu0 }
 0x257   : > { %v2847_v35 = vmax.f32 %v2845_v17, %v2721_v32  ;;  %v1843_v38 = vadd.f32 %v4263_v27, %v1842_v33  ;;  %v1258_v32 = vld [vmem:[%s4201_s23 + $0x228] sm:$0xff] }
 0x259   : > { %3495 = vmatmul.msk.f32.gmra.mxu0 %vm1322_vm1, %v1243_v34  ;;  %v2150_v44 = vmax.f32 %v1843_v38, 0.0 }
 0x25a   : > { %v2433_v36 = vpop.f32.mrf.mxu1 }
 0x25b   : > { %v2434_v37 = vadd.f32 %v4323_v48, %v2433_v36  ;;  %v1250_v36 = vld [vmem:[%s4201_s23 + $0x1e8] sm:$0xff] }
 0x25d   : > { %v2722_v39 = vmax.f32 %v2434_v37, 0.0 }
 0x25e   : > { %v1845_v40 = vpop.f32.mrf.mxu0 }
 0x25f   : > { %v2848_v42 = vmax.f32 %v2846_v24, %v2722_v39  ;;  %v1846_v43 = vadd.f32 %v4263_v27, %v1845_v40  ;;  %v1257_v24 = vld [vmem:[%s4201_s23 + $0x220] sm:$0xff] }
 0x260   : > { %3509 = vmatmul.msk.f32.gmra.mxu3 %vm1322_vm1, %v1257_v24 }
 0x261   : > { %v2151_v45 = vmax.f32 %v1846_v43, 0.0  ;;  %3496 = vmatmul.msk.f32.gmra.mxu0 %vm1322_vm1, %v1244_v41 }
 0x262   : > { %v2436_v46 = vpop.f32.mrf.mxu1 }
 0x263   : > { %v2437_v47 = vadd.f32 %v4323_v48, %v2436_v46  ;;  %v2259_v49 = vpack.c.bf16 %v2151_v45, %v2150_v44  ;;  %v1259_v44 = vld [vmem:[%s4201_s23 + $0x230] sm:$0xff] }
 0x265   : > { %v2723_v50 = vmax.f32 %v2437_v47, 0.0  ;;  %2475 = vmatmul.bf16.gmra.mxu1 %v2259_v49  ;;  %v1251_v47 = vld [vmem:[%s4201_s23 + $0x1f0] sm:$0xff] }
 0x266   : > { %v1848_v51 = vpop.f32.mrf.mxu0 }
 0x267   : > { %v2849_v54 = vmax.f32 %v2847_v35, %v2723_v50  ;;  %v1849_v57 = vadd.f32 %v4263_v27, %v1848_v51 }
 0x268   : > { %3510 = vmatmul.msk.f32.gmra.mxu3 %vm1322_vm1, %v1258_v32 }
 0x269   : > { %3497 = vmatmul.msk.f32.gmra.mxu0 %vm1322_vm1, %v1245_v52  ;;  %v2152_v0 = vmax.f32 %v1849_v57, 0.0  ;;  %v1260_v52 = vld [vmem:[%s4201_s23 + $0x238] sm:$0xff] }
 0x26a   : > { %v2438_v55 = vpop.f32.mrf.mxu1  ;;  %v1252_v57 = vld [vmem:[%s4201_s23 + $0x1f8] sm:$0xff] }
 0x26b   : > { %v2439_v56 = vadd.f32 %v4323_v48, %v2438_v55 }
 0x26d   : > { %v2724_v58 = vmax.f32 %v2439_v56, 0.0 }
 0x26e   : > { %v1851_v60 = vpop.f32.mrf.mxu0 }
 0x26f   : > { %v2850_v62 = vmax.f32 %v2848_v42, %v2724_v58  ;;  %v1852_v63 = vadd.f32 %v4263_v27, %v1851_v60 }
 0x270   : > { %3511 = vmatmul.msk.f32.gmra.mxu3 %vm1322_vm1, %v1259_v44 }
 0x271   : > { %v2153_v1 = vmax.f32 %v1852_v63, 0.0  ;;  %3498 = vmatmul.msk.f32.gmra.mxu0 %vm1322_vm1, %v1246_v61 }
 0x272   : > { %v2441_v2 = vpop.f32.mrf.mxu1 }
 0x273   : > { %v2442_v3 = vadd.f32 %v4323_v48, %v2441_v2  ;;  %v2260_v4 = vpack.c.bf16 %v2153_v1, %v2152_v0  ;;  %v1261_v2 = vld [vmem:[%s4201_s23 + $0x240] sm:$0xff] }
 0x275   : > { %v2725_v6 = vmax.f32 %v2442_v3, 0.0  ;;  %2480 = vmatmul.bf16.gmra.mxu1 %v2260_v4 }
 0x276   : > { %v1854_v7 = vpop.f32.mrf.mxu0 }
 0x277   : > { %v2851_v9 = vmax.f32 %v2849_v54, %v2725_v6  ;;  %v1855_v13 = vadd.f32 %v4263_v27, %v1854_v7 }
 0x278   : > { %3512 = vmatmul.msk.f32.gmra.mxu3 %vm1322_vm1, %v1260_v52 }
 0x279   : > { %3499 = vmatmul.msk.f32.gmra.mxu0 %vm1322_vm1, %v1247_v8  ;;  %v2154_v19 = vmax.f32 %v1855_v13, 0.0  ;;  %v1254_v13 = vld [vmem:[%s4201_s23 + $0x208] sm:$0xff] }
 0x27a   : > { %v2443_v10 = vpop.f32.mrf.mxu1 }
 0x27b   : > { %v2444_v11 = vadd.f32 %v4323_v48, %v2443_v10 }
 0x27d   : > { %v2726_v14 = vmax.f32 %v2444_v11, 0.0 }
 0x27e   : > { %v1857_v15 = vpop.f32.mrf.mxu0 }
 0x27f   : > { %v2852_v17 = vmax.f32 %v2850_v62, %v2726_v14  ;;  %v1858_v18 = vadd.f32 %v4263_v27, %v1857_v15 }
 0x280   : > { %3513 = vmatmul.msk.f32.gmra.mxu3 %vm1322_vm1, %v1261_v2 }
 0x281   : > { %v2155_v20 = vmax.f32 %v1858_v18, 0.0  ;;  %3500 = vmatmul.msk.f32.gmra.mxu0 %vm1322_vm1, %v1248_v16 }
 0x282   : > { %v2446_v21 = vpop.f32.mrf.mxu1 }
 0x283   : > { %v2261_v22 = vpack.c.bf16 %v2155_v20, %v2154_v19  ;;  %v2447_v23 = vadd.f32 %v4323_v48, %v2446_v21  ;;  %v1263_v21 = vld [vmem:[%s4201_s23 + $0x250] sm:$0xff] }
 0x285   : > { %v2727_v25 = vmax.f32 %v2447_v23, 0.0  ;;  %2485 = vmatmul.bf16.gmra.mxu1 %v2261_v22 }
 0x286   : > { %v1860_v26 = vpop.f32.mrf.mxu0 }
 0x287   : > { %v2853_v29 = vmax.f32 %v2851_v9, %v2727_v25  ;;  %v1861_v33 = vadd.f32 %v4263_v27, %v1860_v26  ;;  %v1262_v9 = vld [vmem:[%s4201_s23 + $0x248] sm:$0xff] }
 0x288   : > { %3514 = vmatmul.msk.f32.gmra.mxu3 %vm1322_vm1, %v1262_v9 }
 0x289   : > { %3501 = vmatmul.msk.f32.gmra.mxu0 %vm1322_vm1, %v1249_v28  ;;  %v2156_v39 = vmax.f32 %v1861_v33, 0.0  ;;  %v1264_v28 = vld [vmem:[%s4201_s23 + $0x258] sm:$0xff] }
 0x28a   : > { %v2448_v30 = vpop.f32.mrf.mxu1 }
 0x28b   : > { %v2449_v31 = vadd.f32 %v4323_v48, %v2448_v30 }
 0x28d   : > { %v2728_v34 = vmax.f32 %v2449_v31, 0.0 }
 0x28e   : > { %v1863_v35 = vpop.f32.mrf.mxu0 }
 0x28f   : > { %v2854_v37 = vmax.f32 %v2852_v17, %v2728_v34  ;;  %v1864_v38 = vadd.f32 %v4263_v27, %v1863_v35 }
 0x290   : > { %3515 = vmatmul.msk.f32.gmra.mxu3 %vm1322_vm1, %v1263_v21 }
 0x291   : > { %v2157_v40 = vmax.f32 %v1864_v38, 0.0  ;;  %3502 = vmatmul.msk.f32.gmra.mxu0 %vm1322_vm1, %v1250_v36 }
 0x292   : > { %v2451_v41 = vpop.f32.mrf.mxu1 }
 0x293   : > { %v2262_v42 = vpack.c.bf16 %v2157_v40, %v2156_v39  ;;  %v2452_v43 = vadd.f32 %v4323_v48, %v2451_v41  ;;  %v1265_v39 = vld [vmem:[%s4201_s23 + $0x260] sm:$0xff] }
 0x295   : > { %v2729_v45 = vmax.f32 %v2452_v43, 0.0  ;;  %2490 = vmatmul.bf16.gmra.mxu1 %v2262_v42 }
 0x296   : > { %v1866_v46 = vpop.f32.mrf.mxu0 }
 0x297   : > { %v2855_v49 = vmax.f32 %v2853_v29, %v2729_v45  ;;  %v1867_v54 = vadd.f32 %v4263_v27, %v1866_v46  ;;  %v1266_v45 = vld [vmem:[%s4201_s23 + $0x268] sm:$0xff] }
 0x298   : > { %3516 = vmatmul.msk.f32.gmra.mxu3 %vm1322_vm1, %v1264_v28 }
 0x299   : > { %3503 = vmatmul.msk.f32.gmra.mxu0 %vm1322_vm1, %v1251_v47  ;;  %v2158_v61 = vmax.f32 %v1867_v54, 0.0 }
 0x29a   : > { %v2453_v50 = vpop.f32.mrf.mxu1 }
 0x29b   : > { %v2454_v51 = vadd.f32 %v4323_v48, %v2453_v50 }
 0x29d   : > { %v2730_v55 = vmax.f32 %v2454_v51, 0.0 }
 0x29e   : > { %v1869_v56 = vpop.f32.mrf.mxu0 }
 0x29f   : > { %v2856_v58 = vmax.f32 %v2854_v37, %v2730_v55  ;;  %v1870_v60 = vadd.f32 %v4263_v27, %v1869_v56 }
 0x2a0   : > { %3517 = vmatmul.msk.f32.gmra.mxu3 %vm1322_vm1, %v1265_v39 }
 0x2a1   : > { %v2159_v62 = vmax.f32 %v1870_v60, 0.0  ;;  %3504 = vmatmul.msk.f32.gmra.mxu0 %vm1322_vm1, %v1252_v57 }
 0x2a2   : > { %v2456_v63 = vpop.f32.mrf.mxu1 }
 0x2a3   : > { %v2263_v0 = vpack.c.bf16 %v2159_v62, %v2158_v61  ;;  %v2457_v1 = vadd.f32 %v4323_v48, %v2456_v63 }
 0x2a5   : > { %v2731_v3 = vmax.f32 %v2457_v1, 0.0  ;;  %2495 = vmatmul.bf16.gmra.mxu1 %v2263_v0  ;;  %v1268_v1 = vld [vmem:[%s4201_s23 + $0x278] sm:$0xff] }
 0x2a6   : > { %v1872_v4 = vpop.f32.mrf.mxu0 }
 0x2a7   : > { %v2857_v6 = vmax.f32 %v2855_v49, %v2731_v3  ;;  %v1873_v10 = vadd.f32 %v4263_v27, %v1872_v4 }
 0x2a8   : > { %3518 = vmatmul.msk.f32.gmra.mxu3 %vm1322_vm1, %v1266_v45 }
 0x2a9   : > { %3505 = vmatmul.msk.f32.gmra.mxu0 %vm1322_vm1, %v1253_v5  ;;  %v2160_v16 = vmax.f32 %v1873_v10, 0.0 }
 0x2aa   : > { %v2458_v7 = vpop.f32.mrf.mxu1 }
 0x2ab   : > { %v2459_v8 = vadd.f32 %v4323_v48, %v2458_v7 }
 0x2ad   : > { %v2732_v11 = vmax.f32 %v2459_v8, 0.0 }
 0x2ae   : > { %v1875_v12 = vpop.f32.mrf.mxu0 }
 0x2af   : > { %v2858_v14 = vmax.f32 %v2856_v58, %v2732_v11  ;;  %v1876_v15 = vadd.f32 %v4263_v27, %v1875_v12  ;;  %v1267_v58 = vld [vmem:[%s4201_s23 + $0x270] sm:$0xff]  ;;  %v1269_v12 = vld [vmem:[%s4201_s23 + $0x280] sm:$0xff] }
 0x2b0   : > { %3519 = vmatmul.msk.f32.gmra.mxu3 %vm1322_vm1, %v1267_v58  ;;  %v1274_v58 = vld [vmem:[%s4201_s23 + $0x2a8] sm:$0xff] }
 0x2b1   : > { %v2161_v17 = vmax.f32 %v1876_v15, 0.0  ;;  %3506 = vmatmul.msk.f32.gmra.mxu0 %vm1322_vm1, %v1254_v13 }
 0x2b2   : > { %v2461_v18 = vpop.f32.mrf.mxu1 }
 0x2b3   : > { %v2264_v19 = vpack.c.bf16 %v2161_v17, %v2160_v16  ;;  %v2462_v20 = vadd.f32 %v4323_v48, %v2461_v18  ;;  %v1270_v18 = vld [vmem:[%s4201_s23 + $0x288] sm:$0xff] }
 0x2b5   : > { %v2733_v22 = vmax.f32 %v2462_v20, 0.0  ;;  %2500 = vmatmul.bf16.gmra.mxu1 %v2264_v19 }
 0x2b6   : > { %v1878_v23 = vpop.f32.mrf.mxu0 }
 0x2b7   : > { %v2859_v24 = vmax.f32 %v2857_v6, %v2733_v22  ;;  %v1879_v29 = vadd.f32 %v4263_v27, %v1878_v23 }
 0x2b8   : > { %3520 = vmatmul.msk.f32.gmra.mxu3 %vm1322_vm1, %v1268_v1 }
 0x2b9   : > { %v2162_v34 = vmax.f32 %v1879_v29, 0.0 }
 0x2ba   : > { %v2463_v25 = vpop.f32.mrf.mxu1 }
 0x2bb   : > { %v2464_v26 = vadd.f32 %v4323_v48, %v2463_v25 }
 0x2bd   : > { %v2734_v30 = vmax.f32 %v2464_v26, 0.0 }
 0x2be   : > { %v1881_v31 = vpop.f32.mrf.mxu0 }
 0x2bf   : > { %v2860_v32 = vmax.f32 %v2858_v14, %v2734_v30  ;;  %v1882_v33 = vadd.f32 %v4263_v27, %v1881_v31  ;;  %v1271_v30 = vld [vmem:[%s4201_s23 + $0x290] sm:$0xff] }
 0x2c0   : > { %3521 = vmatmul.msk.f32.gmra.mxu3 %vm1322_vm1, %v1269_v12 }
 0x2c1   : > { %v2163_v35 = vmax.f32 %v1882_v33, 0.0 }
 0x2c2   : > { %v2466_v36 = vpop.f32.mrf.mxu1 }
 0x2c3   : > { %v2265_v37 = vpack.c.bf16 %v2163_v35, %v2162_v34  ;;  %v2467_v38 = vadd.f32 %v4323_v48, %v2466_v36  ;;  %v4512_v34 = vpop.f32.mrf.mxu3 }
 0x2c5   : > { %v2735_v40 = vmax.f32 %v2467_v38, 0.0  ;;  %2505 = vmatmul.bf16.gmra.mxu1 %v2265_v37  ;;  %v1272_v37 = vld [vmem:[%s4201_s23 + $0x298] sm:$0xff] }
 0x2c6   : > { %v1884_v41 = vpop.f32.mrf.mxu0 }
 0x2c7   : > { %v2861_v42 = vmax.f32 %v2859_v24, %v2735_v40  ;;  %v1885_v46 = vadd.f32 %v4263_v27, %v1884_v41 }
 0x2c8   : > { %3522 = vmatmul.msk.f32.gmra.mxu3 %vm1322_vm1, %v1270_v18 }
 0x2c9   : > { %v2164_v52 = vmax.f32 %v1885_v46, 0.0 }
 0x2ca   : > { %v2468_v43 = vpop.f32.mrf.mxu1 }
 0x2cb   : > { %v2469_v44 = vadd.f32 %v4323_v48, %v2468_v43  ;;  %v4519_v43 = vpop.f32.mrf.mxu3 }
 0x2cd   : > { %v2736_v47 = vmax.f32 %v2469_v44, 0.0 }
 0x2ce   : > { %v1887_v49 = vpop.f32.mrf.mxu0 }
 0x2cf   : > { %v2862_v50 = vmax.f32 %v2860_v32, %v2736_v47  ;;  %v1888_v51 = vadd.f32 %v4263_v27, %v1887_v49 }
 0x2d0   : > { %3523 = vmatmul.msk.f32.gmra.mxu3 %vm1322_vm1, %v1271_v30 }
 0x2d1   : > { %v2165_v54 = vmax.f32 %v1888_v51, 0.0 }
 0x2d2   : > { %v2471_v55 = vpop.f32.mrf.mxu1 }
 0x2d3   : > { %v2266_v56 = vpack.c.bf16 %v2165_v54, %v2164_v52  ;;  %v2472_v57 = vadd.f32 %v4323_v48, %v2471_v55 }
 0x2d5   : > { %v2737_v60 = vmax.f32 %v2472_v57, 0.0  ;;  %2510 = vmatmul.bf16.gmra.mxu1 %v2266_v56 }
 0x2d6   : > { %v1890_v61 = vpop.f32.mrf.mxu0 }
 0x2d7   : > { %v2863_v62 = vmax.f32 %v2861_v42, %v2737_v60  ;;  %v1891_v2 = vadd.f32 %v4263_v27, %v1890_v61 }
 0x2d8   : > { %3524 = vmatmul.msk.f32.gmra.mxu3 %vm1322_vm1, %v1272_v37 }
 0x2d9   : > { %v2166_v7 = vmax.f32 %v1891_v2, 0.0 }
 0x2da   : > { %v2473_v63 = vpop.f32.mrf.mxu1 }
 0x2db   : > { %v2474_v0 = vadd.f32 %v4323_v48, %v2473_v63 }
 0x2dd   : > { %v2738_v3 = vmax.f32 %v2474_v0, 0.0 }
 0x2de   : > { %v1893_v4 = vpop.f32.mrf.mxu0 }
 0x2df   : > { %v2864_v5 = vmax.f32 %v2862_v50, %v2738_v3  ;;  %v1894_v6 = vadd.f32 %v4263_v27, %v1893_v4  ;;  %v4504_v27 = vld [vmem:[%s5288_s5] ss:$0 sm:$0xff]  ;;  %v1273_v50 = vld [vmem:[%s4201_s23 + $0x2a0] sm:$0xff] }
 0x2e0   : > { %3525 = vmatmul.msk.f32.gmra.mxu3 %vm1322_vm1, %v1273_v50 }
 0x2e1   : > { %v2167_v8 = vmax.f32 %v1894_v6, 0.0 }
 0x2e2   : > { %v2476_v9 = vpop.f32.mrf.mxu1 }
 0x2e3   : > { %v2267_v10 = vpack.c.bf16 %v2167_v8, %v2166_v7  ;;  %v2477_v11 = vadd.f32 %v4323_v48, %v2476_v9  ;;  %v4524_v55 = vpop.f32.mrf.mxu3  ;;  %v1275_v7 = vld [vmem:[%s4201_s23 + $0x2b0] sm:$0xff] }
 0x2e5   : > { %v2739_v13 = vmax.f32 %v2477_v11, 0.0  ;;  %2515 = vmatmul.bf16.gmra.mxu1 %v2267_v10 }
 0x2e6   : > { %v1896_v14 = vpop.f32.mrf.mxu0 }
 0x2e7   : > { %v2865_v15 = vmax.f32 %v2863_v62, %v2739_v13  ;;  %v1897_v19 = vadd.f32 %v4504_v27, %v1896_v14  ;;  %v1276_v14 = vld [vmem:[%s4201_s23 + $0x2b8] sm:$0xff] }
 0x2e8   : > { %3526 = vmatmul.msk.f32.gmra.mxu3 %vm1322_vm1, %v1274_v58 }
 0x2e9   : > { %v2168_v24 = vmax.f32 %v1897_v19, 0.0 }
 0x2ea   : > { %v2478_v16 = vpop.f32.mrf.mxu1 }
 0x2eb   : > { %v2479_v17 = vadd.f32 %v4323_v48, %v2478_v16  ;;  %v4531_v1 = vpop.f32.mrf.mxu3 }
 0x2ed   : > { %v2740_v20 = vmax.f32 %v2479_v17, 0.0 }
 0x2ee   : > { %v1899_v21 = vpop.f32.mrf.mxu0 }
 0x2ef   : > { %v2866_v22 = vmax.f32 %v2864_v5, %v2740_v20  ;;  %v1900_v23 = vadd.f32 %v4504_v27, %v1899_v21 }
 0x2f0   : > { %3527 = vmatmul.msk.f32.gmra.mxu3 %vm1322_vm1, %v1275_v7 }
 0x2f1   : > { %v2169_v25 = vmax.f32 %v1900_v23, 0.0 }
 0x2f2   : > { %v2481_v26 = vpop.f32.mrf.mxu1 }
 0x2f3   : > { %v2268_v28 = vpack.c.bf16 %v2169_v25, %v2168_v24  ;;  %v2482_v29 = vadd.f32 %v4323_v48, %v2481_v26  ;;  %v4536_v11 = vpop.f32.mrf.mxu3  ;;  %v1277_v26 = vld [vmem:[%s4201_s23 + $0x2c0] sm:$0xff] }
 0x2f5   : > { %v2741_v31 = vmax.f32 %v2482_v29, 0.0  ;;  %2520 = vmatmul.bf16.gmra.mxu1 %v2268_v28 }
 0x2f6   : > { %v1902_v32 = vpop.f32.mrf.mxu0 }
 0x2f7   : > { %v2867_v33 = vmax.f32 %v2865_v15, %v2741_v31  ;;  %v1903_v38 = vadd.f32 %v4504_v27, %v1902_v32 }
 0x2f8   : > { %3528 = vmatmul.msk.f32.gmra.mxu3 %vm1322_vm1, %v1276_v14 }
 0x2f9   : > { %v2170_v44 = vmax.f32 %v1903_v38, 0.0 }
 0x2fa   : > { %v2483_v35 = vpop.f32.mrf.mxu1 }
 0x2fb   : > { %v2484_v36 = vadd.f32 %v4323_v48, %v2483_v35  ;;  %v4543_v20 = vpop.f32.mrf.mxu3  ;;  %v1278_v35 = vld [vmem:[%s4201_s23 + $0x2c8] sm:$0xff] }
 0x2fd   : > { %v2742_v39 = vmax.f32 %v2484_v36, 0.0 }
 0x2fe   : > { %v1905_v40 = vpop.f32.mrf.mxu0 }
 0x2ff   : > { %v2868_v41 = vmax.f32 %v2866_v22, %v2742_v39  ;;  %v1906_v42 = vadd.f32 %v4504_v27, %v1905_v40 }
 0x300   : > { %3529 = vmatmul.msk.f32.gmra.mxu3 %vm1322_vm1, %v1277_v26  ;;  %v1939_v26 = vadd.f32 %v4504_v27, %v4536_v11 }
 0x301   : > { %v2171_v45 = vmax.f32 %v1906_v42, 0.0 }
 0x302   : > { %v2486_v46 = vpop.f32.mrf.mxu1 }
 0x303   : > { %v2269_v47 = vpack.c.bf16 %v2171_v45, %v2170_v44  ;;  %v2487_v49 = vadd.f32 %v4323_v48, %v2486_v46  ;;  %v4548_v31 = vpop.f32.mrf.mxu3 }
 0x304   : > { %v1945_v11 = vadd.f32 %v4504_v27, %v4548_v31 }
 0x305   : > { %v2743_v51 = vmax.f32 %v2487_v49, 0.0  ;;  %2525 = vmatmul.bf16.gmra.mxu1 %v2269_v47  ;;  %v1279_v49 = vld [vmem:[%s4201_s23 + $0x2d0] sm:$0xff] }
 0x306   : > { %v1908_v52 = vpop.f32.mrf.mxu0 }
 0x307   : > { %v2869_v54 = vmax.f32 %v2867_v33, %v2743_v51  ;;  %v1909_v60 = vadd.f32 %v4504_v27, %v1908_v52 }
 0x308   : > { %3530 = vmatmul.msk.f32.gmra.mxu3 %vm1322_vm1, %v1278_v35 }
 0x309   : > { %v2172_v2 = vmax.f32 %v1909_v60, 0.0  ;;  %v1280_v60 = vld [vmem:[%s4201_s23 + $0x2d8] sm:$0xff] }
 0x30a   : > { %v2488_v56 = vpop.f32.mrf.mxu1 }
 0x30b   : > { %v2489_v57 = vadd.f32 %v4323_v48, %v2488_v56  ;;  %v1927_v56 = vadd.f32 %v4504_v27, %v4512_v34 }
 0x30d   : > { %v2744_v61 = vmax.f32 %v2489_v57, 0.0  ;;  %v1930_v57 = vadd.f32 %v4504_v27, %v4519_v43 }
 0x30e   : > { %v1911_v62 = vpop.f32.mrf.mxu0 }
 0x30f   : > { %v2870_v63 = vmax.f32 %v2868_v41, %v2744_v61  ;;  %v1912_v0 = vadd.f32 %v4504_v27, %v1911_v62  ;;  %v4555_v41 = vpop.f32.mrf.mxu3  ;;  %v2178_v62 = vmax.f32 %v1927_v56, 0.0 }
 0x310   : > { %3531 = vmatmul.msk.f32.gmra.mxu3 %vm1322_vm1, %v1279_v49 }
 0x311   : > { %v2173_v3 = vmax.f32 %v1912_v0, 0.0 }
 0x312   : > { %v2491_v4 = vpop.f32.mrf.mxu1 }
 0x313   : > { %v2270_v5 = vpack.c.bf16 %v2173_v3, %v2172_v2  ;;  %v2492_v6 = vadd.f32 %v4323_v48, %v2491_v4  ;;  %v4572_v4 = vld [vmem:[%s5290_s24] ss:$0 sm:$0xff] }
 0x315   : > { %v2745_v8 = vmax.f32 %v2492_v6, 0.0  ;;  %2530 = vmatmul.bf16.gmra.mxu1 %v2270_v5  ;;  %v1281_v5 = vld [vmem:[%s4201_s23 + $0x2e0] sm:$0xff] }
 0x316   : > { %v1914_v9 = vpop.f32.mrf.mxu0 }
 0x317   : > { %v2871_v10 = vmax.f32 %v2869_v54, %v2745_v8  ;;  %v1915_v15 = vadd.f32 %v4504_v27, %v1914_v9  ;;  %v4560_v52 = vpop.f32.mrf.mxu3  ;;  %v1933_v9 = vadd.f32 %v4504_v27, %v4524_v55  ;;  %v1283_v55 = vld [vmem:[%s4201_s23 + $0x2f0] sm:$0xff] }
 0x318   : > { %3532 = vmatmul.msk.f32.gmra.mxu3 %vm1322_vm1, %v1280_v60  ;;  %v1289_v60 = vld [vmem:[%s4201_s23 + $0x320] sm:$0xff] }
 0x319   : > { %v2174_v21 = vmax.f32 %v1915_v15, 0.0  ;;  %v2180_v15 = vmax.f32 %v1933_v9, 0.0 }
 0x31a   : > { %v2493_v12 = vpop.f32.mrf.mxu1 }
 0x31b   : > { %v2494_v13 = vadd.f32 %v4323_v48, %v2493_v12 }
 0x31d   : > { %v2746_v16 = vmax.f32 %v2494_v13, 0.0  ;;  %v1282_v13 = vld [vmem:[%s4201_s23 + $0x2e8] sm:$0xff] }
 0x31e   : > { %v1917_v17 = vpop.f32.mrf.mxu0 }
 0x31f   : > { %v2872_v18 = vmax.f32 %v2870_v63, %v2746_v16  ;;  %v1918_v19 = vadd.f32 %v4504_v27, %v1917_v17  ;;  %v2179_v63 = vmax.f32 %v1930_v57, 0.0  ;;  %v1953_v2 = vpop.f32.mrf.mxu3 }
 0x320   : > { %3533 = vmatmul.msk.f32.gmra.mxu3 %vm1322_vm1, %v1281_v5 }
 0x321   : > { %v2175_v22 = vmax.f32 %v1918_v19, 0.0  ;;  %v2273_v43 = vpack.c.bf16 %v2179_v63, %v2178_v62 }
 0x322   : > { %v2496_v23 = vpop.f32.mrf.mxu1 }
 0x323   : > { %v2497_v24 = vadd.f32 %v4323_v48, %v2496_v23  ;;  %v2271_v25 = vpack.c.bf16 %v2175_v22, %v2174_v21 }
 0x325   : > { %v2747_v28 = vmax.f32 %v2497_v24, 0.0  ;;  %2535 = vmatmul.bf16.vlgmr.msra.gmra.mxu2 %v2271_v25 }
 0x326   : > { %v1920_v29 = vpop.f32.mrf.mxu0 }
 0x327   : > { %v2873_v30 = vmax.f32 %v2871_v10, %v2747_v28  ;;  %v1921_v36 = vadd.f32 %v4504_v27, %v1920_v29  ;;  %v4577_v7 = vpop.f32.mrf.mxu3  ;;  %v1936_v10 = vadd.f32 %v4504_v27, %v4531_v1  ;;  %v1942_v28 = vadd.f32 %v4504_v27, %v4543_v20  ;;  %v1284_v29 = vld [vmem:[%s4201_s23 + $0x2f8] sm:$0xff] }
 0x328   : > { %3534 = vmatmul.msk.f32.gmra.mxu3 %vm1322_vm1, %v1282_v13  ;;  %v1948_v20 = vadd.f32 %v4504_v27, %v4555_v41  ;;  %v1951_v41 = vadd.f32 %v4504_v27, %v4560_v52  ;;  %v1957_v63 = vadd.f32 %v4504_v27, %v4577_v7 }
 0x329   : > { %v2176_v42 = vmax.f32 %v1921_v36, 0.0  ;;  %v2181_v16 = vmax.f32 %v1936_v10, 0.0  ;;  %v1292_v10 = vld [vmem:[%s4201_s23 + $0x338] sm:$0xff] }
 0x32a   : > { %v2498_v32 = vpop.f32.mrf.mxu1 }
 0x32b   : > { %v2499_v33 = vadd.f32 %v4323_v48, %v2498_v32  ;;  %v2274_v22 = vpack.c.bf16 %v2181_v16, %v2180_v15  ;;  %v2183_v32 = vmax.f32 %v1942_v28, 0.0 }
 0x32d   : > { %v2748_v37 = vmax.f32 %v2499_v33, 0.0 }
 0x32e   : > { %v1923_v38 = vpop.f32.mrf.mxu0 }
 0x32f   : > { %v2874_v39 = vmax.f32 %v2872_v18, %v2748_v37  ;;  %v1924_v40 = vadd.f32 %v4504_v27, %v1923_v38  ;;  %v1959_v18 = vpop.f32.mrf.mxu3  ;;  %v1285_v37 = vld [vmem:[%s4201_s23 + $0x300] sm:$0xff] }
 0x330   : > { %3535 = vmatmul.msk.f32.gmra.mxu3 %vm1322_vm1, %v1283_v55 }
 0x331   : > { %v2177_v44 = vmax.f32 %v1924_v40, 0.0  ;;  %v1286_v40 = vld [vmem:[%s4201_s23 + $0x308] sm:$0xff] }
 0x332   : > { %v2501_v45 = vpop.f32.mrf.mxu1 }
 0x333   : > { %v2502_v46 = vadd.f32 %v4323_v48, %v2501_v45  ;;  %v2272_v47 = vpack.c.bf16 %v2177_v44, %v2176_v42  ;;  %v2184_v42 = vmax.f32 %v1945_v11, 0.0  ;;  %v2185_v44 = vmax.f32 %v1948_v20, 0.0 }
 0x335   : > { %v2749_v50 = vmax.f32 %v2502_v46, 0.0  ;;  %2540 = vmatmul.bf16.gmra.mxu2 %v2272_v47  ;;  %v2276_v46 = vpack.c.bf16 %v2185_v44, %v2184_v42  ;;  %v1287_v47 = vld [vmem:[%s4201_s23 + $0x310] sm:$0xff] }
 0x337   : > { %v2875_v51 = vmax.f32 %v2873_v30, %v2749_v50  ;;  %v1962_v24 = vpop.f32.mrf.mxu3  ;;  %v2182_v30 = vmax.f32 %v1939_v26, 0.0  ;;  %v1954_v50 = vadd.f32 %v4504_v27, %v1953_v2  ;;  %v1290_v2 = vld [vmem:[%s4201_s23 + $0x328] sm:$0xff]  ;;  %v1293_v26 = vld [vmem:[%s4201_s23 + $0x340] sm:$0xff] }
 0x338   : > { %3536 = vmatmul.msk.f32.gmra.mxu3 %vm1322_vm1, %v1284_v29  ;;  %v1963_v9 = vadd.f32 %v4504_v27, %v1962_v24 }
 0x339   : > { %v2275_v36 = vpack.c.bf16 %v2183_v32, %v2182_v30  ;;  %v2187_v56 = vmax.f32 %v1954_v50, 0.0 }
 0x33a   : > { %v2503_v54 = vpop.f32.mrf.mxu1  ;;  %v2190_v15 = vmax.f32 %v1963_v9, 0.0 }
 0x33b   : > { %v2504_v58 = vadd.f32 %v4323_v48, %v2503_v54  ;;  %v2186_v54 = vmax.f32 %v1951_v41, 0.0 }
 0x33d   : > { %v2750_v61 = vmax.f32 %v2504_v58, 0.0 }
 0x33f   : > { %v2876_v0 = vmax.f32 %v2874_v39, %v2750_v61  ;;  %v1965_v33 = vpop.f32.mrf.mxu3  ;;  %v2277_v61 = vpack.c.bf16 %v2187_v56, %v2186_v54 }
 0x340   : > { %3537 = vmatmul.msk.f32.gmra.mxu3 %vm1322_vm1, %v1285_v37  ;;  %v1966_v7 = vadd.f32 %v4504_v27, %v1965_v33 }
 0x342   : > { %v2506_v3 = vpop.f32.mrf.mxu1  ;;  %v2191_v16 = vmax.f32 %v1966_v7, 0.0 }
 0x343   : > { %v2507_v34 = vadd.f32 %v4572_v4, %v2506_v3  ;;  %v2188_v3 = vmax.f32 %v1957_v63, 0.0 }
 0x344   : > { %v2279_v24 = vpack.c.bf16 %v2191_v16, %v2190_v15  ;;  %v1296_v15 = vld [vmem:[%s4201_s23 + $0x358] sm:$0xff] }
 0x345   : > { %v2751_v48 = vmax.f32 %v2507_v34, 0.0  ;;  %2545 = vmatmul.bf16.gmra.mxu2 %v2273_v43 }
 0x347   : > { %v2877_v6 = vmax.f32 %v2875_v51, %v2751_v48  ;;  %v4603_v38 = vpop.f32.mrf.mxu3  ;;  %v1288_v51 = vld [vmem:[%s4201_s23 + $0x318] sm:$0xff] }
 0x348   : > { %3538 = vmatmul.msk.f32.gmra.mxu3 %vm1322_vm1, %v1286_v40  ;;  %v1969_v44 = vadd.f32 %v4504_v27, %v4603_v38 }
 0x34a   : > { %v2508_v8 = vpop.f32.mrf.mxu1 }
 0x34b   : > { %v2509_v12 = vadd.f32 %v4572_v4, %v2508_v8 }
 0x34d   : > { %v2752_v14 = vmax.f32 %v2509_v12, 0.0 }
 0x34f   : > { %v4586_v17 = vmax.f32 %v2876_v0, %v2752_v14  ;;  %v4611_v45 = vpop.f32.mrf.mxu3  ;;  %v1960_v0 = vadd.f32 %v4504_v27, %v1959_v18 }
 0x350   : > { %3539 = vmatmul.msk.f32.gmra.mxu3 %vm1322_vm1, %v1287_v47 }
 0x351   : > { %v2189_v34 = vmax.f32 %v1960_v0, 0.0 }
 0x352   : > { %v2511_v19 = vpop.f32.mrf.mxu1 }
 0x353   : > { %v2512_v21 = vadd.f32 %v4572_v4, %v2511_v19  ;;  %v2278_v48 = vpack.c.bf16 %v2189_v34, %v2188_v3 }
 0x355   : > { %v2753_v23 = vmax.f32 %v2512_v21, 0.0  ;;  %2550 = vmatmul.bf16.gmra.mxu2 %v2274_v22 }
 0x357   : > { %v4591_v1 = vmax.f32 %v2877_v6, %v2753_v23  ;;  %v4615_v31 = vpop.f32.mrf.mxu3  ;;  %v1291_v6 = vld [vmem:[%s4201_s23 + $0x330] sm:$0xff] }
 0x358   : > { %3540 = vmatmul.msk.f32.gmra.mxu3 %vm1322_vm1, %v1288_v51  ;;  %v1294_v51 = vld [vmem:[%s4201_s23 + $0x348] sm:$0xff] }
 0x35a   : > { %v4593_v25 = vpop.f32.mrf.mxu1 }
 0x35b   : > { %v2514_v22 = vadd.f32 %v4572_v4, %v4593_v25 }
 0x35d   : > { %v2754_v32 = vmax.f32 %v2514_v22, 0.0 }
 0x35f   : > { %v4622_v58 = vpop.f32.mrf.mxu3  ;;  %v2880_v42 = vmax.f32 %v4586_v17, %v2754_v32  ;;  %v2192_v17 = vmax.f32 %v1969_v44, 0.0 }
 0x360   : > { %3541 = vmatmul.msk.f32.gmra.mxu3 %vm1322_vm1, %v1289_v60 }
 0x362   : > { %v2516_v35 = vpop.f32.mrf.mxu1 }
 0x363   : > { %v2517_v12 = vadd.f32 %v4572_v4, %v2516_v35 }
 0x365   : > { %2555 = vmatmul.bf16.gmra.mxu2 %v2275_v36  ;;  %v2755_v19 = vmax.f32 %v2517_v12, 0.0  ;;  %v1975_v12 = vadd.f32 %v4504_v27, %v4615_v31  ;;  %v1297_v31 = vld [vmem:[%s4201_s23 + $0x360] sm:$0xff] }
 0x367   : > { %v4626_v62 = vpop.f32.mrf.mxu3  ;;  %v2881_v28 = vmax.f32 %v4591_v1, %v2755_v19  ;;  %v2194_v19 = vmax.f32 %v1975_v12, 0.0 }
 0x368   : > { %3542 = vmatmul.msk.f32.gmra.mxu3 %vm1322_vm1, %v1290_v2 }
 0x36a   : > { %v2518_v39 = vpop.f32.mrf.mxu1 }
 0x36b   : > { %v2519_v29 = vadd.f32 %v4572_v4, %v2518_v39 }
 0x36d   : > { %v2756_v20 = vmax.f32 %v2519_v29, 0.0 }
 0x36f   : > { %v4633_v43 = vpop.f32.mrf.mxu3  ;;  %v2882_v54 = vmax.f32 %v2880_v42, %v2756_v20 }
 0x370   : > { %3543 = vmatmul.msk.f32.gmra.mxu3 %vm1322_vm1, %v1291_v6 }
 0x372   : > { %v2521_v49 = vpop.f32.mrf.mxu1 }
 0x373   : > { %v2522_v14 = vadd.f32 %v4572_v4, %v2521_v49 }
 0x375   : > { %2560 = vmatmul.bf16.gmra.mxu2 %v2276_v46  ;;  %v2757_v55 = vmax.f32 %v2522_v14, 0.0  ;;  %v1972_v46 = vadd.f32 %v4504_v27, %v4611_v45 }
 0x377   : > { %v4637_v8 = vpop.f32.mrf.mxu3  ;;  %v2883_v33 = vmax.f32 %v2881_v28, %v2757_v55 }
 0x378   : > { %3544 = vmatmul.msk.f32.gmra.mxu3 %vm1322_vm1, %v1292_v10 }
 0x37a   : > { %v2523_v57 = vpop.f32.mrf.mxu1 }
 0x37b   : > { %v2524_v35 = vadd.f32 %v4572_v4, %v2523_v57 }
 0x37d   : > { %v2758_v47 = vmax.f32 %v2524_v35, 0.0  ;;  %v1984_v35 = vadd.f32 %v4504_v27, %v4633_v43 }
 0x37f   : > { %v4645_v18 = vpop.f32.mrf.mxu3  ;;  %v2884_v60 = vmax.f32 %v2882_v54, %v2758_v47 }
 0x380   : > { %3545 = vmatmul.msk.f32.gmra.mxu3 %vm1322_vm1, %v1293_v26 }
 0x382   : > { %v2526_v52 = vpop.f32.mrf.mxu1 }
 0x383   : > { %v2527_v21 = vadd.f32 %v4572_v4, %v2526_v52 }
 0x385   : > { %2565 = vmatmul.bf16.gmra.mxu2 %v2277_v61  ;;  %v2759_v30 = vmax.f32 %v2527_v21, 0.0  ;;  %v2193_v61 = vmax.f32 %v1972_v46, 0.0 }
 0x387   : > { %v4656_v11 = vpop.f32.mrf.mxu3  ;;  %v2885_v40 = vmax.f32 %v2883_v33, %v2759_v30  ;;  %v2280_v34 = vpack.c.bf16 %v2193_v61, %v2192_v17  ;;  %v1981_v33 = vadd.f32 %v4504_v27, %v4626_v62  ;;  %v1300_v17 = vld [vmem:[%s4201_s23 + $0x378] sm:$0xff] }
 0x388   : > { %3546 = vmatmul.msk.f32.gmra.mxu3 %vm1322_vm1, %v1294_v51 }
 0x38a   : > { %v2528_v5 = vpop.f32.mrf.mxu1 }
 0x38b   : > { %v2529_v1 = vadd.f32 %v4572_v4, %v2528_v5  ;;  %v1295_v5 = vld [vmem:[%s4201_s23 + $0x350] sm:$0xff] }
 0x38d   : > { %v2760_v56 = vmax.f32 %v2529_v1, 0.0  ;;  %v2197_v1 = vmax.f32 %v1984_v35, 0.0 }
 0x38f   : > { %v4668_v63 = vpop.f32.mrf.mxu3  ;;  %v2886_v45 = vmax.f32 %v2884_v60, %v2760_v56  ;;  %v1987_v56 = vadd.f32 %v4504_v27, %v4637_v8 }
 0x390   : > { %3547 = vmatmul.msk.f32.gmra.mxu3 %vm1322_vm1, %v1295_v5  ;;  %v1301_v5 = vld [vmem:[%s4201_s23 + $0x380] sm:$0xff] }
 0x392   : > { %v2531_v13 = vpop.f32.mrf.mxu1 }
 0x393   : > { %v2532_v23 = vadd.f32 %v4572_v4, %v2531_v13  ;;  %v1978_v13 = vadd.f32 %v4504_v27, %v4622_v58 }
 0x395   : > { %2570 = vmatmul.bf16.gmra.mxu2 %v2278_v48  ;;  %v2761_v36 = vmax.f32 %v2532_v23, 0.0  ;;  %v2195_v21 = vmax.f32 %v1978_v13, 0.0  ;;  %v1302_v13 = vld [vmem:[%s4201_s23 + $0x388] sm:$0xff] }
 0x397   : > { %v2887_v49 = vmax.f32 %v2885_v40, %v2761_v36  ;;  %v4673_v7 = vpop.f32.mrf.mxu3  ;;  %v2281_v28 = vpack.c.bf16 %v2195_v21, %v2194_v19  ;;  %v2196_v40 = vmax.f32 %v1981_v33, 0.0 }
 0x398   : > { %3548 = vmatmul.msk.f32.gmra.mxu3 %vm1322_vm1, %v1296_v15 }
 0x399   : > { %v2282_v47 = vpack.c.bf16 %v2197_v1, %v2196_v40 }
 0x39a   : > { %v2533_v25 = vpop.f32.mrf.mxu1 }
 0x39b   : > { %v2534_v41 = vadd.f32 %v4572_v4, %v2533_v25 }
 0x39d   : > { %v2762_v52 = vmax.f32 %v2534_v41, 0.0 }
 0x39f   : > { %v2888_v2 = vmax.f32 %v2886_v45, %v2762_v52  ;;  %v4681_v23 = vpop.f32.mrf.mxu3  ;;  %v2198_v52 = vmax.f32 %v1987_v56, 0.0  ;;  %v1306_v56 = vld [vmem:[%s4201_s23 + $0x3a8] sm:$0xff] }
 0x3a0   : > { %3549 = vmatmul.msk.f32.gmra.mxu3 %vm1322_vm1, %v1297_v31  ;;  %v2002_v33 = vadd.f32 %v4504_v27, %v4681_v23 }
 0x3a2   : > { %v2203_v40 = vmax.f32 %v2002_v33, 0.0 }
 0x3a5   : > { %2575 = vmatmul.bf16.gmra.mxu2 %v2279_v24 }
 0x3a7   : > { %v4690_v30 = vpop.f32.mrf.mxu3 }
 0x3a8   : > { %v2536_v37 = vpop.f32.mrf.mxu2 }
 0x3a9   : > { %v2537_v39 = vadd.f32 %v4572_v4, %v2536_v37  ;;  %v1298_v37 = vld [vmem:[%s4201_s23 + $0x368] sm:$0xff] }
 0x3aa   : > { %3550 = vmatmul.msk.f32.gmra.mxu3 %vm1322_vm1, %v1298_v37 }
 0x3ab   : > { %v2763_v50 = vmax.f32 %v2537_v39, 0.0 }
 0x3ad   : > { %v2889_v57 = vmax.f32 %v2887_v49, %v2763_v50  ;;  %v1299_v49 = vld [vmem:[%s4201_s23 + $0x370] sm:$0xff] }
 0x3af   : > { %v4703_v62 = vpop.f32.mrf.mxu3 }
 0x3b0   : > { %v2538_v38 = vpop.f32.mrf.mxu2 }
 0x3b1   : > { %v2539_v0 = vadd.f32 %v4572_v4, %v2538_v38 }
 0x3b2   : > { %3551 = vmatmul.msk.f32.gmra.mxu3 %vm1322_vm1, %v1299_v49 }
 0x3b3   : > { %v2764_v3 = vmax.f32 %v2539_v0, 0.0 }
 0x3b5   : > { %v2890_v48 = vmax.f32 %v2888_v2, %v2764_v3  ;;  %2580 = vmatmul.bf16.gmra.mxu2 %v2280_v34 }
 0x3b7   : > { %v2891_v6 = vmax.f32 %v2889_v57, %v2890_v48  ;;  %v4708_v51 = vpop.f32.mrf.mxu3  ;;  %v1990_v57 = vadd.f32 %v4504_v27, %v4645_v18 }
 0x3b8   : > { %v2541_v9 = vpop.f32.mrf.mxu2 }
 0x3b9   : > { %v2892_v10 = vrot.slane %v2891_v6, 4  ;;  %v4688_v58 = vadd.f32 %v4572_v4, %v2541_v9  ;;  %v2199_v38 = vmax.f32 %v1990_v57, 0.0  ;;  %v1993_v9 = vadd.f32 %v4504_v27, %v4656_v11 }
 0x3ba   : > { %3552 = vmatmul.msk.f32.gmra.mxu3 %vm1322_vm1, %v1300_v17 }
 0x3bb   : > { %v2893_v14 = vmax.f32 %v2891_v6, %v2892_v10  ;;  %v2765_v36 = vmax.f32 %v4688_v58, 0.0  ;;  %v2283_v34 = vpack.c.bf16 %v2199_v38, %v2198_v52  ;;  %v1996_v10 = vadd.f32 %v4504_v27, %v4668_v63 }
 0x3bc   : > { %v2200_v15 = vmax.f32 %v1993_v9, 0.0  ;;  %v1308_v9 = vld [vmem:[%s4201_s23 + $0x3b8] sm:$0xff] }
 0x3bd   : > { %v2894_v16 = vrot.slane %v2893_v14, 2 }
 0x3bf   : > { %v2895_v22 = vmax.f32 %v2893_v14, %v2894_v16  ;;  %v4717_v0 = vpop.f32.mrf.mxu3  ;;  %v2201_v16 = vmax.f32 %v1996_v10, 0.0 }
 0x3c0   : > { %v2543_v55 = vpop.f32.mrf.mxu2 }
 0x3c1   : > { %v2896_v24 = vrot.slane %v2895_v22, 1  ;;  %v2544_v39 = vadd.f32 %v4572_v4, %v2543_v55 }
 0x3c2   : > { %3553 = vmatmul.msk.f32.gmra.mxu3 %vm1322_vm1, %v1301_v5 }
 0x3c3   : > { %v4683_v26 = vmax.f32 %v2895_v22, %v2896_v24  ;;  %v2766_v43 = vmax.f32 %v2544_v39, 0.0  ;;  %v2284_v24 = vpack.c.bf16 %v2201_v16, %v2200_v15 }
 0x3c5   : > { %2585 = vmatmul.bf16.gmra.mxu2 %v2281_v28  ;;  %v1303_v28 = vld [vmem:[%s4201_s23 + $0x390] sm:$0xff] }
 0x3c7   : > { %v4722_v48 = vpop.f32.mrf.mxu3 }
 0x3c8   : > { %v2546_v29 = vpop.f32.mrf.mxu2 }
 0x3c9   : > { %v2547_v32 = vadd.f32 %v4572_v4, %v2546_v29 }
 0x3ca   : > { %3554 = vmatmul.msk.f32.gmra.mxu3 %vm1322_vm1, %v1302_v13 }
 0x3cb   : > { %v2767_v25 = vmax.f32 %v2547_v32, 0.0  ;;  %v1999_v32 = vadd.f32 %v4504_v27, %v4673_v7 }
 0x3cd   : > { %v2898_v20 = vmax.f32 %v2765_v36, %v2767_v25  ;;  %v1304_v25 = vld [vmem:[%s4201_s23 + $0x398] sm:$0xff] }
 0x3cf   : > { %v4731_v21 = vpop.f32.mrf.mxu3 }
 0x3d0   : > { %v2548_v42 = vpop.f32.mrf.mxu2 }
 0x3d1   : > { %v2549_v44 = vadd.f32 %v4572_v4, %v2548_v42 }
 0x3d2   : > { %3555 = vmatmul.msk.f32.gmra.mxu3 %vm1322_vm1, %v1303_v28 }
 0x3d3   : > { %v2768_v46 = vmax.f32 %v2549_v44, 0.0 }
 0x3d5   : > { %v2899_v41 = vmax.f32 %v2766_v43, %v2768_v46  ;;  %2590 = vmatmul.bf16.gmra.mxu2 %v2282_v47  ;;  %v1305_v46 = vld [vmem:[%s4201_s23 + $0x3a0] sm:$0xff] }
 0x3d7   : > { %v4736_v31 = vpop.f32.mrf.mxu3 }
 0x3d8   : > { %v2551_v50 = vpop.f32.mrf.mxu2 }
 0x3d9   : > { %v2552_v54 = vadd.f32 %v4572_v4, %v2551_v50  ;;  %v2008_v50 = vadd.f32 %v4504_v27, %v4703_v62 }
 0x3da   : > { %3556 = vmatmul.msk.f32.gmra.mxu3 %vm1322_vm1, %v1304_v25 }
 0x3db   : > { %v2769_v60 = vmax.f32 %v2552_v54, 0.0  ;;  %v2205_v17 = vmax.f32 %v2008_v50, 0.0 }
 0x3dd   : > { %v2900_v61 = vmax.f32 %v2898_v20, %v2769_v60  ;;  %v2202_v20 = vmax.f32 %v1999_v32, 0.0  ;;  %v1310_v32 = vld [vmem:[%s4201_s23 + $0x3c8] sm:$0xff] }
 0x3df   : > { %v4745_v39 = vpop.f32.mrf.mxu3  ;;  %v2285_v43 = vpack.c.bf16 %v2203_v40, %v2202_v20 }
 0x3e0   : > { %v2553_v45 = vpop.f32.mrf.mxu2 }
 0x3e1   : > { %v2554_v2 = vadd.f32 %v4572_v4, %v2553_v45 }
 0x3e2   : > { %3557 = vmatmul.msk.f32.gmra.mxu3 %vm1322_vm1, %v1305_v46 }
 0x3e3   : > { %v2770_v3 = vmax.f32 %v2554_v2, 0.0 }
 0x3e5   : > { %v2901_v8 = vmax.f32 %v2899_v41, %v2770_v3  ;;  %2595 = vmatmul.bf16.gmra.mxu2 %v2283_v34  ;;  %v2005_v41 = vadd.f32 %v4504_v27, %v4690_v30  ;;  %v1307_v3 = vld [vmem:[%s4201_s23 + $0x3b0] sm:$0xff] }
 0x3e7   : > { %v4750_v47 = vpop.f32.mrf.mxu3  ;;  %v2204_v60 = vmax.f32 %v2005_v41, 0.0  ;;  %v1312_v41 = vld [vmem:[%s4201_s23 + $0x3d8] sm:$0xff] }
 0x3e8   : > { %v2556_v18 = vpop.f32.mrf.mxu2 }
 0x3e9   : > { %v2557_v6 = vadd.f32 %v4572_v4, %v2556_v18  ;;  %v2286_v2 = vpack.c.bf16 %v2205_v17, %v2204_v60  ;;  %v2014_v18 = vadd.f32 %v4504_v27, %v4717_v0 }
 0x3ea   : > { %3558 = vmatmul.msk.f32.gmra.mxu3 %vm1322_vm1, %v1306_v56 }
 0x3eb   : > { %v2771_v12 = vmax.f32 %v2557_v6, 0.0  ;;  %v2207_v13 = vmax.f32 %v2014_v18, 0.0 }
 0x3ed   : > { %v2902_v14 = vmax.f32 %v2900_v61, %v2771_v12 }
 0x3ef   : > { %v4759_v52 = vpop.f32.mrf.mxu3 }
 0x3f0   : > { %v2558_v19 = vpop.f32.mrf.mxu2 }
 0x3f1   : > { %v2559_v22 = vadd.f32 %v4572_v4, %v2558_v19 }
 0x3f2   : > { %3559 = vmatmul.msk.f32.gmra.mxu3 %vm1322_vm1, %v1307_v3 }
 0x3f3   : > { %v2772_v55 = vmax.f32 %v2559_v22, 0.0 }
 0x3f5   : > { %v2903_v11 = vmax.f32 %v2901_v8, %v2772_v55  ;;  %2600 = vmatmul.bf16.gmra.mxu2 %v2284_v24  ;;  %v2011_v8 = vadd.f32 %v4504_v27, %v4708_v51  ;;  %v1309_v55 = vld [vmem:[%s4201_s23 + $0x3c0] sm:$0xff] }
 0x3f7   : > { %v4764_v34 = vpop.f32.mrf.mxu3  ;;  %v2206_v12 = vmax.f32 %v2011_v8, 0.0  ;;  %v1314_v8 = vld [vmem:[%s4201_s23 + $0x3e8] sm:$0xff] }
 0x3f8   : > { %v2561_v63 = vpop.f32.mrf.mxu2 }
 0x3f9   : > { %v2562_v29 = vadd.f32 %v4572_v4, %v2561_v63  ;;  %v2287_v22 = vpack.c.bf16 %v2207_v13, %v2206_v12  ;;  %v2020_v63 = vadd.f32 %v4504_v27, %v4731_v21 }
 0x3fa   : > { %3560 = vmatmul.msk.f32.gmra.mxu3 %vm1322_vm1, %v1308_v9 }
 0x3fb   : > { %v2773_v35 = vmax.f32 %v2562_v29, 0.0  ;;  %v2209_v25 = vmax.f32 %v2020_v63, 0.0 }
 0x3fd   : > { %v2904_v37 = vmax.f32 %v2902_v14, %v2773_v35 }
 0x3ff   : > { %v4773_v15 = vpop.f32.mrf.mxu3 }
 0x400   : > { %v2563_v1 = vpop.f32.mrf.mxu2 }
 0x401   : > { %v2564_v42 = vadd.f32 %v4572_v4, %v2563_v1 }
 0x402   : > { %3561 = vmatmul.msk.f32.gmra.mxu3 %vm1322_vm1, %v1309_v55 }
 0x403   : > { %v2774_v44 = vmax.f32 %v2564_v42, 0.0 }
 0x405   : > { %v2905_v7 = vmax.f32 %v2903_v11, %v2774_v44  ;;  %2605 = vmatmul.bf16.gmra.mxu2 %v2285_v43  ;;  %v2017_v11 = vadd.f32 %v4504_v27, %v4722_v48  ;;  %v1311_v44 = vld [vmem:[%s4201_s23 + $0x3d0] sm:$0xff] }
 0x407   : > { %v4778_v24 = vpop.f32.mrf.mxu3  ;;  %v2208_v35 = vmax.f32 %v2017_v11, 0.0  ;;  %v1316_v11 = vld [vmem:[%s4201_s23 + $0x3f8] sm:$0xff] }
 0x408   : > { %v2566_v23 = vpop.f32.mrf.mxu2 }
 0x409   : > { %v2567_v49 = vadd.f32 %v4572_v4, %v2566_v23  ;;  %v2288_v42 = vpack.c.bf16 %v2209_v25, %v2208_v35  ;;  %v2026_v23 = vadd.f32 %v4504_v27, %v4745_v39 }
 0x40a   : > { %3562 = vmatmul.msk.f32.gmra.mxu3 %vm1322_vm1, %v1310_v32 }
 0x40b   : > { %v2775_v54 = vmax.f32 %v2567_v49, 0.0  ;;  %v2211_v56 = vmax.f32 %v2026_v23, 0.0 }
 0x40d   : > { %v2906_v57 = vmax.f32 %v2904_v37, %v2775_v54 }
 0x40f   : > { %v4787_v20 = vpop.f32.mrf.mxu3 }
 0x410   : > { %v2568_v61 = vpop.f32.mrf.mxu2 }
 0x411   : > { %v2569_v38 = vadd.f32 %v4572_v4, %v2568_v61 }
 0x412   : > { %3563 = vmatmul.msk.f32.gmra.mxu3 %vm1322_vm1, %v1311_v44  ;;  %v2041_v44 = vadd.f32 %v4504_v27, %v4778_v24 }
 0x413   : > { %v2776_v45 = vmax.f32 %v2569_v38, 0.0 }
 0x415   : > { %v2907_v30 = vmax.f32 %v2905_v7, %v2776_v45  ;;  %2610 = vmatmul.bf16.gmra.mxu2 %v2286_v2  ;;  %v2023_v7 = vadd.f32 %v4504_v27, %v4736_v31  ;;  %v1313_v45 = vld [vmem:[%s4201_s23 + $0x3e0] sm:$0xff] }
 0x417   : > { %v4792_v43 = vpop.f32.mrf.mxu3  ;;  %v2210_v54 = vmax.f32 %v2023_v7, 0.0  ;;  %v2216_v7 = vmax.f32 %v2041_v44, 0.0 }
 0x418   : > { %v2571_v62 = vpop.f32.mrf.mxu2 }
 0x419   : > { %v2572_v5 = vadd.f32 %v4572_v4, %v2571_v62  ;;  %v2289_v38 = vpack.c.bf16 %v2211_v56, %v2210_v54  ;;  %v2032_v62 = vadd.f32 %v4504_v27, %v4759_v52 }
 0x41a   : > { %3564 = vmatmul.msk.f32.gmra.mxu3 %vm1322_vm1, %v1312_v41 }
 0x41b   : > { %v2777_v6 = vmax.f32 %v2572_v5, 0.0  ;;  %v2213_v9 = vmax.f32 %v2032_v62, 0.0 }
 0x41d   : > { %v2908_v10 = vmax.f32 %v2906_v57, %v2777_v6 }
 0x41f   : > { %v4801_v60 = vpop.f32.mrf.mxu3 }
 0x420   : > { %v2573_v14 = vpop.f32.mrf.mxu2 }
 0x421   : > { %v2574_v16 = vadd.f32 %v4572_v4, %v2573_v14 }
 0x422   : > { %3565 = vmatmul.msk.f32.gmra.mxu3 %vm1322_vm1, %v1313_v45 }
 0x423   : > { %v2778_v19 = vmax.f32 %v2574_v16, 0.0 }
 0x425   : > { %v2909_v51 = vmax.f32 %v2907_v30, %v2778_v19  ;;  %2615 = vmatmul.bf16.gmra.mxu2 %v2287_v22  ;;  %v2029_v30 = vadd.f32 %v4504_v27, %v4750_v47  ;;  %v1315_v19 = vld [vmem:[%s4201_s23 + $0x3f0] sm:$0xff] }
 0x427   : > { %v4806_v2 = vpop.f32.mrf.mxu3  ;;  %v2212_v6 = vmax.f32 %v2029_v30, 0.0 }
 0x428   : > { %v2576_v0 = vpop.f32.mrf.mxu2 }
 0x429   : > { %v2577_v28 = vadd.f32 %v4572_v4, %v2576_v0  ;;  %v2290_v16 = vpack.c.bf16 %v2213_v9, %v2212_v6  ;;  %v2038_v0 = vadd.f32 %v4504_v27, %v4773_v15 }
 0x42a   : > { %3566 = vmatmul.msk.f32.gmra.mxu3 %vm1322_vm1, %v1314_v8 }
 0x42b   : > { %v2779_v29 = vmax.f32 %v2577_v28, 0.0  ;;  %v2215_v32 = vmax.f32 %v2038_v0, 0.0 }
 0x42d   : > { %v2910_v33 = vmax.f32 %v2908_v10, %v2779_v29 }
 0x42f   : > { %v4815_v12 = vpop.f32.mrf.mxu3 }
 0x430   : > { %v2578_v37 = vpop.f32.mrf.mxu2 }
 0x431   : > { %v2579_v40 = vadd.f32 %v4572_v4, %v2578_v37 }
 0x432   : > { %3567 = vmatmul.msk.f32.gmra.mxu3 %vm1322_vm1, %v1315_v19 }
 0x433   : > { %v2780_v1 = vmax.f32 %v2579_v40, 0.0 }
 0x435   : > { %v2911_v48 = vmax.f32 %v2909_v51, %v2780_v1  ;;  %2620 = vmatmul.bf16.gmra.mxu2 %v2288_v42  ;;  %v2035_v51 = vadd.f32 %v4504_v27, %v4764_v34 }
 0x437   : > { %v4820_v22 = vpop.f32.mrf.mxu3  ;;  %v2214_v29 = vmax.f32 %v2035_v51, 0.0 }
 0x438   : > { %v2581_v21 = vpop.f32.mrf.mxu2 }
 0x439   : > { %v2582_v46 = vadd.f32 %v4572_v4, %v2581_v21  ;;  %v2291_v40 = vpack.c.bf16 %v2215_v32, %v2214_v29 }
 0x43a   : > { %3568 = vmatmul.msk.f32.gmra.mxu3 %vm1322_vm1, %v1316_v11 }
 0x43b   : > { %v2781_v49 = vmax.f32 %v2582_v46, 0.0 }
 0x43d   : > { %v2912_v50 = vmax.f32 %v2910_v33, %v2781_v49 }
 0x43f   : > { %v2061_v35 = vpop.f32.mrf.mxu3 }
 0x440   : > { %v2583_v57 = vpop.f32.mrf.mxu2 }
 0x441   : > { %v2584_v17 = vadd.f32 %v4572_v4, %v2583_v57 }
 0x443   : > { %v2782_v61 = vmax.f32 %v2584_v17, 0.0 }
 0x445   : > { %v2913_v31 = vmax.f32 %v2911_v48, %v2782_v61  ;;  %2625 = vmatmul.bf16.gmra.mxu2 %v2289_v38  ;;  %v2044_v48 = vadd.f32 %v4504_v27, %v4787_v20  ;;  %v2047_v20 = vadd.f32 %v4504_v27, %v4792_v43  ;;  %v2050_v38 = vadd.f32 %v4504_v27, %v4801_v60  ;;  %v4852_v27 = vld [vmem:[%s5288_s5] ss:$0 sm:$0xff] }
 0x446   : > { %v2053_v60 = vadd.f32 %v4852_v27, %v4806_v2  ;;  %v2062_v32 = vadd.f32 %v4852_v27, %v2061_v35 }
 0x447   : > { %v4830_v34 = vpop.f32.mrf.mxu3  ;;  %v2217_v23 = vmax.f32 %v2044_v48, 0.0 }
 0x448   : > { %v2586_v39 = vpop.f32.mrf.mxu2  ;;  %v2220_v19 = vmax.f32 %v2053_v60, 0.0 }
 0x449   : > { %v2587_v3 = vadd.f32 %v4572_v4, %v2586_v39  ;;  %v2292_v56 = vpack.c.bf16 %v2217_v23, %v2216_v7  ;;  %v2218_v39 = vmax.f32 %v2047_v20, 0.0 }
 0x44b   : > { %v2783_v5 = vmax.f32 %v2587_v3, 0.0  ;;  %v2219_v3 = vmax.f32 %v2050_v38, 0.0 }
 0x44d   : > { %v2914_v18 = vmax.f32 %v2912_v50, %v2783_v5  ;;  %v2293_v8 = vpack.c.bf16 %v2219_v3, %v2218_v39 }
 0x44f   : > { %v2067_v41 = vpop.f32.mrf.mxu3 }
 0x450   : > { %v2588_v10 = vpop.f32.mrf.mxu2  ;;  %v2068_v35 = vadd.f32 %v4852_v27, %v2067_v41 }
 0x451   : > { %v2589_v13 = vadd.f32 %v4572_v4, %v2588_v10 }
 0x453   : > { %v2784_v14 = vmax.f32 %v2589_v13, 0.0  ;;  %v2056_v13 = vadd.f32 %v4852_v27, %v4815_v12  ;;  %v2059_v12 = vadd.f32 %v4852_v27, %v4820_v22  ;;  %v2065_v22 = vadd.f32 %v4852_v27, %v4830_v34 }
 0x455   : > { %v2915_v47 = vmax.f32 %v2913_v31, %v2784_v14  ;;  %2630 = vmatmul.bf16.gmra.mxu2 %v2290_v16 }
 0x457   : > { %v4838_v61 = vpop.f32.mrf.mxu3 }
 0x458   : > { %v2591_v52 = vpop.f32.mrf.mxu2  ;;  %v2071_v41 = vadd.f32 %v4852_v27, %v4838_v61 }
 0x459   : > { %v2592_v55 = vadd.f32 %v4572_v4, %v2591_v52 }
 0x45b   : > { %v2785_v28 = vmax.f32 %v2592_v55, 0.0 }
 0x45d   : > { %v2916_v63 = vmax.f32 %v2914_v18, %v2785_v28 }
 0x45f   : > { %v2073_v62 = vpop.f32.mrf.mxu3 }
 0x460   : > { %v2593_v33 = vpop.f32.mrf.mxu2  ;;  %v2074_v3 = vadd.f32 %v4852_v27, %v2073_v62 }
 0x461   : > { %v2594_v25 = vadd.f32 %v4572_v4, %v2593_v33 }
 0x463   : > { %v2786_v37 = vmax.f32 %v2594_v25, 0.0 }
 0x465   : > { %v2917_v1 = vmax.f32 %v2915_v47, %v2786_v37  ;;  %2635 = vmatmul.bf16.gmra.mxu2 %v2291_v40  ;;  %v2221_v47 = vmax.f32 %v2056_v13, 0.0  ;;  %v2222_v37 = vmax.f32 %v2059_v12, 0.0  ;;  %v2223_v40 = vmax.f32 %v2062_v32, 0.0 }
 0x467   : > { %v4846_v10 = vpop.f32.mrf.mxu3  ;;  %v2294_v0 = vpack.c.bf16 %v2221_v47, %v2220_v19  ;;  %v2295_v44 = vpack.c.bf16 %v2223_v40, %v2222_v37 }
 0x468   : > { %v2596_v42 = vpop.f32.mrf.mxu2  ;;  %v2077_v61 = vadd.f32 %v4852_v27, %v4846_v10 }
 0x469   : > { %v2597_v15 = vadd.f32 %v4572_v4, %v2596_v42 }
 0x46b   : > { %v2787_v21 = vmax.f32 %v2597_v15, 0.0 }
 0x46d   : > { %v2918_v46 = vmax.f32 %v2916_v63, %v2787_v21 }
 0x46f   : > { %v2079_v55 = vpop.f32.mrf.mxu3 }
 0x470   : > { %v2598_v49 = vpop.f32.mrf.mxu2  ;;  %v2080_v62 = vadd.f32 %v4852_v27, %v2079_v55 }
 0x471   : > { %v2599_v50 = vadd.f32 %v4572_v4, %v2598_v49 }
 0x473   : > { %v2788_v54 = vmax.f32 %v2599_v50, 0.0 }
 0x475   : > { %v2919_v57 = vmax.f32 %v2917_v1, %v2788_v54  ;;  %2640 = vmatmul.bf16.gmra.mxu2 %v2292_v56  ;;  %v2224_v54 = vmax.f32 %v2065_v22, 0.0  ;;  %v2225_v56 = vmax.f32 %v2068_v35, 0.0 }
 0x477   : > { %v4859_v29 = vpop.f32.mrf.mxu3  ;;  %v2296_v20 = vpack.c.bf16 %v2225_v56, %v2224_v54 }
 0x478   : > { %v2601_v17 = vpop.f32.mrf.mxu2  ;;  %v2083_v10 = vadd.f32 %v4852_v27, %v4859_v29 }
 0x479   : > { %v2602_v24 = vadd.f32 %v4572_v4, %v2601_v17 }
 0x47b   : > { %v2789_v45 = vmax.f32 %v2602_v24, 0.0 }
 0x47d   : > { %v2920_v31 = vmax.f32 %v2918_v46, %v2789_v45 }
 0x47f   : > { %v2085_v42 = vpop.f32.mrf.mxu3 }
 0x480   : > { %v2603_v30 = vpop.f32.mrf.mxu2  ;;  %v2086_v55 = vadd.f32 %v4852_v27, %v2085_v42 }
 0x481   : > { %v2604_v5 = vadd.f32 %v4572_v4, %v2603_v30 }
 0x483   : > { %v2790_v18 = vmax.f32 %v2604_v5, 0.0 }
 0x485   : > { %v2921_v6 = vmax.f32 %v2919_v57, %v2790_v18  ;;  %2645 = vmatmul.bf16.gmra.mxu2 %v2293_v8  ;;  %v2226_v8 = vmax.f32 %v2071_v41, 0.0  ;;  %v2227_v18 = vmax.f32 %v2074_v3, 0.0 }
 0x487   : > { %v4866_v7 = vpop.f32.mrf.mxu3  ;;  %v2297_v60 = vpack.c.bf16 %v2227_v18, %v2226_v8 }
 0x488   : > { %v2606_v9 = vpop.f32.mrf.mxu2 }
 0x489   : > { %v2607_v43 = vadd.f32 %v4572_v4, %v2606_v9 }
 0x48b   : > { %v2791_v14 = vmax.f32 %v2607_v43, 0.0 }
 0x48d   : > { %v2922_v16 = vmax.f32 %v2920_v31, %v2791_v14 }
 0x48f   : > { %v4872_v17 = vpop.f32.mrf.mxu3 }
 0x490   : > { %v2608_v52 = vpop.f32.mrf.mxu2 }
 0x491   : > { %v2609_v51 = vadd.f32 %v4572_v4, %v2608_v52 }
 0x493   : > { %v2792_v28 = vmax.f32 %v2609_v51, 0.0 }
 0x495   : > { %v2923_v11 = vmax.f32 %v2921_v6, %v2792_v28  ;;  %2650 = vmatmul.bf16.gmra.mxu2 %v2294_v0  ;;  %v2228_v0 = vmax.f32 %v2077_v61, 0.0  ;;  %v2229_v28 = vmax.f32 %v2080_v62, 0.0 }
 0x497   : > { %v4875_v39 = vpop.f32.mrf.mxu3  ;;  %v2298_v12 = vpack.c.bf16 %v2229_v28, %v2228_v0 }
 0x498   : > { %v2611_v63 = vpop.f32.mrf.mxu2 }
 0x499   : > { %v2612_v2 = vadd.f32 %v4572_v4, %v2611_v63 }
 0x49b   : > { %v2793_v33 = vmax.f32 %v2612_v2, 0.0 }
 0x49d   : > { %v2924_v25 = vmax.f32 %v2922_v16, %v2793_v33 }
 0x49f   : > { %v2097_v9 = vpop.f32.mrf.mxu3 }
 0x4a0   : > { %v2613_v1 = vpop.f32.mrf.mxu2 }
 0x4a1   : > { %v2614_v15 = vadd.f32 %v4572_v4, %v2613_v1 }
 0x4a3   : > { %v2794_v48 = vmax.f32 %v2614_v15, 0.0 }
 0x4a5   : > { %v2925_v21 = vmax.f32 %v2923_v11, %v2794_v48  ;;  %2655 = vmatmul.bf16.gmra.mxu2 %v2295_v44  ;;  %v2230_v48 = vmax.f32 %v2083_v10, 0.0 }
 0x4a7   : > { %v4882_v19 = vpop.f32.mrf.mxu3 }
 0x4a8   : > { %v2616_v46 = vpop.f32.mrf.mxu2 }
 0x4a9   : > { %v2617_v23 = vadd.f32 %v4572_v4, %v2616_v46 }
 0x4ab   : > { %v2795_v49 = vmax.f32 %v2617_v23, 0.0 }
 0x4ad   : > { %v2926_v50 = vmax.f32 %v2924_v25, %v2795_v49 }
 0x4af   : > { %v2103_v63 = vpop.f32.mrf.mxu3 }
 0x4b0   : > { %v2618_v57 = vpop.f32.mrf.mxu2 }
 0x4b1   : > { %v2619_v24 = vadd.f32 %v4572_v4, %v2618_v57 }
 0x4b3   : > { %v2796_v38 = vmax.f32 %v2619_v24, 0.0 }
 0x4b5   : > { %v2927_v45 = vmax.f32 %v2925_v21, %v2796_v38  ;;  %2660 = vmatmul.bf16.gmra.mxu2 %v2296_v20  ;;  %v2231_v21 = vmax.f32 %v2086_v55, 0.0  ;;  %v2089_v20 = vadd.f32 %v4852_v27, %v4866_v7  ;;  %v2092_v38 = vadd.f32 %v4852_v27, %v4872_v17 }
 0x4b6   : > { %v2095_v17 = vadd.f32 %v4852_v27, %v4875_v39  ;;  %v2104_v39 = vadd.f32 %v4852_v27, %v2103_v63 }
 0x4b7   : > { %v2106_v37 = vpop.f32.mrf.mxu3  ;;  %v2233_v41 = vmax.f32 %v2092_v38, 0.0 }
 0x4b8   : > { %v2621_v31 = vpop.f32.mrf.mxu2  ;;  %v2107_v44 = vadd.f32 %v4852_v27, %v2106_v37 }
 0x4b9   : > { %v2622_v34 = vadd.f32 %v4572_v4, %v2621_v31 }
 0x4ba   : > { %v2238_v35 = vmax.f32 %v2107_v44, 0.0 }
 0x4bb   : > { %v2797_v30 = vmax.f32 %v2622_v34, 0.0  ;;  %v2232_v34 = vmax.f32 %v2089_v20, 0.0 }
 0x4bd   : > { %v2928_v5 = vmax.f32 %v2926_v50, %v2797_v30  ;;  %v2299_v50 = vpack.c.bf16 %v2231_v21, %v2230_v48 }
 0x4bf   : > { %v2109_v23 = vpop.f32.mrf.mxu3 }
 0x4c0   : > { %v2623_v6 = vpop.f32.mrf.mxu2  ;;  %v2110_v49 = vadd.f32 %v4852_v27, %v2109_v23 }
 0x4c1   : > { %v2624_v43 = vadd.f32 %v4572_v4, %v2623_v6 }
 0x4c2   : > { %v2239_v56 = vmax.f32 %v2110_v49, 0.0 }
 0x4c3   : > { %v2798_v13 = vmax.f32 %v2624_v43, 0.0  ;;  %v4905_v43 = vld [vmem:[%s5290_s24] ss:$0 sm:$0xff] }
 0x4c4   : > { %v2303_v29 = vpack.c.bf16 %v2239_v56, %v2238_v35 }
 0x4c5   : > { %v2929_v14 = vmax.f32 %v2927_v45, %v2798_v13  ;;  %2665 = vmatmul.bf16.gmra.mxu2 %v2297_v60  ;;  %v2098_v60 = vadd.f32 %v4852_v27, %v2097_v9 }
 0x4c6   : > { %2695 = vmatmul.bf16.vlgmr.msrb.gmra.mxu3 %v2303_v29 }
 0x4c8   : > { %v2626_v16 = vpop.f32.mrf.mxu2 }
 0x4c9   : > { %v2627_v47 = vadd.f32 %v4572_v4, %v2626_v16  ;;  %v2235_v16 = vmax.f32 %v2098_v60, 0.0 }
 0x4cb   : > { %v2799_v52 = vmax.f32 %v2627_v47, 0.0 }
 0x4cd   : > { %v2930_v51 = vmax.f32 %v2928_v5, %v2799_v52  ;;  %v2300_v5 = vpack.c.bf16 %v2233_v41, %v2232_v34 }
 0x4d0   : > { %v2628_v11 = vpop.f32.mrf.mxu2 }
 0x4d1   : > { %v2629_v2 = vadd.f32 %v4572_v4, %v2628_v11  ;;  %v2101_v11 = vadd.f32 %v4852_v27, %v4882_v19 }
 0x4d3   : > { %v2800_v32 = vmax.f32 %v2629_v2, 0.0 }
 0x4d5   : > { %v2931_v33 = vmax.f32 %v2929_v14, %v2800_v32  ;;  %2670 = vmatmul.bf16.gmra.mxu2 %v2298_v12  ;;  %v2236_v12 = vmax.f32 %v2101_v11, 0.0  ;;  %v2237_v32 = vmax.f32 %v2104_v39, 0.0 }
 0x4d7   : > { %v2302_v37 = vpack.c.bf16 %v2237_v32, %v2236_v12 }
 0x4d8   : > { %v2631_v25 = vpop.f32.mrf.mxu2 }
 0x4d9   : > { %v2632_v40 = vadd.f32 %v4572_v4, %v2631_v25 }
 0x4db   : > { %v2801_v1 = vmax.f32 %v2632_v40, 0.0 }
 0x4dd   : > { %v2932_v15 = vmax.f32 %v2930_v51, %v2801_v1 }
 0x4e0   : > { %v2633_v46 = vpop.f32.mrf.mxu2 }
 0x4e1   : > { %v2634_v22 = vadd.f32 %v4572_v4, %v2633_v46 }
 0x4e3   : > { %v2802_v54 = vmax.f32 %v2634_v22, 0.0 }
 0x4e5   : > { %v2933_v57 = vmax.f32 %v2931_v33, %v2802_v54  ;;  %2675 = vmatmul.bf16.gmra.mxu2 %v2299_v50 }
 0x4e8   : > { %v2636_v42 = vpop.f32.mrf.mxu2 }
 0x4e9   : > { %v2637_v24 = vadd.f32 %v4572_v4, %v2636_v42 }
 0x4eb   : > { %v2803_v45 = vmax.f32 %v2637_v24, 0.0 }
 0x4ed   : > { %v2934_v31 = vmax.f32 %v2932_v15, %v2803_v45 }
 0x4f0   : > { %v2638_v3 = vpop.f32.mrf.mxu2 }
 0x4f1   : > { %v2639_v30 = vadd.f32 %v4572_v4, %v2638_v3  ;;  %v2234_v4 = vmax.f32 %v2095_v17, 0.0 }
 0x4f3   : > { %v2804_v8 = vmax.f32 %v2639_v30, 0.0  ;;  %v2301_v62 = vpack.c.bf16 %v2235_v16, %v2234_v4 }
 0x4f5   : > { %v2935_v18 = vmax.f32 %v2933_v57, %v2804_v8  ;;  %2680 = vmatmul.bf16.gmra.mxu2 %v2300_v5 }
 0x4f8   : > { %v2641_v6 = vpop.f32.mrf.mxu2 }
 0x4f9   : > { %v2642_v7 = vadd.f32 %v4905_v43, %v2641_v6 }
 0x4fb   : > { %v2805_v13 = vmax.f32 %v2642_v7, 0.0 }
 0x4fd   : > { %v2936_v14 = vmax.f32 %v2934_v31, %v2805_v13 }
 0x500   : > { %v2643_v47 = vpop.f32.mrf.mxu2 }
 0x501   : > { %v2644_v61 = vadd.f32 %v4905_v43, %v2643_v47 }
 0x503   : > { %v2806_v52 = vmax.f32 %v2644_v61, 0.0 }
 0x505   : > { %v2937_v51 = vmax.f32 %v2935_v18, %v2806_v52  ;;  %2685 = vmatmul.bf16.gmra.mxu2 %v2301_v62 }
 0x508   : > { %v2646_v0 = vpop.f32.mrf.mxu2 }
 0x509   : > { %v2647_v28 = vadd.f32 %v4905_v43, %v2646_v0 }
 0x50b   : > { %v2807_v9 = vmax.f32 %v2647_v28, 0.0 }
 0x50d   : > { %v2938_v2 = vmax.f32 %v2936_v14, %v2807_v9 }
 0x510   : > { %v2648_v33 = vpop.f32.mrf.mxu2 }
 0x511   : > { %v2649_v25 = vadd.f32 %v4905_v43, %v2648_v33 }
 0x513   : > { %v2808_v40 = vmax.f32 %v2649_v25, 0.0 }
 0x515   : > { %v2939_v10 = vmax.f32 %v2937_v51, %v2808_v40  ;;  %2690 = vmatmul.bf16.gmra.mxu2 %v2302_v37 }
 0x518   : > { %v2651_v55 = vpop.f32.mrf.mxu2 }
 0x519   : > { %v2652_v1 = vadd.f32 %v4905_v43, %v2651_v55 }
 0x51b   : > { %v2809_v15 = vmax.f32 %v2652_v1, 0.0 }
 0x51d   : > { %v2940_v44 = vmax.f32 %v2938_v2, %v2809_v15 }
 0x520   : > { %v2653_v48 = vpop.f32.mrf.mxu2 }
 0x521   : > { %v2654_v19 = vadd.f32 %v4905_v43, %v2653_v48 }
 0x523   : > { %v2810_v27 = vmax.f32 %v2654_v19, 0.0 }
 0x525   : > { %v2941_v63 = vmax.f32 %v2939_v10, %v2810_v27 }
 0x528   : > { %v2656_v21 = vpop.f32.mrf.mxu2 }
 0x529   : > { %v2657_v46 = vadd.f32 %v4905_v43, %v2656_v21 }
 0x52b   : > { %v2811_v23 = vmax.f32 %v2657_v46, 0.0 }
 0x52d   : > { %v2942_v22 = vmax.f32 %v2940_v44, %v2811_v23 }
 0x530   : > { %v2658_v35 = vpop.f32.mrf.mxu2 }
 0x531   : > { %v2659_v49 = vadd.f32 %v4905_v43, %v2658_v35 }
 0x533   : > { %v2812_v50 = vmax.f32 %v2659_v49, 0.0 }
 0x535   : > { %v2943_v54 = vmax.f32 %v2941_v63, %v2812_v50 }
 0x538   : > { %v2661_v56 = vpop.f32.mrf.mxu2 }
 0x539   : > { %v2662_v57 = vadd.f32 %v4905_v43, %v2661_v56 }
 0x53b   : > { %v2813_v29 = vmax.f32 %v2662_v57, 0.0 }
 0x53d   : > { %v2944_v42 = vmax.f32 %v2942_v22, %v2813_v29 }
 0x540   : > { %v2663_v24 = vpop.f32.mrf.mxu2 }
 0x541   : > { %v2664_v20 = vadd.f32 %v4905_v43, %v2663_v24 }
 0x543   : > { %v2814_v38 = vmax.f32 %v2664_v20, 0.0 }
 0x545   : > { %v2945_v45 = vmax.f32 %v2943_v54, %v2814_v38 }
 0x548   : > { %v2666_v31 = vpop.f32.mrf.mxu2 }
 0x549   : > { %v2667_v34 = vadd.f32 %v4905_v43, %v2666_v31  ;;  %v2696_v52 = vpop.f32.mrf.mxu3 }
 0x54a   : > { %v2697_v21 = vadd.f32 %v4905_v43, %v2696_v52 }
 0x54b   : > { %v2815_v41 = vmax.f32 %v2667_v34, 0.0 }
 0x54c   : > { %v2827_v57 = vmax.f32 %v2697_v21, 0.0 }
 0x54d   : > { %v2946_v3 = vmax.f32 %v2944_v42, %v2815_v41 }
 0x550   : > { %v2668_v30 = vpop.f32.mrf.mxu2 }
 0x551   : > { %v2669_v5 = vadd.f32 %v4905_v43, %v2668_v30  ;;  %v2698_v44 = vpop.f32.mrf.mxu3 }
 0x552   : > { %v2699_v35 = vadd.f32 %v4905_v43, %v2698_v44 }
 0x553   : > { %v2816_v8 = vmax.f32 %v2669_v5, 0.0 }
 0x554   : > { %v2828_v29 = vmax.f32 %v2699_v35, 0.0 }
 0x555   : > { %v2947_v18 = vmax.f32 %v2945_v45, %v2816_v8 }
 0x558   : > { %v2671_v6 = vpop.f32.mrf.mxu2 }
 0x559   : > { %v2672_v7 = vadd.f32 %v4905_v43, %v2671_v6 }
 0x55b   : > { %v2817_v17 = vmax.f32 %v2672_v7, 0.0 }
 0x55d   : > { %v2948_v60 = vmax.f32 %v2946_v3, %v2817_v17 }
 0x560   : > { %v2673_v13 = vpop.f32.mrf.mxu2 }
 0x561   : > { %v2674_v51 = vadd.f32 %v4905_v43, %v2673_v13 }
 0x563   : > { %v2818_v9 = vmax.f32 %v2674_v51, 0.0 }
 0x565   : > { %v2949_v10 = vmax.f32 %v2947_v18, %v2818_v9 }
 0x568   : > { %v2676_v14 = vpop.f32.mrf.mxu2 }
 0x569   : > { %v2677_v0 = vadd.f32 %v4905_v43, %v2676_v14 }
 0x56b   : > { %v2819_v2 = vmax.f32 %v2677_v0, 0.0 }
 0x56d   : > { %v2950_v55 = vmax.f32 %v2948_v60, %v2819_v2 }
 0x570   : > { %v2678_v4 = vpop.f32.mrf.mxu2 }
 0x571   : > { %v2679_v28 = vadd.f32 %v4905_v43, %v2678_v4 }
 0x573   : > { %v2820_v33 = vmax.f32 %v2679_v28, 0.0 }
 0x575   : > { %v2951_v48 = vmax.f32 %v2949_v10, %v2820_v33 }
 0x578   : > { %v2681_v16 = vpop.f32.mrf.mxu2 }
 0x579   : > { %v2682_v11 = vadd.f32 %v4905_v43, %v2681_v16 }
 0x57b   : > { %v2821_v25 = vmax.f32 %v2682_v11, 0.0 }
 0x57d   : > { %v2952_v19 = vmax.f32 %v2950_v55, %v2821_v25 }
 0x580   : > { %v2683_v47 = vpop.f32.mrf.mxu2 }
 0x581   : > { %v2684_v12 = vadd.f32 %v4905_v43, %v2683_v47 }
 0x583   : > { %v2822_v1 = vmax.f32 %v2684_v12, 0.0 }
 0x585   : > { %v2953_v23 = vmax.f32 %v2951_v48, %v2822_v1 }
 0x588   : > { %v2686_v61 = vpop.f32.mrf.mxu2 }
 0x589   : > { %v2687_v32 = vadd.f32 %v4905_v43, %v2686_v61 }
 0x58b   : > { %v2823_v15 = vmax.f32 %v2687_v32, 0.0 }
 0x58d   : > { %v2954_v22 = vmax.f32 %v2952_v19, %v2823_v15 }
 0x590   : > { %v2688_v62 = vpop.f32.mrf.mxu2 }
 0x591   : > { %v2689_v37 = vadd.f32 %v4905_v43, %v2688_v62 }
 0x593   : > { %v2824_v27 = vmax.f32 %v2689_v37, 0.0 }
 0x595   : > { %v2955_v50 = vmax.f32 %v2953_v23, %v2824_v27 }
 0x598   : > { %v2691_v39 = vpop.f32.mrf.mxu2 }
 0x599   : > { %v2692_v40 = vadd.f32 %v4905_v43, %v2691_v39 }
 0x59b   : > { %v2825_v63 = vmax.f32 %v2692_v40, 0.0 }
 0x59d   : > { %v2956_v54 = vmax.f32 %v2954_v22, %v2825_v63 }
 0x59f   : > { %v2958_v24 = vmax.f32 %v2956_v54, %v2827_v57 }
 0x5a0   : > { %v2693_v46 = vpop.f32.mrf.mxu2 }
 0x5a1   : > { %v2694_v49 = vadd.f32 %v4905_v43, %v2693_v46 }
 0x5a3   : > { %v2826_v56 = vmax.f32 %v2694_v49, 0.0 }
 0x5a5   : > { %v2957_v42 = vmax.f32 %v2955_v50, %v2826_v56 }
 0x5a7   : > { %v2959_v20 = vmax.f32 %v2957_v42, %v2828_v29 }
 0x5a9   : > { %v2960_v38 = vmax.f32 %v2958_v24, %v2959_v20 }
 0x5ab   : > { %v2961_v45 = vrot.slane %v2960_v38, 4 }
 0x5ad   : > { %v2962_v31 = vmax.f32 %v2960_v38, %v2961_v45 }
 0x5af   : > { %v2963_v34 = vrot.slane %v2962_v31, 2 }
 0x5b1   : > { %v2964_v41 = vmax.f32 %v2962_v31, %v2963_v34  ;;  %2970 = sbr.rel (%p3601_p8) target bundleno = 1466 (0x5ba), region = 146 }
 0x5b3   : > { %v2965_v3 = vrot.slane %v2964_v41, 1 }
 0x5b5   : > { %v2966_v30 = vmax.f32 %v2964_v41, %v2965_v3 }
 0x5b6   : > { %v2974_v43 = vrot.slane %v2765_v36, 7  ;;  %vm2975_vm2 = vcmask 1041409   ;;  %v3784_v5 = vmov -inf  }
 0x5b7   : > { %2971 = vst [vmem:[#allocation2] sm:$0x3] %v3784_v5 }
 0x5b8   : > { %v2976_v8 = vsel %vm2975_vm2, %v2974_v43, %v2701_v59 }
 0x5b9   : > { %2978 = vst [vmem:[#allocation3] sm:$0x3] %v2976_v8 }
 0x5ba PF: > { %vm2982_vm3 = vcmask 1041409   ;;  %p3602_p9 = scmp.ne.s32.totalorder %s3915_s20, 1 }
 0x5bb   : > { %v2983_v6 = vsel %vm2982_vm3, %v2966_v30, %v4683_v26  ;;  %s5291_s30 = sld [smem:[#allocation9_spill]] (!%p3602_p9) }
 0x5bd   : > { %2990 = sbr.rel (%p3602_p9) target bundleno = 2374 (0x946), region = 150 }
 0x5be   : > { %v2979_v18 = vld [vmem:[#allocation2] sm:$0x3] }
 0x5bf   : > { %v2985_v7 = vmax.f32 %v2979_v18, %v2983_v6 }
 0x5c1   : > { %2986 = vst [vmem:[#allocation2] sm:$0x3] %v2985_v7 }
 0x5c2   : > { %v3079_v58 = vld [vmem:[%s5260_s8 + $0x8] sm:$0xff]  ;;  %v3078_v53 = vld [vmem:[%s5260_s8] sm:$0xff]  ;;  %vm3084_vm4 = vcmask 130048   ;;  %v3657_v26 = vld [vmem:[%s5258_s6 + $0x38] sm:$0xff]  ;;  %vm3313_vm5 = vcmask 1041408   ;;  %vm3340_vm9 = vcmask 1024  }
 0x5c3   : > { %3102 = vmatpush.msra.mxu1 %v3079_v58  ;;  %v3077_v59 = vld [vmem:[%s5291_s30] sm:$0x3]  ;;  %v3124_v36 = vld [vmem:[%s5262_s10 + $0x78] sm:$0xff]  ;;  %3063 = vmatpush.bf16.msra.mxu0 %v3657_v26  ;;  %v3656_v17 = vld [vmem:[%s5258_s6 + $0x30] sm:$0xff]  ;;  %s3317_s30 = sld [smem:[#allocation4]]  ;;  %vm3368_vm15 = vcmask 9216  }
 0x5c4   : > { %v3123_v60 = vld [vmem:[%s5262_s10 + $0x70] sm:$0xff]  ;;  %3129 = vmatpush.msra.mxu2 %v3124_v36  ;;  %v3122_v13 = vld [vmem:[%s5262_s10 + $0x68] sm:$0xff]  ;;  %v3121_v4 = vld [vmem:[%s5262_s10 + $0x60] sm:$0xff]  ;;  %vm3376_vm0 = vcmask 8192  }
 0x5c5   : > { %3103 = vmatpush.msra.mxu1 %v3078_v53  ;;  %v3655_v14 = vld [vmem:[%s5258_s6 + $0x28] sm:$0xff]  ;;  %v3120_v16 = vld [vmem:[%s5262_s10 + $0x58] sm:$0xff]  ;;  %v3654_v47 = vld [vmem:[%s5258_s6 + $0x20] sm:$0xff] }
 0x5c6   : > { %3635 = vmatmul.msk.f32.vlgmr.msra.gmra.mxu1 %vm3084_vm4, %v3077_v59  ;;  %3130 = vmatpush.msra.mxu2 %v3123_v60  ;;  %v3119_v61 = vld [vmem:[%s5262_s10 + $0x50] sm:$0xff]  ;;  %v3118_v62 = vld [vmem:[%s5262_s10 + $0x48] sm:$0xff]  ;;  %v3653_v52 = vld [vmem:[%s5258_s6 + $0x18] sm:$0xff] }
 0x5c7   : > { %3064 = vmatpush.bf16.msra.mxu0 %v3656_v17  ;;  %v3117_v51 = vld [vmem:[%s5262_s10 + $0x40] sm:$0xff]  ;;  %v3116_v0 = vld [vmem:[%s5262_s10 + $0x38] sm:$0xff]  ;;  %v3652_v28 = vld [vmem:[%s5258_s6 + $0x10] sm:$0xff] }
 0x5c8   : > { %3131 = vmatpush.msra.mxu2 %v3122_v13  ;;  %v3115_v11 = vld [vmem:[%s5262_s10 + $0x30] sm:$0xff]  ;;  %v3114_v39 = vld [vmem:[%s5262_s10 + $0x28] sm:$0xff]  ;;  %v2991_v2 = vld [vmem:[#allocation3] sm:$0x3] }
 0x5c9   : > { %v3651_v9 = vld [vmem:[%s5258_s6 + $0x8] sm:$0xff]  ;;  %v2992_v12 = vld [vmem:[#allocation2] sm:$0x3]  ;;  %v3112_v33 = vld [vmem:[%s5262_s10 + $0x18] sm:$0xff] }
 0x5ca   : > { %3132 = vmatpush.msra.mxu2 %v3121_v4  ;;  %v3113_v32 = vld [vmem:[%s5262_s10 + $0x20] sm:$0xff]  ;;  %v2993_v25 = vadd.f32 %v2992_v12, %v2991_v2  ;;  %v3111_v10 = vld [vmem:[%s5262_s10 + $0x10] sm:$0xff]  ;;  %v3110_v55 = vld [vmem:[%s5262_s10 + $0x8] sm:$0xff] }
 0x5cb   : > { %3065 = vmatpush.bf16.msra.mxu0 %v3655_v14  ;;  %v3650_v37 = vld [vmem:[%s5258_s6] sm:$0xff]  ;;  %v3180_v15 = vld [vmem:[%s5265_s13 + $0x78] sm:$0xff]  ;;  %v3179_v44 = vld [vmem:[%s5265_s13 + $0x70] sm:$0xff] }
 0x5cc   : > { %3133 = vmatpush.msra.mxu2 %v3120_v16  ;;  %v2994_v40 = vpack.c.bf16 %v2993_v25, %v2993_v25  ;;  %v3109_v1 = vld [vmem:[%s5262_s10] sm:$0xff]  ;;  %3181 = vmatpush.msra.mxu3 %v3180_v15  ;;  %v3164_v48 = vld [vmem:[%s5264_s12 + $0x78] sm:$0xff]  ;;  %v3178_v19 = vld [vmem:[%s5265_s13 + $0x68] sm:$0xff] }
 0x5cd   : > { %3201 = vmatpush.msrb.mxu1 %v3164_v48  ;;  %v3163_v27 = vld [vmem:[%s5264_s12 + $0x70] sm:$0xff]  ;;  %v3162_v63 = vld [vmem:[%s5264_s12 + $0x68] sm:$0xff]  ;;  %v3177_v21 = vld [vmem:[%s5265_s13 + $0x60] sm:$0xff] }
 0x5ce   : > { %3134 = vmatpush.msra.mxu2 %v3119_v61  ;;  %3182 = vmatpush.msra.mxu3 %v3179_v44  ;;  %v3161_v46 = vld [vmem:[%s5264_s12 + $0x60] sm:$0xff]  ;;  %v3176_v23 = vld [vmem:[%s5265_s13 + $0x58] sm:$0xff]  ;;  %v3175_v35 = vld [vmem:[%s5265_s13 + $0x50] sm:$0xff] }
 0x5cf   : > { %3066 = vmatpush.bf16.msra.mxu0 %v3654_v47  ;;  %3202 = vmatpush.msrb.mxu1 %v3163_v27  ;;  %v3160_v22 = vld [vmem:[%s5264_s12 + $0x58] sm:$0xff]  ;;  %v3159_v49 = vld [vmem:[%s5264_s12 + $0x50] sm:$0xff]  ;;  %v3174_v50 = vld [vmem:[%s5265_s13 + $0x48] sm:$0xff] }
 0x5d0   : > { %3135 = vmatpush.msra.mxu2 %v3118_v62  ;;  %3183 = vmatpush.msra.mxu3 %v3178_v19  ;;  %v3173_v54 = vld [vmem:[%s5265_s13 + $0x40] sm:$0xff]  ;;  %v3172_v56 = vld [vmem:[%s5265_s13 + $0x38] sm:$0xff]  ;;  %v3171_v24 = vld [vmem:[%s5265_s13 + $0x30] sm:$0xff] }
 0x5d1   : > { %3203 = vmatpush.msrb.mxu1 %v3162_v63  ;;  %v3715_v57 = vld [vmem:[%s5261_s9] ss:$0 sm:$0xff]  ;;  %v3158_v20 = vld [vmem:[%s5264_s12 + $0x48] sm:$0xff]  ;;  %v3156_v41 = vld [vmem:[%s5264_s12 + $0x38] sm:$0xff] }
 0x5d2   : > { %3136 = vmatpush.msra.mxu2 %v3117_v51  ;;  %3184 = vmatpush.msra.mxu3 %v3177_v21  ;;  %v3170_v38 = vld [vmem:[%s5265_s13 + $0x28] sm:$0xff]  ;;  %v3157_v45 = vld [vmem:[%s5264_s12 + $0x40] sm:$0xff]  ;;  %v3168_v3 = vld [vmem:[%s5265_s13 + $0x18] sm:$0xff] }
 0x5d3   : > { %3067 = vmatpush.bf16.msra.mxu0 %v3653_v52  ;;  %3204 = vmatpush.msrb.mxu1 %v3161_v46  ;;  %v3169_v34 = vld [vmem:[%s5265_s13 + $0x20] sm:$0xff]  ;;  %v3155_v30 = vld [vmem:[%s5264_s12 + $0x30] sm:$0xff]  ;;  %v3154_v5 = vld [vmem:[%s5264_s12 + $0x28] sm:$0xff] }
 0x5d4   : > { %3137 = vmatpush.msra.mxu2 %v3116_v0  ;;  %3185 = vmatpush.msra.mxu3 %v3176_v23  ;;  %v3167_v43 = vld [vmem:[%s5265_s13 + $0x10] sm:$0xff]  ;;  %v3166_v8 = vld [vmem:[%s5265_s13 + $0x8] sm:$0xff]  ;;  %v3153_v18 = vld [vmem:[%s5264_s12 + $0x20] sm:$0xff] }
 0x5d5   : > { %3205 = vmatpush.msrb.mxu1 %v3160_v22  ;;  %v3165_v6 = vld [vmem:[%s5265_s13] sm:$0xff]  ;;  %v3152_v7 = vld [vmem:[%s5264_s12 + $0x18] sm:$0xff]  ;;  %v3151_v58 = vld [vmem:[%s5264_s12 + $0x10] sm:$0xff] }
 0x5d6   : > { %3138 = vmatpush.msra.mxu2 %v3115_v11  ;;  %3186 = vmatpush.msra.mxu3 %v3175_v35  ;;  %v3716_v53 = vld [vmem:[%s5259_s7] ss:$0 sm:$0xff]  ;;  %v3150_v60 = vld [vmem:[%s5264_s12 + $0x8] sm:$0xff]  ;;  %v3242_v14 = vld [vmem:[%s5267_s15 + $0x78] sm:$0xff] }
 0x5d7   : > { %3068 = vmatpush.bf16.msra.mxu0 %v3652_v28  ;;  %3206 = vmatpush.msrb.mxu1 %v3159_v49  ;;  %v3149_v13 = vld [vmem:[%s5264_s12] sm:$0xff]  ;;  %v3282_v4 = vld [vmem:[%s5269_s17 + $0x78] sm:$0xff]  ;;  %v3241_v16 = vld [vmem:[%s5267_s15 + $0x70] sm:$0xff] }
 0x5d8   : > { %3139 = vmatpush.msra.mxu2 %v3114_v39  ;;  %3187 = vmatpush.msra.mxu3 %v3174_v50  ;;  %v3281_v47 = vld [vmem:[%s5269_s17 + $0x70] sm:$0xff]  ;;  %v3240_v61 = vld [vmem:[%s5267_s15 + $0x68] sm:$0xff]  ;;  %v3239_v52 = vld [vmem:[%s5267_s15 + $0x60] sm:$0xff] }
 0x5d9   : > { %3207 = vmatpush.msrb.mxu1 %v3158_v20  ;;  %v3280_v62 = vld [vmem:[%s5269_s17 + $0x68] sm:$0xff]  ;;  %v3279_v51 = vld [vmem:[%s5269_s17 + $0x60] sm:$0xff]  ;;  %v3238_v0 = vld [vmem:[%s5267_s15 + $0x58] sm:$0xff] }
 0x5da   : > { %3140 = vmatpush.msra.mxu2 %v3113_v32  ;;  %3188 = vmatpush.msra.mxu3 %v3173_v54  ;;  %v3278_v28 = vld [vmem:[%s5269_s17 + $0x58] sm:$0xff]  ;;  %v3237_v11 = vld [vmem:[%s5267_s15 + $0x50] sm:$0xff]  ;;  %v3276_v2 = vld [vmem:[%s5269_s17 + $0x48] sm:$0xff] }
 0x5db   : > { %3069 = vmatpush.bf16.msra.mxu0 %v3651_v9  ;;  %3208 = vmatpush.msrb.mxu1 %v3157_v45  ;;  %v3277_v39 = vld [vmem:[%s5269_s17 + $0x50] sm:$0xff]  ;;  %v3236_v9 = vld [vmem:[%s5267_s15 + $0x48] sm:$0xff]  ;;  %v3235_v12 = vld [vmem:[%s5267_s15 + $0x40] sm:$0xff] }
 0x5dc   : > { %3141 = vmatpush.msra.mxu2 %v3112_v33  ;;  %3189 = vmatpush.msra.mxu3 %v3172_v56  ;;  %v3275_v32 = vld [vmem:[%s5269_s17 + $0x40] sm:$0xff]  ;;  %v3234_v33 = vld [vmem:[%s5267_s15 + $0x38] sm:$0xff]  ;;  %v3229_v21 = vld [vmem:[%s5267_s15 + $0x10] sm:$0xff] }
 0x5dd   : > { %3209 = vmatpush.msrb.mxu1 %v3156_v41  ;;  %v3274_v25 = vld [vmem:[%s5269_s17 + $0x38] sm:$0xff]  ;;  %v3271_v15 = vld [vmem:[%s5269_s17 + $0x20] sm:$0xff]  ;;  %v3269_v46 = vld [vmem:[%s5269_s17 + $0x10] sm:$0xff] }
 0x5de   : > { %3142 = vmatpush.msra.mxu2 %v3111_v10  ;;  %3190 = vmatpush.msra.mxu3 %v3171_v24  ;;  %v3232_v10 = vld [vmem:[%s5267_s15 + $0x28] sm:$0xff]  ;;  %v3717_v44 = vld [vmem:[%s5263_s11] ss:$0 sm:$0xff]  ;;  %v3230_v27 = vld [vmem:[%s5267_s15 + $0x18] sm:$0xff] }
 0x5df   : > { %3070 = vmatpush.bf16.msra.mxu0 %v3650_v37  ;;  %3210 = vmatpush.msrb.mxu1 %v3155_v30  ;;  %v3233_v37 = vld [vmem:[%s5267_s15 + $0x30] sm:$0xff]  ;;  %v3270_v63 = vld [vmem:[%s5269_s17 + $0x18] sm:$0xff]  ;;  %v3228_v23 = vld [vmem:[%s5267_s15 + $0x8] sm:$0xff] }
 0x5e0   : > { %3143 = vmatpush.msra.mxu2 %v3110_v55  ;;  %3191 = vmatpush.msra.mxu3 %v3170_v38  ;;  %v3272_v55 = vld [vmem:[%s5269_s17 + $0x28] sm:$0xff]  ;;  %v3227_v35 = vld [vmem:[%s5267_s15] sm:$0xff] }
 0x5e1   : > { %3211 = vmatpush.msrb.mxu1 %v3154_v5  ;;  %v3268_v22 = vld [vmem:[%s5269_s17 + $0x8] sm:$0xff]  ;;  %v3267_v49 = vld [vmem:[%s5269_s17] sm:$0xff] }
 0x5e2   : > { %3071 = vmatmul.bf16.vlgmr.msra.gmra.mxu0 %v2994_v40  ;;  %3144 = vmatpush.msra.mxu2 %v3109_v1  ;;  %v3273_v40 = vld [vmem:[%s5269_s17 + $0x30] sm:$0xff]  ;;  %v3231_v1 = vld [vmem:[%s5267_s15 + $0x20] sm:$0xff] }
 0x5e3   : > { %3192 = vmatpush.msra.mxu3 %v3169_v34  ;;  %3212 = vmatpush.msrb.mxu1 %v3153_v18  ;;  %v3718_v54 = vld [vmem:[%s5266_s14] ss:$0 sm:$0xff] }
 0x5e4   : > { %3247 = vmatpush.msrb.mxu0 %v3242_v14  ;;  %3287 = vmatpush.msrb.mxu2 %v3282_v4  ;;  %v3720_v24 = vld [vmem:[%s5270_s18] ss:$0 sm:$0xff] }
 0x5e5   : > { %3193 = vmatpush.msra.mxu3 %v3168_v3  ;;  %3213 = vmatpush.msrb.mxu1 %v3152_v7  ;;  %v3721_v45 = vld [vmem:[%s5271_s19] ss:$0 sm:$0xff]  ;;  %v3318_v3 = vstv %s3317_s30 }
 0x5e6   : > { %3248 = vmatpush.msrb.mxu0 %v3241_v16  ;;  %3288 = vmatpush.msrb.mxu2 %v3281_v47 }
 0x5e7   : > { %3194 = vmatpush.msra.mxu3 %v3167_v43  ;;  %3214 = vmatpush.msrb.mxu1 %v3151_v58 }
 0x5e8   : > { %3249 = vmatpush.msrb.mxu0 %v3240_v61  ;;  %3289 = vmatpush.msrb.mxu2 %v3280_v62 }
 0x5e9   : > { %3195 = vmatpush.msra.mxu3 %v3166_v8  ;;  %3215 = vmatpush.msrb.mxu1 %v3150_v60 }
 0x5ea   : > { %3250 = vmatpush.msrb.mxu0 %v3239_v52  ;;  %3290 = vmatpush.msrb.mxu2 %v3279_v51 }
 0x5eb   : > { %3196 = vmatpush.msra.mxu3 %v3165_v6  ;;  %3216 = vmatpush.msrb.mxu1 %v3149_v13 }
 0x5ec   : > { %3251 = vmatpush.msrb.mxu0 %v3238_v0  ;;  %3291 = vmatpush.msrb.mxu2 %v3278_v28 }
 0x5ee   : > { %3252 = vmatpush.msrb.mxu0 %v3237_v11  ;;  %3292 = vmatpush.msrb.mxu2 %v3277_v39  ;;  %v3719_v39 = vld [vmem:[%s5268_s16] ss:$0 sm:$0xff] }
 0x5f0   : > { %3253 = vmatpush.msrb.mxu0 %v3236_v9  ;;  %3293 = vmatpush.msrb.mxu2 %v3276_v2 }
 0x5f2   : > { %3254 = vmatpush.msrb.mxu0 %v3235_v12  ;;  %3294 = vmatpush.msrb.mxu2 %v3275_v32 }
 0x5f4   : > { %3255 = vmatpush.msrb.mxu0 %v3234_v33  ;;  %3295 = vmatpush.msrb.mxu2 %v3274_v25 }
 0x5f6   : > { %3256 = vmatpush.msrb.mxu0 %v3233_v37  ;;  %3296 = vmatpush.msrb.mxu2 %v3273_v40 }
 0x5f8   : > { %3257 = vmatpush.msrb.mxu0 %v3232_v10  ;;  %3297 = vmatpush.msrb.mxu2 %v3272_v55 }
 0x5fa   : > { %3258 = vmatpush.msrb.mxu0 %v3231_v1  ;;  %3298 = vmatpush.msrb.mxu2 %v3271_v15 }
 0x5fc   : > { %3259 = vmatpush.msrb.mxu0 %v3230_v27  ;;  %3299 = vmatpush.msrb.mxu2 %v3270_v63 }
 0x5fe   : > { %3260 = vmatpush.msrb.mxu0 %v3229_v21  ;;  %3300 = vmatpush.msrb.mxu2 %v3269_v46 }
 0x600   : > { %3261 = vmatpush.msrb.mxu0 %v3228_v23  ;;  %3301 = vmatpush.msrb.mxu2 %v3268_v22 }
 0x602   : > { %3262 = vmatpush.msrb.mxu0 %v3227_v35  ;;  %3302 = vmatpush.msrb.mxu2 %v3267_v49 }
 0x643   : > { %v3105_v29 = vpop.f32.mrf.mxu1 }
 0x644   : > { %v3106_v42 = vadd.f32 %v3715_v57, %v3105_v29 }
 0x646   : > { %v3108_v31 = vmax.f32 %v3106_v42, 0.0 }
 0x648   : > { %3145 = vmatmul.f32.vlgmr.msra.gmra.mxu2 %v3108_v31 }
 0x65f   : > { %v3072_v59 = vpop.f32.mrf.mxu0 }
 0x660   : > { %v3073_v26 = vadd.f32 %v3716_v53, %v3072_v59 }
 0x662   : > { %v3076_v36 = vmax.f32 %v3073_v26, 0.0 }
 0x664   : > { %3197 = vmatmul.f32.vlgmr.msra.gmra.mxu3 %v3076_v36 }
 0x667   : > { %v3074_v17 = vpop.f32.mrf.mxu0 }
 0x6cb   : > { %v3146_v48 = vpop.f32.mrf.mxu2 }
 0x6cc   : > { %v3147_v19 = vadd.f32 %v3717_v44, %v3146_v48 }
 0x6ce   : > { %3217 = vmatmul.f32.vlgmr.msrb.gmra.mxu1 %v3147_v19 }
 0x6e7   : > { %v3198_v50 = vpop.f32.mrf.mxu3 }
 0x74b   : > { %v3218_v56 = vpop.f32.mrf.mxu1 }
 0x74c   : > { %v3219_v57 = vadd.f32 %v3218_v56, %v3198_v50 }
 0x74e   : > { %v3225_v29 = vadd.f32 %v3718_v54, %v3219_v57 }
 0x750   : > { %v3226_v42 = vmax.f32 %v3225_v29, 0.0 }
 0x752   : > { %3263 = vmatmul.f32.vlgmr.msrb.gmra.mxu0 %v3226_v42  ;;  %3303 = vmatmul.f32.vlgmr.msrb.gmra.mxu2 %v3226_v42 }
 0x7cf   : > { %v3264_v2 = vpop.f32.mrf.mxu0 }
 0x7d0   : > { %v3265_v25 = vadd.f32 %v3719_v39, %v3264_v2 }
 0x7d5   : > { %v3304_v20 = vpop.f32.mrf.mxu2 }
 0x7d6   : > { %v3305_v38 = vadd.f32 %v3720_v24, %v3304_v20 }
 0x7d8   : > { %v3307_v31 = vmax.f32 %v3305_v38, 0.0 }
 0x7da   : > { %v3312_v34 = vmul.f32 %v3721_v45, %v3307_v31 }
 0x7dc   : > { %v3314_v41 = vsel %vm3313_vm5, %v3312_v34, 0.0 }
 0x7dd   : > { %3315 = vadd.xlane.f32.xlu0 %v3314_v41 }
 0x850   : > { %v3316_v30 = vpop.xlane.xlu0 %3315 }
 0x851   : > { %v3319_v43 = vadd.f32 %v3318_v3, %v3316_v30 }
 0x853   : > { %v3636_v5 = vmul.f32 -1.442695, %v3319_v43 }
 0x855   : > { %3722 = vpow2.f32 %v3636_v5 }
 0x85b   : > { %v3723_v8 = vpop.eup %3722 }
 0x85c   : > { %v3323_v18 = vadd.f32 1.0, %v3723_v8 }
 0x85e   : > { %3724 = vrcp.f32 %v3323_v18  ;;  %v3335_v53 = vand.u32 2147483648, %v3323_v18  ;;  %v3333_v26 = vand.u32 2147483647, %v3323_v18  ;;  %vm3329_vm7 = vweird.f32 %v3323_v18 }
 0x860   : > { %v3336_v17 = vor.u32 1.1754944e-38, %v3335_v53  ;;  %vm3334_vm10 = vcmp.eq.f32.partialorder %v3333_v26, 8.507059e+37 }
 0x864   : > { %v3725_v6 = vpop.eup %3724 }
 0x865   : > { %v3325_v7 = vmul.f32 %v3725_v6, %v3323_v18  ;;  %vm3330_vm6 = vweird.f32 %v3725_v6 }
 0x866   : > { %vm3331_vm8 = vmor %vm3329_vm7, %vm3330_vm6 }
 0x867   : > { %v3326_v58 = vsub.f32 1.0, %v3325_v7 }
 0x869   : > { %v3327_v59 = vmul.f32 %v3725_v6, %v3326_v58 }
 0x86b   : > { %v3328_v36 = vadd.f32 %v3725_v6, %v3327_v59 }
 0x86d   : > { %v3332_v60 = vsel %vm3331_vm8, %v3725_v6, %v3328_v36 }
 0x86e   : > { %v3337_v13 = vsel %vm3334_vm10, %v3336_v17, %v3332_v60 }
 0x86f   : > { %v3341_v14 = vsel %vm3340_vm9, %v3337_v13, 0.0  ;;  %v3339_v10 = vmul.f32 %v3337_v13, %v3265_v25 }
 0x870   : > { %3342 = vadd.xlane.f32.xlu0 %v3341_v14 }
 0x8e3   : > { %v3343_v4 = vpop.xlane.xlu0 %3342 }
 0x8e4   : > { %v3344_v16 = vrot.slane %v3343_v4, 4 }
 0x8e6   : > { %v3345_v47 = vadd.f32 %v3344_v16, %v3343_v4 }
 0x8e8   : > { %v3346_v61 = vrot.slane %v3345_v47, 2 }
 0x8ea   : > { %v3347_v62 = vadd.f32 %v3346_v61, %v3345_v47 }
 0x8ec   : > { %v3348_v52 = vrot.slane %v3347_v62, 1 }
 0x8ee   : > { %v3349_v51 = vadd.f32 %v3348_v52, %v3347_v62 }
 0x8f0   : > { %3675 = vpush %v3349_v51 }
 0x921   : > { %s3676_s22 = spop %3675 }
 0x922   : > { %s3351_s26 = sadd.f32 1e-05, %s3676_s22 }
 0x924   : > { %v3352_v0 = vstv %s3351_s26 }
 0x925   : > { %3726 = vrcp.f32 %v3352_v0  ;;  %v3364_v12 = vand.u32 2147483648, %v3352_v0  ;;  %v3362_v33 = vand.u32 2147483647, %v3352_v0  ;;  %vm3358_vm12 = vweird.f32 %v3352_v0 }
 0x927   : > { %v3365_v40 = vor.u32 1.1754944e-38, %v3364_v12  ;;  %vm3363_vm14 = vcmp.eq.f32.partialorder %v3362_v33, 8.507059e+37 }
 0x92b   : > { %v3727_v28 = vpop.eup %3726 }
 0x92c   : > { %v3354_v11 = vmul.f32 %v3727_v28, %v3352_v0  ;;  %vm3359_vm11 = vweird.f32 %v3727_v28 }
 0x92d   : > { %vm3360_vm13 = vmor %vm3358_vm12, %vm3359_vm11 }
 0x92e   : > { %v3355_v9 = vsub.f32 1.0, %v3354_v11 }
 0x930   : > { %v3356_v32 = vmul.f32 %v3727_v28, %v3355_v9 }
 0x932   : > { %v3357_v37 = vadd.f32 %v3727_v28, %v3356_v32 }
 0x934   : > { %v3361_v55 = vsel %vm3360_vm13, %v3727_v28, %v3357_v37 }
 0x935   : > { %v3366_v1 = vsel %vm3363_vm14, %v3365_v40, %v3361_v55 }
 0x936   : > { %v3367_v15 = vmul.f32 %v3366_v1, %v3339_v10 }
 0x938   : > { %v3369_v44 = vsel %vm3368_vm15, %v3367_v15, 0.0 }
 0x939   : > { %v3370_v48 = vrot.slane %v3369_v44, 4 }
 0x93b   : > { %v3371_v19 = vadd.f32 %v3370_v48, %v3369_v44 }
 0x93d   : > { %v3372_v27 = vrot.slane %v3371_v19, 2 }
 0x93f   : > { %v3373_v63 = vadd.f32 %v3372_v27, %v3371_v19 }
 0x941   : > { %v3374_v21 = vrot.slane %v3373_v63, 1 }
 0x943   : > { %v3375_v46 = vadd.f32 %v3374_v21, %v3373_v63 }
 0x945   : > { %3377 = vst.msk [vmem:[#allocation6] sm:$0x1] %vm3376_vm0, %v3375_v46 }
 0x946 PF: > { %p3681_p10 = scmp.eq.s32.totalorder %s3915_s20, 1  ;;  %s3785_s25 = smov [#allocation6]  }
 0x947   : > { %s3384_s29 = sshll.u32 %s3785_s25, 4  ;;  %s3386_s1 = sshll.u32 %s5273_s21, 4  ;;  %s3385_s29 = int_to_ptr.vmem [resolvable:$true] %s3384_s29  ;;  %s3387_s1 = int_to_ptr.hbm [resolvable:$true] %s3386_s1 }
 0x948   : > { %3678 = dma.vmem_to_hbm [thread:$0]  (%p3681_p10), %s3385_s29, 16, %s3387_s1, [#allocation7]  }
 0x949   : > { %3769 = dma.done.wait (%p3681_p10), [#allocation7], 16  }
 0x94a   : > { %3771 = vsyncadd (%p3681_p10), [#allocation7], 4294967280 }
 0x94b PF: > { %p30_p11 = scmp.ge.s32.totalorder %s3918_s28, 4   ;;  %s5292_s26 = smov %s3778_s27 }
 0x94c   : > { %s5293_s27 = smov %s3927_s4  ;;  %s5294_s3 = smov %s3918_s28 }
 0x94d   :  { %32 = sbr.rel (!%p30_p11) target bundleno = 10 (0xa), region = 182 }
 0x952   :  { %3400 = vsyncpa [#allocation7], 1 }
 0x953   :  { %3402 = vsyncpa [#allocation7 + $0x1], 1 }

</bundles_post_ra>
